<compile_context>
chip_gen: v7x
topology: tpu7x:2x2x1
jax: 0.10.0
libtpu: 0.0.40
codegen_flags: <defaults>
</compile_context>

<pallas_src>
import numpy as np
import jax
import jax.numpy as jnp
from jax import lax
from jax.experimental import pallas as pl
from jax.experimental.pallas import tpu as pltpu

# ----------------------------- configuration --------------------------------
B          = 2            # batch
MAX_SEQ    = 8            # max_seq
INPUT_DIM  = 16           # input_dim (raw obs has INPUT_DIM + 1 cols; last col is the -1 flag)
H          = 32           # feature_dim == transformer hidden_dim == dummy_size
NUM_HEADS  = 4
HEAD_DIM   = H // NUM_HEADS
NUM_LAYERS = 2            # small for the example (module default is 4)
FF_DIM     = H * NUM_HEADS
NET_ARCH   = [32, 32]     # shared pi / vf arch, activation_fn = nn.ReLU
N_MLP      = len(NET_ARCH)
LN_EPS     = 1e-5
NEG_INF    = -1e30        # large finite negative (identical softmax result, safer than -inf)


# ----------------------------- in-kernel helpers ------------------------------
def _softmax_last(x):
    m = jnp.max(x, axis=-1, keepdims=True)
    e = jnp.exp(x - m)
    return e * pl.reciprocal(jnp.sum(e, axis=-1, keepdims=True), approx=False)


def _layer_norm(x, gamma, beta):
    mu = jnp.mean(x, axis=-1, keepdims=True)
    var = jnp.mean((x - mu) ** 2, axis=-1, keepdims=True)
    return (x - mu) * lax.rsqrt(var + LN_EPS) * gamma + beta


# ----------------------------- fused kernel -----------------------------------
def fused_policy_kernel(feat_ref, mask_ref,
                        w_emb_ref, b_emb_ref,
                        wqkv_ref, bqkv_ref, wo_ref, bo_ref,
                        ln1g_ref, ln1b_ref,
                        wf1_ref, bf1_ref, wf2_ref, bf2_ref,
                        ln2g_ref, ln2b_ref,
                        wp_ref, bp_ref,
                        wmlp_ref, bmlp_ref,
                        out_ref):
    """One network (actor or critic) per grid step; all B batch elements, the
    embedder, the transformer stack, the CLS projection and the MLP head fused."""
    scale = 1.0 / float(np.sqrt(HEAD_DIM))

    # Per-head lane-selection masks (constants, hoisted): avoid 8-lane XLU slices.
    lane = lax.broadcasted_iota(jnp.int32, (1, H), 1)
    head_sel = [((lane >= h * HEAD_DIM) & (lane < (h + 1) * HEAD_DIM)).astype(jnp.float32)
                for h in range(NUM_HEADS)]

    w_emb = w_emb_ref[0]      # (INPUT_DIM+1, H)
    b_emb = b_emb_ref[0]      # (1, H)
    wp = wp_ref[0]            # (H, H)
    bp = bp_ref[0]            # (1, H)

    outs = []
    for b in range(B):                                       # unrolled, B=2
        feat = feat_ref[b]                                   # (L+1, INPUT_DIM+1)
        mask = mask_ref[b]                                   # (L+1, L+1) additive mask

        # Embedder (nn.Linear(input_dim, feature_dim)); the augmented last weight row
        # reproduces the prepended all-ones dummy token exactly.
        x = jnp.dot(feat, w_emb, preferred_element_type=jnp.float32) + b_emb   # (L+1, H)

        for l in range(NUM_LAYERS):
            # ---- multi-head attention (nn.MultiheadAttention, batch_first) ----
            # fused QKV: single (L+1,H)@(H,3H) matmul
            qkv = jnp.dot(x, wqkv_ref[0, l], preferred_element_type=jnp.float32) + bqkv_ref[0, l]
            q = qkv[:, 0:H] * scale
            k = qkv[:, H:2 * H]
            v = qkv[:, 2 * H:3 * H]

            attn_cat = jnp.zeros_like(x)                     # concatenated head outputs
            for sel in head_sel:
                # head-h scores via lane-masked full-width contraction:
                #   (q*sel) @ k^T  ==  q_h @ k_h^T   (other heads' lanes contribute 0)
                scores = lax.dot_general(q * sel, k, (((1,), (1,)), ((), ())),
                                         preferred_element_type=jnp.float32) + mask
                p = _softmax_last(scores)                    # (L+1, L+1)
                pv = jnp.dot(p, v, preferred_element_type=jnp.float32)   # (L+1, H)
                attn_cat = attn_cat + pv * sel               # keep only head-h lanes

            # single output projection for all heads
            attn_out = jnp.dot(attn_cat, wo_ref[0, l],
                               preferred_element_type=jnp.float32) + bo_ref[0, l]

            # ---- residual + LayerNorm 1 ----
            x = _layer_norm(x + attn_out, ln1g_ref[0, l], ln1b_ref[0, l])

            # ---- feedforward: Linear(H, H*heads) -> ReLU -> Linear(H*heads, H) ----
            ff = jnp.dot(x, wf1_ref[0, l], preferred_element_type=jnp.float32) + bf1_ref[0, l]
            ff = jnp.maximum(ff, 0.0)
            ff = jnp.dot(ff, wf2_ref[0, l], preferred_element_type=jnp.float32) + bf2_ref[0, l]
            # TODO(synk): nn.Dropout(0.1) is identity in eval mode; training-mode dropout omitted.
            x = _layer_norm(x + ff, ln2g_ref[0, l], ln2b_ref[0, l])

        # ---- CLS / dummy token output + final projection + fused MLP head ----
        h_lat = jnp.dot(x[0:1, :], wp, preferred_element_type=jnp.float32) + bp   # (1, H)
        for m in range(N_MLP):                               # Linear + ReLU (policy/value net)
            h_lat = jnp.dot(h_lat, wmlp_ref[0, m],
                            preferred_element_type=jnp.float32) + bmlp_ref[0, m]
            h_lat = jnp.maximum(h_lat, 0.0)
        outs.append(h_lat)                                   # (1, NET_ARCH[-1])

    out_ref[0] = jnp.concatenate(outs, axis=0)               # (B, NET_ARCH[-1])


# ----------------------------- wrapper -----------------------------------------
def _shared_spec(shape):
    n = len(shape)
    return pl.BlockSpec(tuple(shape), lambda i, _n=n: (0,) * _n)


def _per_net_spec(shape):
    n = len(shape)
    return pl.BlockSpec((1,) + tuple(shape[1:]), lambda i, _n=n: (i,) + (0,) * (_n - 1))


WEIGHT_NAMES = ['w_emb', 'b_emb', 'wqkv', 'bqkv', 'wo', 'bo', 'ln1g', 'ln1b',
                'wf1', 'bf1', 'wf2', 'bf2', 'ln2g', 'ln2b', 'wp', 'bp', 'wmlp', 'bmlp']


def forward_policy(feat_ext, maskf, params):
    """feat_ext: (B, L+1, INPUT_DIM+1); maskf: (B, L+1, L+1) additive float mask.
    Returns (latent_pi, latent_vf), each (B, NET_ARCH[-1])."""
    weights = [params[n] for n in WEIGHT_NAMES]
    in_specs = ([_shared_spec(feat_ext.shape), _shared_spec(maskf.shape)]
                + [_per_net_spec(w.shape) for w in weights])

    out = pl.pallas_call(
        fused_policy_kernel,
        out_shape=jax.ShapeDtypeStruct((2, B, NET_ARCH[-1]), jnp.float32),
        grid=(2,),                                            # 0 = actor (pi), 1 = critic (vf)
        in_specs=in_specs,
        out_specs=pl.BlockSpec((1, B, NET_ARCH[-1]), lambda i: (i, 0, 0)),
        compiler_params=pltpu.CompilerParams(dimension_semantics=("parallel",)),
    )(feat_ext, maskf, *weights)
    return out[0], out[1]


# ----------------------------- parameter init ----------------------------------
def init_transformer_params(key):
    ks = iter(jax.random.split(key, 64))

    def nrm(shape, scale=0.05):
        return (jax.random.normal(next(ks), shape) * scale).astype(jnp.float32)

    w_emb = nrm((INPUT_DIM, H))
    b_emb = nrm((1, H))
    # augmented embedder weight: last input column is the dummy-token indicator,
    # whose embedding must come out exactly all-ones.
    w_emb_ext = jnp.concatenate([w_emb, 1.0 - b_emb], axis=0)          # (INPUT_DIM+1, H)

    wq, wk, wv = nrm((NUM_LAYERS, H, H)), nrm((NUM_LAYERS, H, H)), nrm((NUM_LAYERS, H, H))
    bq, bk, bv = nrm((NUM_LAYERS, 1, H)), nrm((NUM_LAYERS, 1, H)), nrm((NUM_LAYERS, 1, H))

    return {
        'w_emb': w_emb_ext, 'b_emb': b_emb,
        'wqkv': jnp.concatenate([wq, wk, wv], axis=-1),                # (NL, H, 3H)
        'bqkv': jnp.concatenate([bq, bk, bv], axis=-1),                # (NL, 1, 3H)
        'wo': nrm((NUM_LAYERS, H, H)), 'bo': nrm((NUM_LAYERS, 1, H)),
        'ln1g': jnp.ones((NUM_LAYERS, 1, H), jnp.float32),
        'ln1b': jnp.zeros((NUM_LAYERS, 1, H), jnp.float32),
        'wf1': nrm((NUM_LAYERS, H, FF_DIM)), 'bf1': nrm((NUM_LAYERS, 1, FF_DIM)),
        'wf2': nrm((NUM_LAYERS, FF_DIM, H)), 'bf2': nrm((NUM_LAYERS, 1, H)),
        'ln2g': jnp.ones((NUM_LAYERS, 1, H), jnp.float32),
        'ln2b': jnp.zeros((NUM_LAYERS, 1, H), jnp.float32),
        'wp': nrm((H, H)), 'bp': nrm((1, H)),
    }


def init_mlp_params(key, in_dim, dims):
    # NOTE: the stacked layout assumes every MLP layer has the same (in, out) shape,
    # which holds for feature_dim=32 and NET_ARCH=[32, 32].
    ks = iter(jax.random.split(key, 2 * max(len(dims), 1)))
    ws, bs = [], []
    d = in_dim
    for o in dims:
        ws.append((jax.random.normal(next(ks), (d, o)) * 0.05).astype(jnp.float32))
        bs.append((jax.random.normal(next(ks), (1, o)) * 0.05).astype(jnp.float32))
        d = o
    return jnp.stack(ws), jnp.stack(bs)            # (N_MLP, in, out), (N_MLP, 1, out)


def init_stacked_params(key):
    k_pi, k_v, k_pnet, k_vnet = jax.random.split(key, 4)
    tp = init_transformer_params(k_pi)             # transformer_pi
    tv = init_transformer_params(k_v)              # transformer_v
    stacked = {name: jnp.stack([tp[name], tv[name]], axis=0) for name in tp}
    wmp, bmp = init_mlp_params(k_pnet, H, NET_ARCH)            # policy_net
    wmv, bmv = init_mlp_params(k_vnet, H, NET_ARCH)            # value_net (Flatten is a no-op)
    stacked['wmlp'] = jnp.stack([wmp, wmv], axis=0)            # (2, N_MLP, 32, 32)
    stacked['bmlp'] = jnp.stack([bmp, bmv], axis=0)            # (2, N_MLP, 1, 32)
    return stacked


# ----------------------------- host-side glue -----------------------------------
def process_obs(obs_np):
    """Replicates CustomTransformerPolicy.process_obs ('custom' setting), vectorized."""
    flag = obs_np[:, :, -1] == -1.0                            # (B, S)
    has_end = flag.any(axis=1)
    first = flag.argmax(axis=1)
    lengths = np.where(has_end, first, MAX_SEQ)
    L = int(lengths.max())                                     # pad_sequence length
    valid = np.arange(L)[None, :] < lengths[:, None]           # (B, L)
    feats = np.where(valid[:, :, None], obs_np[:, :L, :-1], 0.0).astype(np.float32)
    pad_mask = ~valid                                          # True at padded positions
    return feats, pad_mask


def build_attention_mask(pad_mask):
    """Replicates the mask construction inside TransformerWithMaskedAttention_cls."""
    Bn = pad_mask.shape[0]
    m = np.concatenate([np.ones((Bn, 1), bool), pad_mask], axis=1)   # (B, L+1)
    m2 = m[:, :, None] | m[:, None, :]                               # (B, L+1, L+1)
    maskf = np.where(m2, NEG_INF, 0.0).astype(np.float32)
    maskf[:, :, 0] = 0.0          # everyone may attend to the dummy token
    return maskf                  # per-head repeat_interleave not needed (same per head)


def build_feat_ext(feats):
    Bn, L, _ = feats.shape
    feat_ext = np.zeros((Bn, L + 1, INPUT_DIM + 1), np.float32)
    feat_ext[:, 0, INPUT_DIM] = 1.0        # dummy-token indicator column
    feat_ext[:, 1:, :INPUT_DIM] = feats
    return feat_ext


# ----------------------------- main ----------------------------------------------
if __name__ == "__main__":
    key = jax.random.PRNGKey(0)
    k_obs, k_params = jax.random.split(key, 2)

    # observations: (B, max_seq, input_dim + 1); last column == -1 marks sequence end.
    obs = jax.random.normal(k_obs, (B, MAX_SEQ, INPUT_DIM + 1), dtype=jnp.float32)
    obs = obs.at[:, :, -1].set(0.0)
    obs = obs.at[0, 6, -1].set(-1.0)       # sample 0 has length 6, sample 1 has length 8
    obs_np = np.asarray(obs)

    feats, pad_mask = process_obs(obs_np)
    maskf = jnp.asarray(build_attention_mask(pad_mask))
    feat_ext = jnp.asarray(build_feat_ext(feats))

    params = init_stacked_params(k_params)

    # fused forward: (forward_actor, forward_critic) in a single pallas_call
    latent_pi, latent_vf = forward_policy(feat_ext, maskf, params)
    latent_pi = jax.block_until_ready(latent_pi)
    latent_vf = jax.block_until_ready(latent_vf)

    assert latent_pi.shape == (B, NET_ARCH[-1])
    assert latent_vf.shape == (B, NET_ARCH[-1])
    assert bool(jnp.all(jnp.isfinite(latent_pi))) and bool(jnp.all(jnp.isfinite(latent_vf)))

    print("KERNEL_OK")
</pallas_src>

<mosaic_0001>
module attributes {stable_mosaic.version = 11 : i64} {
  func.func @fused_policy_kernel(%arg0: i32, %arg1: memref<2x9x17xf32, #tpu.memory_space<vmem>>, %arg2: memref<2x9x9xf32, #tpu.memory_space<vmem>>, %arg3: memref<1x17x32xf32, #tpu.memory_space<vmem>>, %arg4: memref<1x1x32xf32, #tpu.memory_space<vmem>>, %arg5: memref<1x2x32x96xf32, #tpu.memory_space<vmem>>, %arg6: memref<1x2x1x96xf32, #tpu.memory_space<vmem>>, %arg7: memref<1x2x32x32xf32, #tpu.memory_space<vmem>>, %arg8: memref<1x2x1x32xf32, #tpu.memory_space<vmem>>, %arg9: memref<1x2x1x32xf32, #tpu.memory_space<vmem>>, %arg10: memref<1x2x1x32xf32, #tpu.memory_space<vmem>>, %arg11: memref<1x2x32x128xf32, #tpu.memory_space<vmem>>, %arg12: memref<1x2x1x128xf32, #tpu.memory_space<vmem>>, %arg13: memref<1x2x128x32xf32, #tpu.memory_space<vmem>>, %arg14: memref<1x2x1x32xf32, #tpu.memory_space<vmem>>, %arg15: memref<1x2x1x32xf32, #tpu.memory_space<vmem>>, %arg16: memref<1x2x1x32xf32, #tpu.memory_space<vmem>>, %arg17: memref<1x32x32xf32, #tpu.memory_space<vmem>>, %arg18: memref<1x1x32xf32, #tpu.memory_space<vmem>>, %arg19: memref<1x2x32x32xf32, #tpu.memory_space<vmem>>, %arg20: memref<1x2x1x32xf32, #tpu.memory_space<vmem>>, %arg21: memref<1x2x32xf32, #tpu.memory_space<vmem>>) attributes {dimension_semantics = [#tpu.dimension_semantics<parallel>], iteration_bounds = array<i64: 2>, scalar_prefetch = 0 : i64, scratch_operands = 0 : i64, tpu.core_type = #tpu.core_type<tc>, window_params = [{pipeline_mode = #tpu.pipeline_mode<synchronous>, transform_indices = @transform_0, window_bounds = array<i64: 2, 9, 17>}, {pipeline_mode = #tpu.pipeline_mode<synchronous>, transform_indices = @transform_1, window_bounds = array<i64: 2, 9, 9>}, {transform_indices = @transform_2, window_bounds = array<i64: 1, 17, 32>}, {transform_indices = @transform_3, window_bounds = array<i64: 1, 1, 32>}, {transform_indices = @transform_4, window_bounds = array<i64: 1, 2, 32, 96>}, {transform_indices = @transform_5, window_bounds = array<i64: 1, 2, 1, 96>}, {transform_indices = @transform_6, window_bounds = array<i64: 1, 2, 32, 32>}, {transform_indices = @transform_7, window_bounds = array<i64: 1, 2, 1, 32>}, {transform_indices = @transform_8, window_bounds = array<i64: 1, 2, 1, 32>}, {transform_indices = @transform_9, window_bounds = array<i64: 1, 2, 1, 32>}, {transform_indices = @transform_10, window_bounds = array<i64: 1, 2, 32, 128>}, {transform_indices = @transform_11, window_bounds = array<i64: 1, 2, 1, 128>}, {transform_indices = @transform_12, window_bounds = array<i64: 1, 2, 128, 32>}, {transform_indices = @transform_13, window_bounds = array<i64: 1, 2, 1, 32>}, {transform_indices = @transform_14, window_bounds = array<i64: 1, 2, 1, 32>}, {transform_indices = @transform_15, window_bounds = array<i64: 1, 2, 1, 32>}, {transform_indices = @transform_16, window_bounds = array<i64: 1, 32, 32>}, {transform_indices = @transform_17, window_bounds = array<i64: 1, 1, 32>}, {transform_indices = @transform_18, window_bounds = array<i64: 1, 2, 32, 32>}, {transform_indices = @transform_19, window_bounds = array<i64: 1, 2, 1, 32>}, {transform_indices = @transform_20, window_bounds = array<i64: 1, 2, 32>}]} {
    %0 = tpu.iota {dimensions = array<i32: 1>} : vector<1x32xi32>
    %c0_i32 = arith.constant 0 : i32
    %1 = vector.broadcast %c0_i32 : i32 to vector<1x32xi32>
    %2 = arith.cmpi sge, %0, %1 : vector<1x32xi32>
    %c8_i32 = arith.constant 8 : i32
    %3 = vector.broadcast %c8_i32 : i32 to vector<1x32xi32>
    %4 = arith.cmpi slt, %0, %3 : vector<1x32xi32>
    %5 = arith.andi %2, %4 : vector<1x32xi1>
    %6 = arith.extui %5 : vector<1x32xi1> to vector<1x32xi32>
    %7 = arith.sitofp %6 : vector<1x32xi32> to vector<1x32xf32>
    %c8_i32_0 = arith.constant 8 : i32
    %8 = vector.broadcast %c8_i32_0 : i32 to vector<1x32xi32>
    %9 = arith.cmpi sge, %0, %8 : vector<1x32xi32>
    %c16_i32 = arith.constant 16 : i32
    %10 = vector.broadcast %c16_i32 : i32 to vector<1x32xi32>
    %11 = arith.cmpi slt, %0, %10 : vector<1x32xi32>
    %12 = arith.andi %9, %11 : vector<1x32xi1>
    %13 = arith.extui %12 : vector<1x32xi1> to vector<1x32xi32>
    %14 = arith.sitofp %13 : vector<1x32xi32> to vector<1x32xf32>
    %c16_i32_1 = arith.constant 16 : i32
    %15 = vector.broadcast %c16_i32_1 : i32 to vector<1x32xi32>
    %16 = arith.cmpi sge, %0, %15 : vector<1x32xi32>
    %c24_i32 = arith.constant 24 : i32
    %17 = vector.broadcast %c24_i32 : i32 to vector<1x32xi32>
    %18 = arith.cmpi slt, %0, %17 : vector<1x32xi32>
    %19 = arith.andi %16, %18 : vector<1x32xi1>
    %20 = arith.extui %19 : vector<1x32xi1> to vector<1x32xi32>
    %21 = arith.sitofp %20 : vector<1x32xi32> to vector<1x32xf32>
    %c24_i32_2 = arith.constant 24 : i32
    %22 = vector.broadcast %c24_i32_2 : i32 to vector<1x32xi32>
    %23 = arith.cmpi sge, %0, %22 : vector<1x32xi32>
    %c32_i32 = arith.constant 32 : i32
    %24 = vector.broadcast %c32_i32 : i32 to vector<1x32xi32>
    %25 = arith.cmpi slt, %0, %24 : vector<1x32xi32>
    %26 = arith.andi %23, %25 : vector<1x32xi1>
    %27 = arith.extui %26 : vector<1x32xi1> to vector<1x32xi32>
    %28 = arith.sitofp %27 : vector<1x32xi32> to vector<1x32xf32>
    %c0 = arith.constant 0 : index
    %c0_3 = arith.constant 0 : index
    %c0_4 = arith.constant 0 : index
    %29 = vector.load %arg3[%c0, %c0_3, %c0_4] : memref<1x17x32xf32, #tpu.memory_space<vmem>>, vector<1x17x32xf32>
    %30 = vector.shape_cast %29 : vector<1x17x32xf32> to vector<17x32xf32>
    %c0_5 = arith.constant 0 : index
    %c0_6 = arith.constant 0 : index
    %c0_7 = arith.constant 0 : index
    %31 = vector.load %arg4[%c0_5, %c0_6, %c0_7] : memref<1x1x32xf32, #tpu.memory_space<vmem>>, vector<1x1x32xf32>
    %32 = vector.shape_cast %31 : vector<1x1x32xf32> to vector<1x32xf32>
    %c0_8 = arith.constant 0 : index
    %c0_9 = arith.constant 0 : index
    %c0_10 = arith.constant 0 : index
    %33 = vector.load %arg17[%c0_8, %c0_9, %c0_10] : memref<1x32x32xf32, #tpu.memory_space<vmem>>, vector<1x32x32xf32>
    %34 = vector.shape_cast %33 : vector<1x32x32xf32> to vector<32x32xf32>
    %c0_11 = arith.constant 0 : index
    %c0_12 = arith.constant 0 : index
    %c0_13 = arith.constant 0 : index
    %35 = vector.load %arg18[%c0_11, %c0_12, %c0_13] : memref<1x1x32xf32, #tpu.memory_space<vmem>>, vector<1x1x32xf32>
    %36 = vector.shape_cast %35 : vector<1x1x32xf32> to vector<1x32xf32>
    %c0_14 = arith.constant 0 : index
    %c0_15 = arith.constant 0 : index
    %c0_16 = arith.constant 0 : index
    %37 = vector.load %arg1[%c0_14, %c0_15, %c0_16] : memref<2x9x17xf32, #tpu.memory_space<vmem>>, vector<1x9x17xf32>
    %38 = vector.shape_cast %37 : vector<1x9x17xf32> to vector<9x17xf32>
    %c0_17 = arith.constant 0 : index
    %c0_18 = arith.constant 0 : index
    %c0_19 = arith.constant 0 : index
    %39 = vector.load %arg2[%c0_17, %c0_18, %c0_19] : memref<2x9x9xf32, #tpu.memory_space<vmem>>, vector<1x9x9xf32>
    %40 = vector.shape_cast %39 : vector<1x9x9xf32> to vector<9x9xf32>
    %cst = arith.constant dense<0.000000e+00> : vector<9x32xf32>
    %41 = tpu.matmul %38, %30, %cst {dimension_numbers = #tpu.dot_dimension_numbers<[1], [0], [0], [1], [0, 0, 1, 1], [], []>} : vector<9x17xf32>, vector<17x32xf32>, vector<9x32xf32> -> vector<9x32xf32>
    %42 = vector.broadcast %32 : vector<1x32xf32> to vector<9x32xf32>
    %43 = arith.addf %41, %42 : vector<9x32xf32>
    %c0_20 = arith.constant 0 : index
    %c0_21 = arith.constant 0 : index
    %c0_22 = arith.constant 0 : index
    %c0_23 = arith.constant 0 : index
    %44 = vector.load %arg5[%c0_20, %c0_21, %c0_22, %c0_23] : memref<1x2x32x96xf32, #tpu.memory_space<vmem>>, vector<1x1x32x96xf32>
    %45 = vector.shape_cast %44 : vector<1x1x32x96xf32> to vector<32x96xf32>
    %cst_24 = arith.constant dense<0.000000e+00> : vector<9x96xf32>
    %46 = tpu.matmul %43, %45, %cst_24 {dimension_numbers = #tpu.dot_dimension_numbers<[1], [0], [0], [1], [0, 0, 1, 1], [], []>} : vector<9x32xf32>, vector<32x96xf32>, vector<9x96xf32> -> vector<9x96xf32>
    %c0_25 = arith.constant 0 : index
    %c0_26 = arith.constant 0 : index
    %c0_27 = arith.constant 0 : index
    %c0_28 = arith.constant 0 : index
    %47 = vector.load %arg6[%c0_25, %c0_26, %c0_27, %c0_28] : memref<1x2x1x96xf32, #tpu.memory_space<vmem>>, vector<1x1x1x96xf32>
    %48 = vector.shape_cast %47 : vector<1x1x1x96xf32> to vector<1x96xf32>
    %49 = vector.broadcast %48 : vector<1x96xf32> to vector<9x96xf32>
    %50 = arith.addf %46, %49 : vector<9x96xf32>
    %51 = vector.extract_strided_slice %50 {offsets = [0, 0], sizes = [9, 32], strides = [1, 1]} : vector<9x96xf32> to vector<9x32xf32>
    %cst_29 = arith.constant 0.353553385 : f32
    %52 = vector.broadcast %cst_29 : f32 to vector<9x32xf32>
    %53 = arith.mulf %51, %52 : vector<9x32xf32>
    %54 = vector.extract_strided_slice %50 {offsets = [0, 32], sizes = [9, 32], strides = [1, 1]} : vector<9x96xf32> to vector<9x32xf32>
    %55 = vector.extract_strided_slice %50 {offsets = [0, 64], sizes = [9, 32], strides = [1, 1]} : vector<9x96xf32> to vector<9x32xf32>
    %cst_30 = arith.constant 0.000000e+00 : f32
    %56 = vector.broadcast %cst_30 : f32 to vector<9x32xf32>
    %57 = vector.broadcast %7 : vector<1x32xf32> to vector<9x32xf32>
    %58 = arith.mulf %53, %57 : vector<9x32xf32>
    %cst_31 = arith.constant dense<0.000000e+00> : vector<9x9xf32>
    %59 = tpu.matmul %58, %54, %cst_31 {dimension_numbers = #tpu.dot_dimension_numbers<[1], [1], [0], [0], [0, 0, 1, 0], [], []>} : vector<9x32xf32>, vector<9x32xf32>, vector<9x9xf32> -> vector<9x9xf32>
    %60 = arith.addf %59, %40 : vector<9x9xf32>
    %cst_32 = arith.constant dense<0xFF800000> : vector<9xf32>
    %61 = vector.multi_reduction <maximumf>, %60, %cst_32 [1] : vector<9x9xf32> to vector<9xf32>
    %62 = vector.shape_cast %61 : vector<9xf32> to vector<9x1xf32>
    %63 = vector.broadcast %62 : vector<9x1xf32> to vector<9x9xf32>
    %64 = arith.subf %60, %63 : vector<9x9xf32>
    %65 = math.exp %64 : vector<9x9xf32>
    %cst_33 = arith.constant dense<0.000000e+00> : vector<9xf32>
    %66 = vector.multi_reduction <add>, %65, %cst_33 [1] : vector<9x9xf32> to vector<9xf32>
    %67 = vector.shape_cast %66 : vector<9xf32> to vector<9x1xf32>
    %68 = tpu.reciprocal %67 : vector<9x1xf32> -> vector<9x1xf32>
    %69 = vector.broadcast %68 : vector<9x1xf32> to vector<9x9xf32>
    %70 = arith.mulf %65, %69 : vector<9x9xf32>
    %cst_34 = arith.constant dense<0.000000e+00> : vector<9x32xf32>
    %71 = tpu.matmul %70, %55, %cst_34 {dimension_numbers = #tpu.dot_dimension_numbers<[1], [0], [0], [1], [0, 0, 1, 1], [], []>} : vector<9x9xf32>, vector<9x32xf32>, vector<9x32xf32> -> vector<9x32xf32>
    %72 = vector.broadcast %7 : vector<1x32xf32> to vector<9x32xf32>
    %73 = arith.mulf %71, %72 : vector<9x32xf32>
    %74 = arith.addf %56, %73 : vector<9x32xf32>
    %75 = vector.broadcast %14 : vector<1x32xf32> to vector<9x32xf32>
    %76 = arith.mulf %53, %75 : vector<9x32xf32>
    %cst_35 = arith.constant dense<0.000000e+00> : vector<9x9xf32>
    %77 = tpu.matmul %76, %54, %cst_35 {dimension_numbers = #tpu.dot_dimension_numbers<[1], [1], [0], [0], [0, 0, 1, 0], [], []>} : vector<9x32xf32>, vector<9x32xf32>, vector<9x9xf32> -> vector<9x9xf32>
    %78 = arith.addf %77, %40 : vector<9x9xf32>
    %cst_36 = arith.constant dense<0xFF800000> : vector<9xf32>
    %79 = vector.multi_reduction <maximumf>, %78, %cst_36 [1] : vector<9x9xf32> to vector<9xf32>
    %80 = vector.shape_cast %79 : vector<9xf32> to vector<9x1xf32>
    %81 = vector.broadcast %80 : vector<9x1xf32> to vector<9x9xf32>
    %82 = arith.subf %78, %81 : vector<9x9xf32>
    %83 = math.exp %82 : vector<9x9xf32>
    %cst_37 = arith.constant dense<0.000000e+00> : vector<9xf32>
    %84 = vector.multi_reduction <add>, %83, %cst_37 [1] : vector<9x9xf32> to vector<9xf32>
    %85 = vector.shape_cast %84 : vector<9xf32> to vector<9x1xf32>
    %86 = tpu.reciprocal %85 : vector<9x1xf32> -> vector<9x1xf32>
    %87 = vector.broadcast %86 : vector<9x1xf32> to vector<9x9xf32>
    %88 = arith.mulf %83, %87 : vector<9x9xf32>
    %cst_38 = arith.constant dense<0.000000e+00> : vector<9x32xf32>
    %89 = tpu.matmul %88, %55, %cst_38 {dimension_numbers = #tpu.dot_dimension_numbers<[1], [0], [0], [1], [0, 0, 1, 1], [], []>} : vector<9x9xf32>, vector<9x32xf32>, vector<9x32xf32> -> vector<9x32xf32>
    %90 = vector.broadcast %14 : vector<1x32xf32> to vector<9x32xf32>
    %91 = arith.mulf %89, %90 : vector<9x32xf32>
    %92 = arith.addf %74, %91 : vector<9x32xf32>
    %93 = vector.broadcast %21 : vector<1x32xf32> to vector<9x32xf32>
    %94 = arith.mulf %53, %93 : vector<9x32xf32>
    %cst_39 = arith.constant dense<0.000000e+00> : vector<9x9xf32>
    %95 = tpu.matmul %94, %54, %cst_39 {dimension_numbers = #tpu.dot_dimension_numbers<[1], [1], [0], [0], [0, 0, 1, 0], [], []>} : vector<9x32xf32>, vector<9x32xf32>, vector<9x9xf32> -> vector<9x9xf32>
    %96 = arith.addf %95, %40 : vector<9x9xf32>
    %cst_40 = arith.constant dense<0xFF800000> : vector<9xf32>
    %97 = vector.multi_reduction <maximumf>, %96, %cst_40 [1] : vector<9x9xf32> to vector<9xf32>
    %98 = vector.shape_cast %97 : vector<9xf32> to vector<9x1xf32>
    %99 = vector.broadcast %98 : vector<9x1xf32> to vector<9x9xf32>
    %100 = arith.subf %96, %99 : vector<9x9xf32>
    %101 = math.exp %100 : vector<9x9xf32>
    %cst_41 = arith.constant dense<0.000000e+00> : vector<9xf32>
    %102 = vector.multi_reduction <add>, %101, %cst_41 [1] : vector<9x9xf32> to vector<9xf32>
    %103 = vector.shape_cast %102 : vector<9xf32> to vector<9x1xf32>
    %104 = tpu.reciprocal %103 : vector<9x1xf32> -> vector<9x1xf32>
    %105 = vector.broadcast %104 : vector<9x1xf32> to vector<9x9xf32>
    %106 = arith.mulf %101, %105 : vector<9x9xf32>
    %cst_42 = arith.constant dense<0.000000e+00> : vector<9x32xf32>
    %107 = tpu.matmul %106, %55, %cst_42 {dimension_numbers = #tpu.dot_dimension_numbers<[1], [0], [0], [1], [0, 0, 1, 1], [], []>} : vector<9x9xf32>, vector<9x32xf32>, vector<9x32xf32> -> vector<9x32xf32>
    %108 = vector.broadcast %21 : vector<1x32xf32> to vector<9x32xf32>
    %109 = arith.mulf %107, %108 : vector<9x32xf32>
    %110 = arith.addf %92, %109 : vector<9x32xf32>
    %111 = vector.broadcast %28 : vector<1x32xf32> to vector<9x32xf32>
    %112 = arith.mulf %53, %111 : vector<9x32xf32>
    %cst_43 = arith.constant dense<0.000000e+00> : vector<9x9xf32>
    %113 = tpu.matmul %112, %54, %cst_43 {dimension_numbers = #tpu.dot_dimension_numbers<[1], [1], [0], [0], [0, 0, 1, 0], [], []>} : vector<9x32xf32>, vector<9x32xf32>, vector<9x9xf32> -> vector<9x9xf32>
    %114 = arith.addf %113, %40 : vector<9x9xf32>
    %cst_44 = arith.constant dense<0xFF800000> : vector<9xf32>
    %115 = vector.multi_reduction <maximumf>, %114, %cst_44 [1] : vector<9x9xf32> to vector<9xf32>
    %116 = vector.shape_cast %115 : vector<9xf32> to vector<9x1xf32>
    %117 = vector.broadcast %116 : vector<9x1xf32> to vector<9x9xf32>
    %118 = arith.subf %114, %117 : vector<9x9xf32>
    %119 = math.exp %118 : vector<9x9xf32>
    %cst_45 = arith.constant dense<0.000000e+00> : vector<9xf32>
    %120 = vector.multi_reduction <add>, %119, %cst_45 [1] : vector<9x9xf32> to vector<9xf32>
    %121 = vector.shape_cast %120 : vector<9xf32> to vector<9x1xf32>
    %122 = tpu.reciprocal %121 : vector<9x1xf32> -> vector<9x1xf32>
    %123 = vector.broadcast %122 : vector<9x1xf32> to vector<9x9xf32>
    %124 = arith.mulf %119, %123 : vector<9x9xf32>
    %cst_46 = arith.constant dense<0.000000e+00> : vector<9x32xf32>
    %125 = tpu.matmul %124, %55, %cst_46 {dimension_numbers = #tpu.dot_dimension_numbers<[1], [0], [0], [1], [0, 0, 1, 1], [], []>} : vector<9x9xf32>, vector<9x32xf32>, vector<9x32xf32> -> vector<9x32xf32>
    %126 = vector.broadcast %28 : vector<1x32xf32> to vector<9x32xf32>
    %127 = arith.mulf %125, %126 : vector<9x32xf32>
    %128 = arith.addf %110, %127 : vector<9x32xf32>
    %c0_47 = arith.constant 0 : index
    %c0_48 = arith.constant 0 : index
    %c0_49 = arith.constant 0 : index
    %c0_50 = arith.constant 0 : index
    %129 = vector.load %arg7[%c0_47, %c0_48, %c0_49, %c0_50] : memref<1x2x32x32xf32, #tpu.memory_space<vmem>>, vector<1x1x32x32xf32>
    %130 = vector.shape_cast %129 : vector<1x1x32x32xf32> to vector<32x32xf32>
    %cst_51 = arith.constant dense<0.000000e+00> : vector<9x32xf32>
    %131 = tpu.matmul %128, %130, %cst_51 {dimension_numbers = #tpu.dot_dimension_numbers<[1], [0], [0], [1], [0, 0, 1, 1], [], []>} : vector<9x32xf32>, vector<32x32xf32>, vector<9x32xf32> -> vector<9x32xf32>
    %c0_52 = arith.constant 0 : index
    %c0_53 = arith.constant 0 : index
    %c0_54 = arith.constant 0 : index
    %c0_55 = arith.constant 0 : index
    %132 = vector.load %arg8[%c0_52, %c0_53, %c0_54, %c0_55] : memref<1x2x1x32xf32, #tpu.memory_space<vmem>>, vector<1x1x1x32xf32>
    %133 = vector.shape_cast %132 : vector<1x1x1x32xf32> to vector<1x32xf32>
    %134 = vector.broadcast %133 : vector<1x32xf32> to vector<9x32xf32>
    %135 = arith.addf %131, %134 : vector<9x32xf32>
    %136 = arith.addf %43, %135 : vector<9x32xf32>
    %c0_56 = arith.constant 0 : index
    %c0_57 = arith.constant 0 : index
    %c0_58 = arith.constant 0 : index
    %c0_59 = arith.constant 0 : index
    %137 = vector.load %arg9[%c0_56, %c0_57, %c0_58, %c0_59] : memref<1x2x1x32xf32, #tpu.memory_space<vmem>>, vector<1x1x1x32xf32>
    %138 = vector.shape_cast %137 : vector<1x1x1x32xf32> to vector<1x32xf32>
    %c0_60 = arith.constant 0 : index
    %c0_61 = arith.constant 0 : index
    %c0_62 = arith.constant 0 : index
    %c0_63 = arith.constant 0 : index
    %139 = vector.load %arg10[%c0_60, %c0_61, %c0_62, %c0_63] : memref<1x2x1x32xf32, #tpu.memory_space<vmem>>, vector<1x1x1x32xf32>
    %140 = vector.shape_cast %139 : vector<1x1x1x32xf32> to vector<1x32xf32>
    %cst_64 = arith.constant dense<0.000000e+00> : vector<9xf32>
    %141 = vector.multi_reduction <add>, %136, %cst_64 [1] : vector<9x32xf32> to vector<9xf32>
    %142 = vector.shape_cast %141 : vector<9xf32> to vector<9x1xf32>
    %cst_65 = arith.constant 3.200000e+01 : f32
    %143 = vector.broadcast %cst_65 : f32 to vector<9x1xf32>
    %144 = arith.divf %142, %143 : vector<9x1xf32>
    %145 = vector.broadcast %144 : vector<9x1xf32> to vector<9x32xf32>
    %146 = arith.subf %136, %145 : vector<9x32xf32>
    %147 = arith.mulf %146, %146 : vector<9x32xf32>
    %cst_66 = arith.constant dense<0.000000e+00> : vector<9xf32>
    %148 = vector.multi_reduction <add>, %147, %cst_66 [1] : vector<9x32xf32> to vector<9xf32>
    %149 = vector.shape_cast %148 : vector<9xf32> to vector<9x1xf32>
    %cst_67 = arith.constant 3.200000e+01 : f32
    %150 = vector.broadcast %cst_67 : f32 to vector<9x1xf32>
    %151 = arith.divf %149, %150 : vector<9x1xf32>
    %152 = vector.broadcast %144 : vector<9x1xf32> to vector<9x32xf32>
    %153 = arith.subf %136, %152 : vector<9x32xf32>
    %cst_68 = arith.constant 9.99999974E-6 : f32
    %154 = vector.broadcast %cst_68 : f32 to vector<9x1xf32>
    %155 = arith.addf %151, %154 : vector<9x1xf32>
    %156 = math.rsqrt %155 : vector<9x1xf32>
    %157 = vector.broadcast %156 : vector<9x1xf32> to vector<9x32xf32>
    %158 = arith.mulf %153, %157 : vector<9x32xf32>
    %159 = vector.broadcast %138 : vector<1x32xf32> to vector<9x32xf32>
    %160 = arith.mulf %158, %159 : vector<9x32xf32>
    %161 = vector.broadcast %140 : vector<1x32xf32> to vector<9x32xf32>
    %162 = arith.addf %160, %161 : vector<9x32xf32>
    %c0_69 = arith.constant 0 : index
    %c0_70 = arith.constant 0 : index
    %c0_71 = arith.constant 0 : index
    %c0_72 = arith.constant 0 : index
    %163 = vector.load %arg11[%c0_69, %c0_70, %c0_71, %c0_72] : memref<1x2x32x128xf32, #tpu.memory_space<vmem>>, vector<1x1x32x128xf32>
    %164 = vector.shape_cast %163 : vector<1x1x32x128xf32> to vector<32x128xf32>
    %cst_73 = arith.constant dense<0.000000e+00> : vector<9x128xf32>
    %165 = tpu.matmul %162, %164, %cst_73 {dimension_numbers = #tpu.dot_dimension_numbers<[1], [0], [0], [1], [0, 0, 1, 1], [], []>} : vector<9x32xf32>, vector<32x128xf32>, vector<9x128xf32> -> vector<9x128xf32>
    %c0_74 = arith.constant 0 : index
    %c0_75 = arith.constant 0 : index
    %c0_76 = arith.constant 0 : index
    %c0_77 = arith.constant 0 : index
    %166 = vector.load %arg12[%c0_74, %c0_75, %c0_76, %c0_77] : memref<1x2x1x128xf32, #tpu.memory_space<vmem>>, vector<1x1x1x128xf32>
    %167 = vector.shape_cast %166 : vector<1x1x1x128xf32> to vector<1x128xf32>
    %168 = vector.broadcast %167 : vector<1x128xf32> to vector<9x128xf32>
    %169 = arith.addf %165, %168 : vector<9x128xf32>
    %cst_78 = arith.constant 0.000000e+00 : f32
    %170 = vector.broadcast %cst_78 : f32 to vector<9x128xf32>
    %171 = arith.maximumf %169, %170 : vector<9x128xf32>
    %c0_79 = arith.constant 0 : index
    %c0_80 = arith.constant 0 : index
    %c0_81 = arith.constant 0 : index
    %c0_82 = arith.constant 0 : index
    %172 = vector.load %arg13[%c0_79, %c0_80, %c0_81, %c0_82] : memref<1x2x128x32xf32, #tpu.memory_space<vmem>>, vector<1x1x128x32xf32>
    %173 = vector.shape_cast %172 : vector<1x1x128x32xf32> to vector<128x32xf32>
    %cst_83 = arith.constant dense<0.000000e+00> : vector<9x32xf32>
    %174 = tpu.matmul %171, %173, %cst_83 {dimension_numbers = #tpu.dot_dimension_numbers<[1], [0], [0], [1], [0, 0, 1, 1], [], []>} : vector<9x128xf32>, vector<128x32xf32>, vector<9x32xf32> -> vector<9x32xf32>
    %c0_84 = arith.constant 0 : index
    %c0_85 = arith.constant 0 : index
    %c0_86 = arith.constant 0 : index
    %c0_87 = arith.constant 0 : index
    %175 = vector.load %arg14[%c0_84, %c0_85, %c0_86, %c0_87] : memref<1x2x1x32xf32, #tpu.memory_space<vmem>>, vector<1x1x1x32xf32>
    %176 = vector.shape_cast %175 : vector<1x1x1x32xf32> to vector<1x32xf32>
    %177 = vector.broadcast %176 : vector<1x32xf32> to vector<9x32xf32>
    %178 = arith.addf %174, %177 : vector<9x32xf32>
    %179 = arith.addf %162, %178 : vector<9x32xf32>
    %c0_88 = arith.constant 0 : index
    %c0_89 = arith.constant 0 : index
    %c0_90 = arith.constant 0 : index
    %c0_91 = arith.constant 0 : index
    %180 = vector.load %arg15[%c0_88, %c0_89, %c0_90, %c0_91] : memref<1x2x1x32xf32, #tpu.memory_space<vmem>>, vector<1x1x1x32xf32>
    %181 = vector.shape_cast %180 : vector<1x1x1x32xf32> to vector<1x32xf32>
    %c0_92 = arith.constant 0 : index
    %c0_93 = arith.constant 0 : index
    %c0_94 = arith.constant 0 : index
    %c0_95 = arith.constant 0 : index
    %182 = vector.load %arg16[%c0_92, %c0_93, %c0_94, %c0_95] : memref<1x2x1x32xf32, #tpu.memory_space<vmem>>, vector<1x1x1x32xf32>
    %183 = vector.shape_cast %182 : vector<1x1x1x32xf32> to vector<1x32xf32>
    %cst_96 = arith.constant dense<0.000000e+00> : vector<9xf32>
    %184 = vector.multi_reduction <add>, %179, %cst_96 [1] : vector<9x32xf32> to vector<9xf32>
    %185 = vector.shape_cast %184 : vector<9xf32> to vector<9x1xf32>
    %cst_97 = arith.constant 3.200000e+01 : f32
    %186 = vector.broadcast %cst_97 : f32 to vector<9x1xf32>
    %187 = arith.divf %185, %186 : vector<9x1xf32>
    %188 = vector.broadcast %187 : vector<9x1xf32> to vector<9x32xf32>
    %189 = arith.subf %179, %188 : vector<9x32xf32>
    %190 = arith.mulf %189, %189 : vector<9x32xf32>
    %cst_98 = arith.constant dense<0.000000e+00> : vector<9xf32>
    %191 = vector.multi_reduction <add>, %190, %cst_98 [1] : vector<9x32xf32> to vector<9xf32>
    %192 = vector.shape_cast %191 : vector<9xf32> to vector<9x1xf32>
    %cst_99 = arith.constant 3.200000e+01 : f32
    %193 = vector.broadcast %cst_99 : f32 to vector<9x1xf32>
    %194 = arith.divf %192, %193 : vector<9x1xf32>
    %195 = vector.broadcast %187 : vector<9x1xf32> to vector<9x32xf32>
    %196 = arith.subf %179, %195 : vector<9x32xf32>
    %cst_100 = arith.constant 9.99999974E-6 : f32
    %197 = vector.broadcast %cst_100 : f32 to vector<9x1xf32>
    %198 = arith.addf %194, %197 : vector<9x1xf32>
    %199 = math.rsqrt %198 : vector<9x1xf32>
    %200 = vector.broadcast %199 : vector<9x1xf32> to vector<9x32xf32>
    %201 = arith.mulf %196, %200 : vector<9x32xf32>
    %202 = vector.broadcast %181 : vector<1x32xf32> to vector<9x32xf32>
    %203 = arith.mulf %201, %202 : vector<9x32xf32>
    %204 = vector.broadcast %183 : vector<1x32xf32> to vector<9x32xf32>
    %205 = arith.addf %203, %204 : vector<9x32xf32>
    %c0_101 = arith.constant 0 : index
    %c1 = arith.constant 1 : index
    %c0_102 = arith.constant 0 : index
    %c0_103 = arith.constant 0 : index
    %206 = vector.load %arg5[%c0_101, %c1, %c0_102, %c0_103] : memref<1x2x32x96xf32, #tpu.memory_space<vmem>>, vector<1x1x32x96xf32>
    %207 = vector.shape_cast %206 : vector<1x1x32x96xf32> to vector<32x96xf32>
    %cst_104 = arith.constant dense<0.000000e+00> : vector<9x96xf32>
    %208 = tpu.matmul %205, %207, %cst_104 {dimension_numbers = #tpu.dot_dimension_numbers<[1], [0], [0], [1], [0, 0, 1, 1], [], []>} : vector<9x32xf32>, vector<32x96xf32>, vector<9x96xf32> -> vector<9x96xf32>
    %c0_105 = arith.constant 0 : index
    %c1_106 = arith.constant 1 : index
    %c0_107 = arith.constant 0 : index
    %c0_108 = arith.constant 0 : index
    %209 = vector.load %arg6[%c0_105, %c1_106, %c0_107, %c0_108] : memref<1x2x1x96xf32, #tpu.memory_space<vmem>>, vector<1x1x1x96xf32>
    %210 = vector.shape_cast %209 : vector<1x1x1x96xf32> to vector<1x96xf32>
    %211 = vector.broadcast %210 : vector<1x96xf32> to vector<9x96xf32>
    %212 = arith.addf %208, %211 : vector<9x96xf32>
    %213 = vector.extract_strided_slice %212 {offsets = [0, 0], sizes = [9, 32], strides = [1, 1]} : vector<9x96xf32> to vector<9x32xf32>
    %cst_109 = arith.constant 0.353553385 : f32
    %214 = vector.broadcast %cst_109 : f32 to vector<9x32xf32>
    %215 = arith.mulf %213, %214 : vector<9x32xf32>
    %216 = vector.extract_strided_slice %212 {offsets = [0, 32], sizes = [9, 32], strides = [1, 1]} : vector<9x96xf32> to vector<9x32xf32>
    %217 = vector.extract_strided_slice %212 {offsets = [0, 64], sizes = [9, 32], strides = [1, 1]} : vector<9x96xf32> to vector<9x32xf32>
    %cst_110 = arith.constant 0.000000e+00 : f32
    %218 = vector.broadcast %cst_110 : f32 to vector<9x32xf32>
    %219 = vector.broadcast %7 : vector<1x32xf32> to vector<9x32xf32>
    %220 = arith.mulf %215, %219 : vector<9x32xf32>
    %cst_111 = arith.constant dense<0.000000e+00> : vector<9x9xf32>
    %221 = tpu.matmul %220, %216, %cst_111 {dimension_numbers = #tpu.dot_dimension_numbers<[1], [1], [0], [0], [0, 0, 1, 0], [], []>} : vector<9x32xf32>, vector<9x32xf32>, vector<9x9xf32> -> vector<9x9xf32>
    %222 = arith.addf %221, %40 : vector<9x9xf32>
    %cst_112 = arith.constant dense<0xFF800000> : vector<9xf32>
    %223 = vector.multi_reduction <maximumf>, %222, %cst_112 [1] : vector<9x9xf32> to vector<9xf32>
    %224 = vector.shape_cast %223 : vector<9xf32> to vector<9x1xf32>
    %225 = vector.broadcast %224 : vector<9x1xf32> to vector<9x9xf32>
    %226 = arith.subf %222, %225 : vector<9x9xf32>
    %227 = math.exp %226 : vector<9x9xf32>
    %cst_113 = arith.constant dense<0.000000e+00> : vector<9xf32>
    %228 = vector.multi_reduction <add>, %227, %cst_113 [1] : vector<9x9xf32> to vector<9xf32>
    %229 = vector.shape_cast %228 : vector<9xf32> to vector<9x1xf32>
    %230 = tpu.reciprocal %229 : vector<9x1xf32> -> vector<9x1xf32>
    %231 = vector.broadcast %230 : vector<9x1xf32> to vector<9x9xf32>
    %232 = arith.mulf %227, %231 : vector<9x9xf32>
    %cst_114 = arith.constant dense<0.000000e+00> : vector<9x32xf32>
    %233 = tpu.matmul %232, %217, %cst_114 {dimension_numbers = #tpu.dot_dimension_numbers<[1], [0], [0], [1], [0, 0, 1, 1], [], []>} : vector<9x9xf32>, vector<9x32xf32>, vector<9x32xf32> -> vector<9x32xf32>
    %234 = vector.broadcast %7 : vector<1x32xf32> to vector<9x32xf32>
    %235 = arith.mulf %233, %234 : vector<9x32xf32>
    %236 = arith.addf %218, %235 : vector<9x32xf32>
    %237 = vector.broadcast %14 : vector<1x32xf32> to vector<9x32xf32>
    %238 = arith.mulf %215, %237 : vector<9x32xf32>
    %cst_115 = arith.constant dense<0.000000e+00> : vector<9x9xf32>
    %239 = tpu.matmul %238, %216, %cst_115 {dimension_numbers = #tpu.dot_dimension_numbers<[1], [1], [0], [0], [0, 0, 1, 0], [], []>} : vector<9x32xf32>, vector<9x32xf32>, vector<9x9xf32> -> vector<9x9xf32>
    %240 = arith.addf %239, %40 : vector<9x9xf32>
    %cst_116 = arith.constant dense<0xFF800000> : vector<9xf32>
    %241 = vector.multi_reduction <maximumf>, %240, %cst_116 [1] : vector<9x9xf32> to vector<9xf32>
    %242 = vector.shape_cast %241 : vector<9xf32> to vector<9x1xf32>
    %243 = vector.broadcast %242 : vector<9x1xf32> to vector<9x9xf32>
    %244 = arith.subf %240, %243 : vector<9x9xf32>
    %245 = math.exp %244 : vector<9x9xf32>
    %cst_117 = arith.constant dense<0.000000e+00> : vector<9xf32>
    %246 = vector.multi_reduction <add>, %245, %cst_117 [1] : vector<9x9xf32> to vector<9xf32>
    %247 = vector.shape_cast %246 : vector<9xf32> to vector<9x1xf32>
    %248 = tpu.reciprocal %247 : vector<9x1xf32> -> vector<9x1xf32>
    %249 = vector.broadcast %248 : vector<9x1xf32> to vector<9x9xf32>
    %250 = arith.mulf %245, %249 : vector<9x9xf32>
    %cst_118 = arith.constant dense<0.000000e+00> : vector<9x32xf32>
    %251 = tpu.matmul %250, %217, %cst_118 {dimension_numbers = #tpu.dot_dimension_numbers<[1], [0], [0], [1], [0, 0, 1, 1], [], []>} : vector<9x9xf32>, vector<9x32xf32>, vector<9x32xf32> -> vector<9x32xf32>
    %252 = vector.broadcast %14 : vector<1x32xf32> to vector<9x32xf32>
    %253 = arith.mulf %251, %252 : vector<9x32xf32>
    %254 = arith.addf %236, %253 : vector<9x32xf32>
    %255 = vector.broadcast %21 : vector<1x32xf32> to vector<9x32xf32>
    %256 = arith.mulf %215, %255 : vector<9x32xf32>
    %cst_119 = arith.constant dense<0.000000e+00> : vector<9x9xf32>
    %257 = tpu.matmul %256, %216, %cst_119 {dimension_numbers = #tpu.dot_dimension_numbers<[1], [1], [0], [0], [0, 0, 1, 0], [], []>} : vector<9x32xf32>, vector<9x32xf32>, vector<9x9xf32> -> vector<9x9xf32>
    %258 = arith.addf %257, %40 : vector<9x9xf32>
    %cst_120 = arith.constant dense<0xFF800000> : vector<9xf32>
    %259 = vector.multi_reduction <maximumf>, %258, %cst_120 [1] : vector<9x9xf32> to vector<9xf32>
    %260 = vector.shape_cast %259 : vector<9xf32> to vector<9x1xf32>
    %261 = vector.broadcast %260 : vector<9x1xf32> to vector<9x9xf32>
    %262 = arith.subf %258, %261 : vector<9x9xf32>
    %263 = math.exp %262 : vector<9x9xf32>
    %cst_121 = arith.constant dense<0.000000e+00> : vector<9xf32>
    %264 = vector.multi_reduction <add>, %263, %cst_121 [1] : vector<9x9xf32> to vector<9xf32>
    %265 = vector.shape_cast %264 : vector<9xf32> to vector<9x1xf32>
    %266 = tpu.reciprocal %265 : vector<9x1xf32> -> vector<9x1xf32>
    %267 = vector.broadcast %266 : vector<9x1xf32> to vector<9x9xf32>
    %268 = arith.mulf %263, %267 : vector<9x9xf32>
    %cst_122 = arith.constant dense<0.000000e+00> : vector<9x32xf32>
    %269 = tpu.matmul %268, %217, %cst_122 {dimension_numbers = #tpu.dot_dimension_numbers<[1], [0], [0], [1], [0, 0, 1, 1], [], []>} : vector<9x9xf32>, vector<9x32xf32>, vector<9x32xf32> -> vector<9x32xf32>
    %270 = vector.broadcast %21 : vector<1x32xf32> to vector<9x32xf32>
    %271 = arith.mulf %269, %270 : vector<9x32xf32>
    %272 = arith.addf %254, %271 : vector<9x32xf32>
    %273 = vector.broadcast %28 : vector<1x32xf32> to vector<9x32xf32>
    %274 = arith.mulf %215, %273 : vector<9x32xf32>
    %cst_123 = arith.constant dense<0.000000e+00> : vector<9x9xf32>
    %275 = tpu.matmul %274, %216, %cst_123 {dimension_numbers = #tpu.dot_dimension_numbers<[1], [1], [0], [0], [0, 0, 1, 0], [], []>} : vector<9x32xf32>, vector<9x32xf32>, vector<9x9xf32> -> vector<9x9xf32>
    %276 = arith.addf %275, %40 : vector<9x9xf32>
    %cst_124 = arith.constant dense<0xFF800000> : vector<9xf32>
    %277 = vector.multi_reduction <maximumf>, %276, %cst_124 [1] : vector<9x9xf32> to vector<9xf32>
    %278 = vector.shape_cast %277 : vector<9xf32> to vector<9x1xf32>
    %279 = vector.broadcast %278 : vector<9x1xf32> to vector<9x9xf32>
    %280 = arith.subf %276, %279 : vector<9x9xf32>
    %281 = math.exp %280 : vector<9x9xf32>
    %cst_125 = arith.constant dense<0.000000e+00> : vector<9xf32>
    %282 = vector.multi_reduction <add>, %281, %cst_125 [1] : vector<9x9xf32> to vector<9xf32>
    %283 = vector.shape_cast %282 : vector<9xf32> to vector<9x1xf32>
    %284 = tpu.reciprocal %283 : vector<9x1xf32> -> vector<9x1xf32>
    %285 = vector.broadcast %284 : vector<9x1xf32> to vector<9x9xf32>
    %286 = arith.mulf %281, %285 : vector<9x9xf32>
    %cst_126 = arith.constant dense<0.000000e+00> : vector<9x32xf32>
    %287 = tpu.matmul %286, %217, %cst_126 {dimension_numbers = #tpu.dot_dimension_numbers<[1], [0], [0], [1], [0, 0, 1, 1], [], []>} : vector<9x9xf32>, vector<9x32xf32>, vector<9x32xf32> -> vector<9x32xf32>
    %288 = vector.broadcast %28 : vector<1x32xf32> to vector<9x32xf32>
    %289 = arith.mulf %287, %288 : vector<9x32xf32>
    %290 = arith.addf %272, %289 : vector<9x32xf32>
    %c0_127 = arith.constant 0 : index
    %c1_128 = arith.constant 1 : index
    %c0_129 = arith.constant 0 : index
    %c0_130 = arith.constant 0 : index
    %291 = vector.load %arg7[%c0_127, %c1_128, %c0_129, %c0_130] : memref<1x2x32x32xf32, #tpu.memory_space<vmem>>, vector<1x1x32x32xf32>
    %292 = vector.shape_cast %291 : vector<1x1x32x32xf32> to vector<32x32xf32>
    %cst_131 = arith.constant dense<0.000000e+00> : vector<9x32xf32>
    %293 = tpu.matmul %290, %292, %cst_131 {dimension_numbers = #tpu.dot_dimension_numbers<[1], [0], [0], [1], [0, 0, 1, 1], [], []>} : vector<9x32xf32>, vector<32x32xf32>, vector<9x32xf32> -> vector<9x32xf32>
    %c0_132 = arith.constant 0 : index
    %c1_133 = arith.constant 1 : index
    %c0_134 = arith.constant 0 : index
    %c0_135 = arith.constant 0 : index
    %294 = vector.load %arg8[%c0_132, %c1_133, %c0_134, %c0_135] : memref<1x2x1x32xf32, #tpu.memory_space<vmem>>, vector<1x1x1x32xf32>
    %295 = vector.shape_cast %294 : vector<1x1x1x32xf32> to vector<1x32xf32>
    %296 = vector.broadcast %295 : vector<1x32xf32> to vector<9x32xf32>
    %297 = arith.addf %293, %296 : vector<9x32xf32>
    %298 = arith.addf %205, %297 : vector<9x32xf32>
    %c0_136 = arith.constant 0 : index
    %c1_137 = arith.constant 1 : index
    %c0_138 = arith.constant 0 : index
    %c0_139 = arith.constant 0 : index
    %299 = vector.load %arg9[%c0_136, %c1_137, %c0_138, %c0_139] : memref<1x2x1x32xf32, #tpu.memory_space<vmem>>, vector<1x1x1x32xf32>
    %300 = vector.shape_cast %299 : vector<1x1x1x32xf32> to vector<1x32xf32>
    %c0_140 = arith.constant 0 : index
    %c1_141 = arith.constant 1 : index
    %c0_142 = arith.constant 0 : index
    %c0_143 = arith.constant 0 : index
    %301 = vector.load %arg10[%c0_140, %c1_141, %c0_142, %c0_143] : memref<1x2x1x32xf32, #tpu.memory_space<vmem>>, vector<1x1x1x32xf32>
    %302 = vector.shape_cast %301 : vector<1x1x1x32xf32> to vector<1x32xf32>
    %cst_144 = arith.constant dense<0.000000e+00> : vector<9xf32>
    %303 = vector.multi_reduction <add>, %298, %cst_144 [1] : vector<9x32xf32> to vector<9xf32>
    %304 = vector.shape_cast %303 : vector<9xf32> to vector<9x1xf32>
    %cst_145 = arith.constant 3.200000e+01 : f32
    %305 = vector.broadcast %cst_145 : f32 to vector<9x1xf32>
    %306 = arith.divf %304, %305 : vector<9x1xf32>
    %307 = vector.broadcast %306 : vector<9x1xf32> to vector<9x32xf32>
    %308 = arith.subf %298, %307 : vector<9x32xf32>
    %309 = arith.mulf %308, %308 : vector<9x32xf32>
    %cst_146 = arith.constant dense<0.000000e+00> : vector<9xf32>
    %310 = vector.multi_reduction <add>, %309, %cst_146 [1] : vector<9x32xf32> to vector<9xf32>
    %311 = vector.shape_cast %310 : vector<9xf32> to vector<9x1xf32>
    %cst_147 = arith.constant 3.200000e+01 : f32
    %312 = vector.broadcast %cst_147 : f32 to vector<9x1xf32>
    %313 = arith.divf %311, %312 : vector<9x1xf32>
    %314 = vector.broadcast %306 : vector<9x1xf32> to vector<9x32xf32>
    %315 = arith.subf %298, %314 : vector<9x32xf32>
    %cst_148 = arith.constant 9.99999974E-6 : f32
    %316 = vector.broadcast %cst_148 : f32 to vector<9x1xf32>
    %317 = arith.addf %313, %316 : vector<9x1xf32>
    %318 = math.rsqrt %317 : vector<9x1xf32>
    %319 = vector.broadcast %318 : vector<9x1xf32> to vector<9x32xf32>
    %320 = arith.mulf %315, %319 : vector<9x32xf32>
    %321 = vector.broadcast %300 : vector<1x32xf32> to vector<9x32xf32>
    %322 = arith.mulf %320, %321 : vector<9x32xf32>
    %323 = vector.broadcast %302 : vector<1x32xf32> to vector<9x32xf32>
    %324 = arith.addf %322, %323 : vector<9x32xf32>
    %c0_149 = arith.constant 0 : index
    %c1_150 = arith.constant 1 : index
    %c0_151 = arith.constant 0 : index
    %c0_152 = arith.constant 0 : index
    %325 = vector.load %arg11[%c0_149, %c1_150, %c0_151, %c0_152] : memref<1x2x32x128xf32, #tpu.memory_space<vmem>>, vector<1x1x32x128xf32>
    %326 = vector.shape_cast %325 : vector<1x1x32x128xf32> to vector<32x128xf32>
    %cst_153 = arith.constant dense<0.000000e+00> : vector<9x128xf32>
    %327 = tpu.matmul %324, %326, %cst_153 {dimension_numbers = #tpu.dot_dimension_numbers<[1], [0], [0], [1], [0, 0, 1, 1], [], []>} : vector<9x32xf32>, vector<32x128xf32>, vector<9x128xf32> -> vector<9x128xf32>
    %c0_154 = arith.constant 0 : index
    %c1_155 = arith.constant 1 : index
    %c0_156 = arith.constant 0 : index
    %c0_157 = arith.constant 0 : index
    %328 = vector.load %arg12[%c0_154, %c1_155, %c0_156, %c0_157] : memref<1x2x1x128xf32, #tpu.memory_space<vmem>>, vector<1x1x1x128xf32>
    %329 = vector.shape_cast %328 : vector<1x1x1x128xf32> to vector<1x128xf32>
    %330 = vector.broadcast %329 : vector<1x128xf32> to vector<9x128xf32>
    %331 = arith.addf %327, %330 : vector<9x128xf32>
    %cst_158 = arith.constant 0.000000e+00 : f32
    %332 = vector.broadcast %cst_158 : f32 to vector<9x128xf32>
    %333 = arith.maximumf %331, %332 : vector<9x128xf32>
    %c0_159 = arith.constant 0 : index
    %c1_160 = arith.constant 1 : index
    %c0_161 = arith.constant 0 : index
    %c0_162 = arith.constant 0 : index
    %334 = vector.load %arg13[%c0_159, %c1_160, %c0_161, %c0_162] : memref<1x2x128x32xf32, #tpu.memory_space<vmem>>, vector<1x1x128x32xf32>
    %335 = vector.shape_cast %334 : vector<1x1x128x32xf32> to vector<128x32xf32>
    %cst_163 = arith.constant dense<0.000000e+00> : vector<9x32xf32>
    %336 = tpu.matmul %333, %335, %cst_163 {dimension_numbers = #tpu.dot_dimension_numbers<[1], [0], [0], [1], [0, 0, 1, 1], [], []>} : vector<9x128xf32>, vector<128x32xf32>, vector<9x32xf32> -> vector<9x32xf32>
    %c0_164 = arith.constant 0 : index
    %c1_165 = arith.constant 1 : index
    %c0_166 = arith.constant 0 : index
    %c0_167 = arith.constant 0 : index
    %337 = vector.load %arg14[%c0_164, %c1_165, %c0_166, %c0_167] : memref<1x2x1x32xf32, #tpu.memory_space<vmem>>, vector<1x1x1x32xf32>
    %338 = vector.shape_cast %337 : vector<1x1x1x32xf32> to vector<1x32xf32>
    %339 = vector.broadcast %338 : vector<1x32xf32> to vector<9x32xf32>
    %340 = arith.addf %336, %339 : vector<9x32xf32>
    %341 = arith.addf %324, %340 : vector<9x32xf32>
    %c0_168 = arith.constant 0 : index
    %c1_169 = arith.constant 1 : index
    %c0_170 = arith.constant 0 : index
    %c0_171 = arith.constant 0 : index
    %342 = vector.load %arg15[%c0_168, %c1_169, %c0_170, %c0_171] : memref<1x2x1x32xf32, #tpu.memory_space<vmem>>, vector<1x1x1x32xf32>
    %343 = vector.shape_cast %342 : vector<1x1x1x32xf32> to vector<1x32xf32>
    %c0_172 = arith.constant 0 : index
    %c1_173 = arith.constant 1 : index
    %c0_174 = arith.constant 0 : index
    %c0_175 = arith.constant 0 : index
    %344 = vector.load %arg16[%c0_172, %c1_173, %c0_174, %c0_175] : memref<1x2x1x32xf32, #tpu.memory_space<vmem>>, vector<1x1x1x32xf32>
    %345 = vector.shape_cast %344 : vector<1x1x1x32xf32> to vector<1x32xf32>
    %cst_176 = arith.constant dense<0.000000e+00> : vector<9xf32>
    %346 = vector.multi_reduction <add>, %341, %cst_176 [1] : vector<9x32xf32> to vector<9xf32>
    %347 = vector.shape_cast %346 : vector<9xf32> to vector<9x1xf32>
    %cst_177 = arith.constant 3.200000e+01 : f32
    %348 = vector.broadcast %cst_177 : f32 to vector<9x1xf32>
    %349 = arith.divf %347, %348 : vector<9x1xf32>
    %350 = vector.broadcast %349 : vector<9x1xf32> to vector<9x32xf32>
    %351 = arith.subf %341, %350 : vector<9x32xf32>
    %352 = arith.mulf %351, %351 : vector<9x32xf32>
    %cst_178 = arith.constant dense<0.000000e+00> : vector<9xf32>
    %353 = vector.multi_reduction <add>, %352, %cst_178 [1] : vector<9x32xf32> to vector<9xf32>
    %354 = vector.shape_cast %353 : vector<9xf32> to vector<9x1xf32>
    %cst_179 = arith.constant 3.200000e+01 : f32
    %355 = vector.broadcast %cst_179 : f32 to vector<9x1xf32>
    %356 = arith.divf %354, %355 : vector<9x1xf32>
    %357 = vector.broadcast %349 : vector<9x1xf32> to vector<9x32xf32>
    %358 = arith.subf %341, %357 : vector<9x32xf32>
    %cst_180 = arith.constant 9.99999974E-6 : f32
    %359 = vector.broadcast %cst_180 : f32 to vector<9x1xf32>
    %360 = arith.addf %356, %359 : vector<9x1xf32>
    %361 = math.rsqrt %360 : vector<9x1xf32>
    %362 = vector.broadcast %361 : vector<9x1xf32> to vector<9x32xf32>
    %363 = arith.mulf %358, %362 : vector<9x32xf32>
    %364 = vector.broadcast %343 : vector<1x32xf32> to vector<9x32xf32>
    %365 = arith.mulf %363, %364 : vector<9x32xf32>
    %366 = vector.broadcast %345 : vector<1x32xf32> to vector<9x32xf32>
    %367 = arith.addf %365, %366 : vector<9x32xf32>
    %368 = vector.extract_strided_slice %367 {offsets = [0, 0], sizes = [1, 32], strides = [1, 1]} : vector<9x32xf32> to vector<1x32xf32>
    %cst_181 = arith.constant dense<0.000000e+00> : vector<1x32xf32>
    %369 = tpu.matmul %368, %34, %cst_181 {dimension_numbers = #tpu.dot_dimension_numbers<[1], [0], [0], [1], [0, 0, 1, 1], [], []>} : vector<1x32xf32>, vector<32x32xf32>, vector<1x32xf32> -> vector<1x32xf32>
    %370 = arith.addf %369, %36 : vector<1x32xf32>
    %c0_182 = arith.constant 0 : index
    %c0_183 = arith.constant 0 : index
    %c0_184 = arith.constant 0 : index
    %c0_185 = arith.constant 0 : index
    %371 = vector.load %arg19[%c0_182, %c0_183, %c0_184, %c0_185] : memref<1x2x32x32xf32, #tpu.memory_space<vmem>>, vector<1x1x32x32xf32>
    %372 = vector.shape_cast %371 : vector<1x1x32x32xf32> to vector<32x32xf32>
    %cst_186 = arith.constant dense<0.000000e+00> : vector<1x32xf32>
    %373 = tpu.matmul %370, %372, %cst_186 {dimension_numbers = #tpu.dot_dimension_numbers<[1], [0], [0], [1], [0, 0, 1, 1], [], []>} : vector<1x32xf32>, vector<32x32xf32>, vector<1x32xf32> -> vector<1x32xf32>
    %c0_187 = arith.constant 0 : index
    %c0_188 = arith.constant 0 : index
    %c0_189 = arith.constant 0 : index
    %c0_190 = arith.constant 0 : index
    %374 = vector.load %arg20[%c0_187, %c0_188, %c0_189, %c0_190] : memref<1x2x1x32xf32, #tpu.memory_space<vmem>>, vector<1x1x1x32xf32>
    %375 = vector.shape_cast %374 : vector<1x1x1x32xf32> to vector<1x32xf32>
    %376 = arith.addf %373, %375 : vector<1x32xf32>
    %cst_191 = arith.constant 0.000000e+00 : f32
    %377 = vector.broadcast %cst_191 : f32 to vector<1x32xf32>
    %378 = arith.maximumf %376, %377 : vector<1x32xf32>
    %c0_192 = arith.constant 0 : index
    %c1_193 = arith.constant 1 : index
    %c0_194 = arith.constant 0 : index
    %c0_195 = arith.constant 0 : index
    %379 = vector.load %arg19[%c0_192, %c1_193, %c0_194, %c0_195] : memref<1x2x32x32xf32, #tpu.memory_space<vmem>>, vector<1x1x32x32xf32>
    %380 = vector.shape_cast %379 : vector<1x1x32x32xf32> to vector<32x32xf32>
    %cst_196 = arith.constant dense<0.000000e+00> : vector<1x32xf32>
    %381 = tpu.matmul %378, %380, %cst_196 {dimension_numbers = #tpu.dot_dimension_numbers<[1], [0], [0], [1], [0, 0, 1, 1], [], []>} : vector<1x32xf32>, vector<32x32xf32>, vector<1x32xf32> -> vector<1x32xf32>
    %c0_197 = arith.constant 0 : index
    %c1_198 = arith.constant 1 : index
    %c0_199 = arith.constant 0 : index
    %c0_200 = arith.constant 0 : index
    %382 = vector.load %arg20[%c0_197, %c1_198, %c0_199, %c0_200] : memref<1x2x1x32xf32, #tpu.memory_space<vmem>>, vector<1x1x1x32xf32>
    %383 = vector.shape_cast %382 : vector<1x1x1x32xf32> to vector<1x32xf32>
    %384 = arith.addf %381, %383 : vector<1x32xf32>
    %cst_201 = arith.constant 0.000000e+00 : f32
    %385 = vector.broadcast %cst_201 : f32 to vector<1x32xf32>
    %386 = arith.maximumf %384, %385 : vector<1x32xf32>
    %c1_202 = arith.constant 1 : index
    %c0_203 = arith.constant 0 : index
    %c0_204 = arith.constant 0 : index
    %387 = vector.load %arg1[%c1_202, %c0_203, %c0_204] : memref<2x9x17xf32, #tpu.memory_space<vmem>>, vector<1x9x17xf32>
    %388 = vector.shape_cast %387 : vector<1x9x17xf32> to vector<9x17xf32>
    %c1_205 = arith.constant 1 : index
    %c0_206 = arith.constant 0 : index
    %c0_207 = arith.constant 0 : index
    %389 = vector.load %arg2[%c1_205, %c0_206, %c0_207] : memref<2x9x9xf32, #tpu.memory_space<vmem>>, vector<1x9x9xf32>
    %390 = vector.shape_cast %389 : vector<1x9x9xf32> to vector<9x9xf32>
    %cst_208 = arith.constant dense<0.000000e+00> : vector<9x32xf32>
    %391 = tpu.matmul %388, %30, %cst_208 {dimension_numbers = #tpu.dot_dimension_numbers<[1], [0], [0], [1], [0, 0, 1, 1], [], []>} : vector<9x17xf32>, vector<17x32xf32>, vector<9x32xf32> -> vector<9x32xf32>
    %392 = vector.broadcast %32 : vector<1x32xf32> to vector<9x32xf32>
    %393 = arith.addf %391, %392 : vector<9x32xf32>
    %c0_209 = arith.constant 0 : index
    %c0_210 = arith.constant 0 : index
    %c0_211 = arith.constant 0 : index
    %c0_212 = arith.constant 0 : index
    %394 = vector.load %arg5[%c0_209, %c0_210, %c0_211, %c0_212] : memref<1x2x32x96xf32, #tpu.memory_space<vmem>>, vector<1x1x32x96xf32>
    %395 = vector.shape_cast %394 : vector<1x1x32x96xf32> to vector<32x96xf32>
    %cst_213 = arith.constant dense<0.000000e+00> : vector<9x96xf32>
    %396 = tpu.matmul %393, %395, %cst_213 {dimension_numbers = #tpu.dot_dimension_numbers<[1], [0], [0], [1], [0, 0, 1, 1], [], []>} : vector<9x32xf32>, vector<32x96xf32>, vector<9x96xf32> -> vector<9x96xf32>
    %c0_214 = arith.constant 0 : index
    %c0_215 = arith.constant 0 : index
    %c0_216 = arith.constant 0 : index
    %c0_217 = arith.constant 0 : index
    %397 = vector.load %arg6[%c0_214, %c0_215, %c0_216, %c0_217] : memref<1x2x1x96xf32, #tpu.memory_space<vmem>>, vector<1x1x1x96xf32>
    %398 = vector.shape_cast %397 : vector<1x1x1x96xf32> to vector<1x96xf32>
    %399 = vector.broadcast %398 : vector<1x96xf32> to vector<9x96xf32>
    %400 = arith.addf %396, %399 : vector<9x96xf32>
    %401 = vector.extract_strided_slice %400 {offsets = [0, 0], sizes = [9, 32], strides = [1, 1]} : vector<9x96xf32> to vector<9x32xf32>
    %cst_218 = arith.constant 0.353553385 : f32
    %402 = vector.broadcast %cst_218 : f32 to vector<9x32xf32>
    %403 = arith.mulf %401, %402 : vector<9x32xf32>
    %404 = vector.extract_strided_slice %400 {offsets = [0, 32], sizes = [9, 32], strides = [1, 1]} : vector<9x96xf32> to vector<9x32xf32>
    %405 = vector.extract_strided_slice %400 {offsets = [0, 64], sizes = [9, 32], strides = [1, 1]} : vector<9x96xf32> to vector<9x32xf32>
    %cst_219 = arith.constant 0.000000e+00 : f32
    %406 = vector.broadcast %cst_219 : f32 to vector<9x32xf32>
    %407 = vector.broadcast %7 : vector<1x32xf32> to vector<9x32xf32>
    %408 = arith.mulf %403, %407 : vector<9x32xf32>
    %cst_220 = arith.constant dense<0.000000e+00> : vector<9x9xf32>
    %409 = tpu.matmul %408, %404, %cst_220 {dimension_numbers = #tpu.dot_dimension_numbers<[1], [1], [0], [0], [0, 0, 1, 0], [], []>} : vector<9x32xf32>, vector<9x32xf32>, vector<9x9xf32> -> vector<9x9xf32>
    %410 = arith.addf %409, %390 : vector<9x9xf32>
    %cst_221 = arith.constant dense<0xFF800000> : vector<9xf32>
    %411 = vector.multi_reduction <maximumf>, %410, %cst_221 [1] : vector<9x9xf32> to vector<9xf32>
    %412 = vector.shape_cast %411 : vector<9xf32> to vector<9x1xf32>
    %413 = vector.broadcast %412 : vector<9x1xf32> to vector<9x9xf32>
    %414 = arith.subf %410, %413 : vector<9x9xf32>
    %415 = math.exp %414 : vector<9x9xf32>
    %cst_222 = arith.constant dense<0.000000e+00> : vector<9xf32>
    %416 = vector.multi_reduction <add>, %415, %cst_222 [1] : vector<9x9xf32> to vector<9xf32>
    %417 = vector.shape_cast %416 : vector<9xf32> to vector<9x1xf32>
    %418 = tpu.reciprocal %417 : vector<9x1xf32> -> vector<9x1xf32>
    %419 = vector.broadcast %418 : vector<9x1xf32> to vector<9x9xf32>
    %420 = arith.mulf %415, %419 : vector<9x9xf32>
    %cst_223 = arith.constant dense<0.000000e+00> : vector<9x32xf32>
    %421 = tpu.matmul %420, %405, %cst_223 {dimension_numbers = #tpu.dot_dimension_numbers<[1], [0], [0], [1], [0, 0, 1, 1], [], []>} : vector<9x9xf32>, vector<9x32xf32>, vector<9x32xf32> -> vector<9x32xf32>
    %422 = vector.broadcast %7 : vector<1x32xf32> to vector<9x32xf32>
    %423 = arith.mulf %421, %422 : vector<9x32xf32>
    %424 = arith.addf %406, %423 : vector<9x32xf32>
    %425 = vector.broadcast %14 : vector<1x32xf32> to vector<9x32xf32>
    %426 = arith.mulf %403, %425 : vector<9x32xf32>
    %cst_224 = arith.constant dense<0.000000e+00> : vector<9x9xf32>
    %427 = tpu.matmul %426, %404, %cst_224 {dimension_numbers = #tpu.dot_dimension_numbers<[1], [1], [0], [0], [0, 0, 1, 0], [], []>} : vector<9x32xf32>, vector<9x32xf32>, vector<9x9xf32> -> vector<9x9xf32>
    %428 = arith.addf %427, %390 : vector<9x9xf32>
    %cst_225 = arith.constant dense<0xFF800000> : vector<9xf32>
    %429 = vector.multi_reduction <maximumf>, %428, %cst_225 [1] : vector<9x9xf32> to vector<9xf32>
    %430 = vector.shape_cast %429 : vector<9xf32> to vector<9x1xf32>
    %431 = vector.broadcast %430 : vector<9x1xf32> to vector<9x9xf32>
    %432 = arith.subf %428, %431 : vector<9x9xf32>
    %433 = math.exp %432 : vector<9x9xf32>
    %cst_226 = arith.constant dense<0.000000e+00> : vector<9xf32>
    %434 = vector.multi_reduction <add>, %433, %cst_226 [1] : vector<9x9xf32> to vector<9xf32>
    %435 = vector.shape_cast %434 : vector<9xf32> to vector<9x1xf32>
    %436 = tpu.reciprocal %435 : vector<9x1xf32> -> vector<9x1xf32>
    %437 = vector.broadcast %436 : vector<9x1xf32> to vector<9x9xf32>
    %438 = arith.mulf %433, %437 : vector<9x9xf32>
    %cst_227 = arith.constant dense<0.000000e+00> : vector<9x32xf32>
    %439 = tpu.matmul %438, %405, %cst_227 {dimension_numbers = #tpu.dot_dimension_numbers<[1], [0], [0], [1], [0, 0, 1, 1], [], []>} : vector<9x9xf32>, vector<9x32xf32>, vector<9x32xf32> -> vector<9x32xf32>
    %440 = vector.broadcast %14 : vector<1x32xf32> to vector<9x32xf32>
    %441 = arith.mulf %439, %440 : vector<9x32xf32>
    %442 = arith.addf %424, %441 : vector<9x32xf32>
    %443 = vector.broadcast %21 : vector<1x32xf32> to vector<9x32xf32>
    %444 = arith.mulf %403, %443 : vector<9x32xf32>
    %cst_228 = arith.constant dense<0.000000e+00> : vector<9x9xf32>
    %445 = tpu.matmul %444, %404, %cst_228 {dimension_numbers = #tpu.dot_dimension_numbers<[1], [1], [0], [0], [0, 0, 1, 0], [], []>} : vector<9x32xf32>, vector<9x32xf32>, vector<9x9xf32> -> vector<9x9xf32>
    %446 = arith.addf %445, %390 : vector<9x9xf32>
    %cst_229 = arith.constant dense<0xFF800000> : vector<9xf32>
    %447 = vector.multi_reduction <maximumf>, %446, %cst_229 [1] : vector<9x9xf32> to vector<9xf32>
    %448 = vector.shape_cast %447 : vector<9xf32> to vector<9x1xf32>
    %449 = vector.broadcast %448 : vector<9x1xf32> to vector<9x9xf32>
    %450 = arith.subf %446, %449 : vector<9x9xf32>
    %451 = math.exp %450 : vector<9x9xf32>
    %cst_230 = arith.constant dense<0.000000e+00> : vector<9xf32>
    %452 = vector.multi_reduction <add>, %451, %cst_230 [1] : vector<9x9xf32> to vector<9xf32>
    %453 = vector.shape_cast %452 : vector<9xf32> to vector<9x1xf32>
    %454 = tpu.reciprocal %453 : vector<9x1xf32> -> vector<9x1xf32>
    %455 = vector.broadcast %454 : vector<9x1xf32> to vector<9x9xf32>
    %456 = arith.mulf %451, %455 : vector<9x9xf32>
    %cst_231 = arith.constant dense<0.000000e+00> : vector<9x32xf32>
    %457 = tpu.matmul %456, %405, %cst_231 {dimension_numbers = #tpu.dot_dimension_numbers<[1], [0], [0], [1], [0, 0, 1, 1], [], []>} : vector<9x9xf32>, vector<9x32xf32>, vector<9x32xf32> -> vector<9x32xf32>
    %458 = vector.broadcast %21 : vector<1x32xf32> to vector<9x32xf32>
    %459 = arith.mulf %457, %458 : vector<9x32xf32>
    %460 = arith.addf %442, %459 : vector<9x32xf32>
    %461 = vector.broadcast %28 : vector<1x32xf32> to vector<9x32xf32>
    %462 = arith.mulf %403, %461 : vector<9x32xf32>
    %cst_232 = arith.constant dense<0.000000e+00> : vector<9x9xf32>
    %463 = tpu.matmul %462, %404, %cst_232 {dimension_numbers = #tpu.dot_dimension_numbers<[1], [1], [0], [0], [0, 0, 1, 0], [], []>} : vector<9x32xf32>, vector<9x32xf32>, vector<9x9xf32> -> vector<9x9xf32>
    %464 = arith.addf %463, %390 : vector<9x9xf32>
    %cst_233 = arith.constant dense<0xFF800000> : vector<9xf32>
    %465 = vector.multi_reduction <maximumf>, %464, %cst_233 [1] : vector<9x9xf32> to vector<9xf32>
    %466 = vector.shape_cast %465 : vector<9xf32> to vector<9x1xf32>
    %467 = vector.broadcast %466 : vector<9x1xf32> to vector<9x9xf32>
    %468 = arith.subf %464, %467 : vector<9x9xf32>
    %469 = math.exp %468 : vector<9x9xf32>
    %cst_234 = arith.constant dense<0.000000e+00> : vector<9xf32>
    %470 = vector.multi_reduction <add>, %469, %cst_234 [1] : vector<9x9xf32> to vector<9xf32>
    %471 = vector.shape_cast %470 : vector<9xf32> to vector<9x1xf32>
    %472 = tpu.reciprocal %471 : vector<9x1xf32> -> vector<9x1xf32>
    %473 = vector.broadcast %472 : vector<9x1xf32> to vector<9x9xf32>
    %474 = arith.mulf %469, %473 : vector<9x9xf32>
    %cst_235 = arith.constant dense<0.000000e+00> : vector<9x32xf32>
    %475 = tpu.matmul %474, %405, %cst_235 {dimension_numbers = #tpu.dot_dimension_numbers<[1], [0], [0], [1], [0, 0, 1, 1], [], []>} : vector<9x9xf32>, vector<9x32xf32>, vector<9x32xf32> -> vector<9x32xf32>
    %476 = vector.broadcast %28 : vector<1x32xf32> to vector<9x32xf32>
    %477 = arith.mulf %475, %476 : vector<9x32xf32>
    %478 = arith.addf %460, %477 : vector<9x32xf32>
    %c0_236 = arith.constant 0 : index
    %c0_237 = arith.constant 0 : index
    %c0_238 = arith.constant 0 : index
    %c0_239 = arith.constant 0 : index
    %479 = vector.load %arg7[%c0_236, %c0_237, %c0_238, %c0_239] : memref<1x2x32x32xf32, #tpu.memory_space<vmem>>, vector<1x1x32x32xf32>
    %480 = vector.shape_cast %479 : vector<1x1x32x32xf32> to vector<32x32xf32>
    %cst_240 = arith.constant dense<0.000000e+00> : vector<9x32xf32>
    %481 = tpu.matmul %478, %480, %cst_240 {dimension_numbers = #tpu.dot_dimension_numbers<[1], [0], [0], [1], [0, 0, 1, 1], [], []>} : vector<9x32xf32>, vector<32x32xf32>, vector<9x32xf32> -> vector<9x32xf32>
    %c0_241 = arith.constant 0 : index
    %c0_242 = arith.constant 0 : index
    %c0_243 = arith.constant 0 : index
    %c0_244 = arith.constant 0 : index
    %482 = vector.load %arg8[%c0_241, %c0_242, %c0_243, %c0_244] : memref<1x2x1x32xf32, #tpu.memory_space<vmem>>, vector<1x1x1x32xf32>
    %483 = vector.shape_cast %482 : vector<1x1x1x32xf32> to vector<1x32xf32>
    %484 = vector.broadcast %483 : vector<1x32xf32> to vector<9x32xf32>
    %485 = arith.addf %481, %484 : vector<9x32xf32>
    %486 = arith.addf %393, %485 : vector<9x32xf32>
    %c0_245 = arith.constant 0 : index
    %c0_246 = arith.constant 0 : index
    %c0_247 = arith.constant 0 : index
    %c0_248 = arith.constant 0 : index
    %487 = vector.load %arg9[%c0_245, %c0_246, %c0_247, %c0_248] : memref<1x2x1x32xf32, #tpu.memory_space<vmem>>, vector<1x1x1x32xf32>
    %488 = vector.shape_cast %487 : vector<1x1x1x32xf32> to vector<1x32xf32>
    %c0_249 = arith.constant 0 : index
    %c0_250 = arith.constant 0 : index
    %c0_251 = arith.constant 0 : index
    %c0_252 = arith.constant 0 : index
    %489 = vector.load %arg10[%c0_249, %c0_250, %c0_251, %c0_252] : memref<1x2x1x32xf32, #tpu.memory_space<vmem>>, vector<1x1x1x32xf32>
    %490 = vector.shape_cast %489 : vector<1x1x1x32xf32> to vector<1x32xf32>
    %cst_253 = arith.constant dense<0.000000e+00> : vector<9xf32>
    %491 = vector.multi_reduction <add>, %486, %cst_253 [1] : vector<9x32xf32> to vector<9xf32>
    %492 = vector.shape_cast %491 : vector<9xf32> to vector<9x1xf32>
    %cst_254 = arith.constant 3.200000e+01 : f32
    %493 = vector.broadcast %cst_254 : f32 to vector<9x1xf32>
    %494 = arith.divf %492, %493 : vector<9x1xf32>
    %495 = vector.broadcast %494 : vector<9x1xf32> to vector<9x32xf32>
    %496 = arith.subf %486, %495 : vector<9x32xf32>
    %497 = arith.mulf %496, %496 : vector<9x32xf32>
    %cst_255 = arith.constant dense<0.000000e+00> : vector<9xf32>
    %498 = vector.multi_reduction <add>, %497, %cst_255 [1] : vector<9x32xf32> to vector<9xf32>
    %499 = vector.shape_cast %498 : vector<9xf32> to vector<9x1xf32>
    %cst_256 = arith.constant 3.200000e+01 : f32
    %500 = vector.broadcast %cst_256 : f32 to vector<9x1xf32>
    %501 = arith.divf %499, %500 : vector<9x1xf32>
    %502 = vector.broadcast %494 : vector<9x1xf32> to vector<9x32xf32>
    %503 = arith.subf %486, %502 : vector<9x32xf32>
    %cst_257 = arith.constant 9.99999974E-6 : f32
    %504 = vector.broadcast %cst_257 : f32 to vector<9x1xf32>
    %505 = arith.addf %501, %504 : vector<9x1xf32>
    %506 = math.rsqrt %505 : vector<9x1xf32>
    %507 = vector.broadcast %506 : vector<9x1xf32> to vector<9x32xf32>
    %508 = arith.mulf %503, %507 : vector<9x32xf32>
    %509 = vector.broadcast %488 : vector<1x32xf32> to vector<9x32xf32>
    %510 = arith.mulf %508, %509 : vector<9x32xf32>
    %511 = vector.broadcast %490 : vector<1x32xf32> to vector<9x32xf32>
    %512 = arith.addf %510, %511 : vector<9x32xf32>
    %c0_258 = arith.constant 0 : index
    %c0_259 = arith.constant 0 : index
    %c0_260 = arith.constant 0 : index
    %c0_261 = arith.constant 0 : index
    %513 = vector.load %arg11[%c0_258, %c0_259, %c0_260, %c0_261] : memref<1x2x32x128xf32, #tpu.memory_space<vmem>>, vector<1x1x32x128xf32>
    %514 = vector.shape_cast %513 : vector<1x1x32x128xf32> to vector<32x128xf32>
    %cst_262 = arith.constant dense<0.000000e+00> : vector<9x128xf32>
    %515 = tpu.matmul %512, %514, %cst_262 {dimension_numbers = #tpu.dot_dimension_numbers<[1], [0], [0], [1], [0, 0, 1, 1], [], []>} : vector<9x32xf32>, vector<32x128xf32>, vector<9x128xf32> -> vector<9x128xf32>
    %c0_263 = arith.constant 0 : index
    %c0_264 = arith.constant 0 : index
    %c0_265 = arith.constant 0 : index
    %c0_266 = arith.constant 0 : index
    %516 = vector.load %arg12[%c0_263, %c0_264, %c0_265, %c0_266] : memref<1x2x1x128xf32, #tpu.memory_space<vmem>>, vector<1x1x1x128xf32>
    %517 = vector.shape_cast %516 : vector<1x1x1x128xf32> to vector<1x128xf32>
    %518 = vector.broadcast %517 : vector<1x128xf32> to vector<9x128xf32>
    %519 = arith.addf %515, %518 : vector<9x128xf32>
    %cst_267 = arith.constant 0.000000e+00 : f32
    %520 = vector.broadcast %cst_267 : f32 to vector<9x128xf32>
    %521 = arith.maximumf %519, %520 : vector<9x128xf32>
    %c0_268 = arith.constant 0 : index
    %c0_269 = arith.constant 0 : index
    %c0_270 = arith.constant 0 : index
    %c0_271 = arith.constant 0 : index
    %522 = vector.load %arg13[%c0_268, %c0_269, %c0_270, %c0_271] : memref<1x2x128x32xf32, #tpu.memory_space<vmem>>, vector<1x1x128x32xf32>
    %523 = vector.shape_cast %522 : vector<1x1x128x32xf32> to vector<128x32xf32>
    %cst_272 = arith.constant dense<0.000000e+00> : vector<9x32xf32>
    %524 = tpu.matmul %521, %523, %cst_272 {dimension_numbers = #tpu.dot_dimension_numbers<[1], [0], [0], [1], [0, 0, 1, 1], [], []>} : vector<9x128xf32>, vector<128x32xf32>, vector<9x32xf32> -> vector<9x32xf32>
    %c0_273 = arith.constant 0 : index
    %c0_274 = arith.constant 0 : index
    %c0_275 = arith.constant 0 : index
    %c0_276 = arith.constant 0 : index
    %525 = vector.load %arg14[%c0_273, %c0_274, %c0_275, %c0_276] : memref<1x2x1x32xf32, #tpu.memory_space<vmem>>, vector<1x1x1x32xf32>
    %526 = vector.shape_cast %525 : vector<1x1x1x32xf32> to vector<1x32xf32>
    %527 = vector.broadcast %526 : vector<1x32xf32> to vector<9x32xf32>
    %528 = arith.addf %524, %527 : vector<9x32xf32>
    %529 = arith.addf %512, %528 : vector<9x32xf32>
    %c0_277 = arith.constant 0 : index
    %c0_278 = arith.constant 0 : index
    %c0_279 = arith.constant 0 : index
    %c0_280 = arith.constant 0 : index
    %530 = vector.load %arg15[%c0_277, %c0_278, %c0_279, %c0_280] : memref<1x2x1x32xf32, #tpu.memory_space<vmem>>, vector<1x1x1x32xf32>
    %531 = vector.shape_cast %530 : vector<1x1x1x32xf32> to vector<1x32xf32>
    %c0_281 = arith.constant 0 : index
    %c0_282 = arith.constant 0 : index
    %c0_283 = arith.constant 0 : index
    %c0_284 = arith.constant 0 : index
    %532 = vector.load %arg16[%c0_281, %c0_282, %c0_283, %c0_284] : memref<1x2x1x32xf32, #tpu.memory_space<vmem>>, vector<1x1x1x32xf32>
    %533 = vector.shape_cast %532 : vector<1x1x1x32xf32> to vector<1x32xf32>
    %cst_285 = arith.constant dense<0.000000e+00> : vector<9xf32>
    %534 = vector.multi_reduction <add>, %529, %cst_285 [1] : vector<9x32xf32> to vector<9xf32>
    %535 = vector.shape_cast %534 : vector<9xf32> to vector<9x1xf32>
    %cst_286 = arith.constant 3.200000e+01 : f32
    %536 = vector.broadcast %cst_286 : f32 to vector<9x1xf32>
    %537 = arith.divf %535, %536 : vector<9x1xf32>
    %538 = vector.broadcast %537 : vector<9x1xf32> to vector<9x32xf32>
    %539 = arith.subf %529, %538 : vector<9x32xf32>
    %540 = arith.mulf %539, %539 : vector<9x32xf32>
    %cst_287 = arith.constant dense<0.000000e+00> : vector<9xf32>
    %541 = vector.multi_reduction <add>, %540, %cst_287 [1] : vector<9x32xf32> to vector<9xf32>
    %542 = vector.shape_cast %541 : vector<9xf32> to vector<9x1xf32>
    %cst_288 = arith.constant 3.200000e+01 : f32
    %543 = vector.broadcast %cst_288 : f32 to vector<9x1xf32>
    %544 = arith.divf %542, %543 : vector<9x1xf32>
    %545 = vector.broadcast %537 : vector<9x1xf32> to vector<9x32xf32>
    %546 = arith.subf %529, %545 : vector<9x32xf32>
    %cst_289 = arith.constant 9.99999974E-6 : f32
    %547 = vector.broadcast %cst_289 : f32 to vector<9x1xf32>
    %548 = arith.addf %544, %547 : vector<9x1xf32>
    %549 = math.rsqrt %548 : vector<9x1xf32>
    %550 = vector.broadcast %549 : vector<9x1xf32> to vector<9x32xf32>
    %551 = arith.mulf %546, %550 : vector<9x32xf32>
    %552 = vector.broadcast %531 : vector<1x32xf32> to vector<9x32xf32>
    %553 = arith.mulf %551, %552 : vector<9x32xf32>
    %554 = vector.broadcast %533 : vector<1x32xf32> to vector<9x32xf32>
    %555 = arith.addf %553, %554 : vector<9x32xf32>
    %c0_290 = arith.constant 0 : index
    %c1_291 = arith.constant 1 : index
    %c0_292 = arith.constant 0 : index
    %c0_293 = arith.constant 0 : index
    %556 = vector.load %arg5[%c0_290, %c1_291, %c0_292, %c0_293] : memref<1x2x32x96xf32, #tpu.memory_space<vmem>>, vector<1x1x32x96xf32>
    %557 = vector.shape_cast %556 : vector<1x1x32x96xf32> to vector<32x96xf32>
    %cst_294 = arith.constant dense<0.000000e+00> : vector<9x96xf32>
    %558 = tpu.matmul %555, %557, %cst_294 {dimension_numbers = #tpu.dot_dimension_numbers<[1], [0], [0], [1], [0, 0, 1, 1], [], []>} : vector<9x32xf32>, vector<32x96xf32>, vector<9x96xf32> -> vector<9x96xf32>
    %c0_295 = arith.constant 0 : index
    %c1_296 = arith.constant 1 : index
    %c0_297 = arith.constant 0 : index
    %c0_298 = arith.constant 0 : index
    %559 = vector.load %arg6[%c0_295, %c1_296, %c0_297, %c0_298] : memref<1x2x1x96xf32, #tpu.memory_space<vmem>>, vector<1x1x1x96xf32>
    %560 = vector.shape_cast %559 : vector<1x1x1x96xf32> to vector<1x96xf32>
    %561 = vector.broadcast %560 : vector<1x96xf32> to vector<9x96xf32>
    %562 = arith.addf %558, %561 : vector<9x96xf32>
    %563 = vector.extract_strided_slice %562 {offsets = [0, 0], sizes = [9, 32], strides = [1, 1]} : vector<9x96xf32> to vector<9x32xf32>
    %cst_299 = arith.constant 0.353553385 : f32
    %564 = vector.broadcast %cst_299 : f32 to vector<9x32xf32>
    %565 = arith.mulf %563, %564 : vector<9x32xf32>
    %566 = vector.extract_strided_slice %562 {offsets = [0, 32], sizes = [9, 32], strides = [1, 1]} : vector<9x96xf32> to vector<9x32xf32>
    %567 = vector.extract_strided_slice %562 {offsets = [0, 64], sizes = [9, 32], strides = [1, 1]} : vector<9x96xf32> to vector<9x32xf32>
    %cst_300 = arith.constant 0.000000e+00 : f32
    %568 = vector.broadcast %cst_300 : f32 to vector<9x32xf32>
    %569 = vector.broadcast %7 : vector<1x32xf32> to vector<9x32xf32>
    %570 = arith.mulf %565, %569 : vector<9x32xf32>
    %cst_301 = arith.constant dense<0.000000e+00> : vector<9x9xf32>
    %571 = tpu.matmul %570, %566, %cst_301 {dimension_numbers = #tpu.dot_dimension_numbers<[1], [1], [0], [0], [0, 0, 1, 0], [], []>} : vector<9x32xf32>, vector<9x32xf32>, vector<9x9xf32> -> vector<9x9xf32>
    %572 = arith.addf %571, %390 : vector<9x9xf32>
    %cst_302 = arith.constant dense<0xFF800000> : vector<9xf32>
    %573 = vector.multi_reduction <maximumf>, %572, %cst_302 [1] : vector<9x9xf32> to vector<9xf32>
    %574 = vector.shape_cast %573 : vector<9xf32> to vector<9x1xf32>
    %575 = vector.broadcast %574 : vector<9x1xf32> to vector<9x9xf32>
    %576 = arith.subf %572, %575 : vector<9x9xf32>
    %577 = math.exp %576 : vector<9x9xf32>
    %cst_303 = arith.constant dense<0.000000e+00> : vector<9xf32>
    %578 = vector.multi_reduction <add>, %577, %cst_303 [1] : vector<9x9xf32> to vector<9xf32>
    %579 = vector.shape_cast %578 : vector<9xf32> to vector<9x1xf32>
    %580 = tpu.reciprocal %579 : vector<9x1xf32> -> vector<9x1xf32>
    %581 = vector.broadcast %580 : vector<9x1xf32> to vector<9x9xf32>
    %582 = arith.mulf %577, %581 : vector<9x9xf32>
    %cst_304 = arith.constant dense<0.000000e+00> : vector<9x32xf32>
    %583 = tpu.matmul %582, %567, %cst_304 {dimension_numbers = #tpu.dot_dimension_numbers<[1], [0], [0], [1], [0, 0, 1, 1], [], []>} : vector<9x9xf32>, vector<9x32xf32>, vector<9x32xf32> -> vector<9x32xf32>
    %584 = vector.broadcast %7 : vector<1x32xf32> to vector<9x32xf32>
    %585 = arith.mulf %583, %584 : vector<9x32xf32>
    %586 = arith.addf %568, %585 : vector<9x32xf32>
    %587 = vector.broadcast %14 : vector<1x32xf32> to vector<9x32xf32>
    %588 = arith.mulf %565, %587 : vector<9x32xf32>
    %cst_305 = arith.constant dense<0.000000e+00> : vector<9x9xf32>
    %589 = tpu.matmul %588, %566, %cst_305 {dimension_numbers = #tpu.dot_dimension_numbers<[1], [1], [0], [0], [0, 0, 1, 0], [], []>} : vector<9x32xf32>, vector<9x32xf32>, vector<9x9xf32> -> vector<9x9xf32>
    %590 = arith.addf %589, %390 : vector<9x9xf32>
    %cst_306 = arith.constant dense<0xFF800000> : vector<9xf32>
    %591 = vector.multi_reduction <maximumf>, %590, %cst_306 [1] : vector<9x9xf32> to vector<9xf32>
    %592 = vector.shape_cast %591 : vector<9xf32> to vector<9x1xf32>
    %593 = vector.broadcast %592 : vector<9x1xf32> to vector<9x9xf32>
    %594 = arith.subf %590, %593 : vector<9x9xf32>
    %595 = math.exp %594 : vector<9x9xf32>
    %cst_307 = arith.constant dense<0.000000e+00> : vector<9xf32>
    %596 = vector.multi_reduction <add>, %595, %cst_307 [1] : vector<9x9xf32> to vector<9xf32>
    %597 = vector.shape_cast %596 : vector<9xf32> to vector<9x1xf32>
    %598 = tpu.reciprocal %597 : vector<9x1xf32> -> vector<9x1xf32>
    %599 = vector.broadcast %598 : vector<9x1xf32> to vector<9x9xf32>
    %600 = arith.mulf %595, %599 : vector<9x9xf32>
    %cst_308 = arith.constant dense<0.000000e+00> : vector<9x32xf32>
    %601 = tpu.matmul %600, %567, %cst_308 {dimension_numbers = #tpu.dot_dimension_numbers<[1], [0], [0], [1], [0, 0, 1, 1], [], []>} : vector<9x9xf32>, vector<9x32xf32>, vector<9x32xf32> -> vector<9x32xf32>
    %602 = vector.broadcast %14 : vector<1x32xf32> to vector<9x32xf32>
    %603 = arith.mulf %601, %602 : vector<9x32xf32>
    %604 = arith.addf %586, %603 : vector<9x32xf32>
    %605 = vector.broadcast %21 : vector<1x32xf32> to vector<9x32xf32>
    %606 = arith.mulf %565, %605 : vector<9x32xf32>
    %cst_309 = arith.constant dense<0.000000e+00> : vector<9x9xf32>
    %607 = tpu.matmul %606, %566, %cst_309 {dimension_numbers = #tpu.dot_dimension_numbers<[1], [1], [0], [0], [0, 0, 1, 0], [], []>} : vector<9x32xf32>, vector<9x32xf32>, vector<9x9xf32> -> vector<9x9xf32>
    %608 = arith.addf %607, %390 : vector<9x9xf32>
    %cst_310 = arith.constant dense<0xFF800000> : vector<9xf32>
    %609 = vector.multi_reduction <maximumf>, %608, %cst_310 [1] : vector<9x9xf32> to vector<9xf32>
    %610 = vector.shape_cast %609 : vector<9xf32> to vector<9x1xf32>
    %611 = vector.broadcast %610 : vector<9x1xf32> to vector<9x9xf32>
    %612 = arith.subf %608, %611 : vector<9x9xf32>
    %613 = math.exp %612 : vector<9x9xf32>
    %cst_311 = arith.constant dense<0.000000e+00> : vector<9xf32>
    %614 = vector.multi_reduction <add>, %613, %cst_311 [1] : vector<9x9xf32> to vector<9xf32>
    %615 = vector.shape_cast %614 : vector<9xf32> to vector<9x1xf32>
    %616 = tpu.reciprocal %615 : vector<9x1xf32> -> vector<9x1xf32>
    %617 = vector.broadcast %616 : vector<9x1xf32> to vector<9x9xf32>
    %618 = arith.mulf %613, %617 : vector<9x9xf32>
    %cst_312 = arith.constant dense<0.000000e+00> : vector<9x32xf32>
    %619 = tpu.matmul %618, %567, %cst_312 {dimension_numbers = #tpu.dot_dimension_numbers<[1], [0], [0], [1], [0, 0, 1, 1], [], []>} : vector<9x9xf32>, vector<9x32xf32>, vector<9x32xf32> -> vector<9x32xf32>
    %620 = vector.broadcast %21 : vector<1x32xf32> to vector<9x32xf32>
    %621 = arith.mulf %619, %620 : vector<9x32xf32>
    %622 = arith.addf %604, %621 : vector<9x32xf32>
    %623 = vector.broadcast %28 : vector<1x32xf32> to vector<9x32xf32>
    %624 = arith.mulf %565, %623 : vector<9x32xf32>
    %cst_313 = arith.constant dense<0.000000e+00> : vector<9x9xf32>
    %625 = tpu.matmul %624, %566, %cst_313 {dimension_numbers = #tpu.dot_dimension_numbers<[1], [1], [0], [0], [0, 0, 1, 0], [], []>} : vector<9x32xf32>, vector<9x32xf32>, vector<9x9xf32> -> vector<9x9xf32>
    %626 = arith.addf %625, %390 : vector<9x9xf32>
    %cst_314 = arith.constant dense<0xFF800000> : vector<9xf32>
    %627 = vector.multi_reduction <maximumf>, %626, %cst_314 [1] : vector<9x9xf32> to vector<9xf32>
    %628 = vector.shape_cast %627 : vector<9xf32> to vector<9x1xf32>
    %629 = vector.broadcast %628 : vector<9x1xf32> to vector<9x9xf32>
    %630 = arith.subf %626, %629 : vector<9x9xf32>
    %631 = math.exp %630 : vector<9x9xf32>
    %cst_315 = arith.constant dense<0.000000e+00> : vector<9xf32>
    %632 = vector.multi_reduction <add>, %631, %cst_315 [1] : vector<9x9xf32> to vector<9xf32>
    %633 = vector.shape_cast %632 : vector<9xf32> to vector<9x1xf32>
    %634 = tpu.reciprocal %633 : vector<9x1xf32> -> vector<9x1xf32>
    %635 = vector.broadcast %634 : vector<9x1xf32> to vector<9x9xf32>
    %636 = arith.mulf %631, %635 : vector<9x9xf32>
    %cst_316 = arith.constant dense<0.000000e+00> : vector<9x32xf32>
    %637 = tpu.matmul %636, %567, %cst_316 {dimension_numbers = #tpu.dot_dimension_numbers<[1], [0], [0], [1], [0, 0, 1, 1], [], []>} : vector<9x9xf32>, vector<9x32xf32>, vector<9x32xf32> -> vector<9x32xf32>
    %638 = vector.broadcast %28 : vector<1x32xf32> to vector<9x32xf32>
    %639 = arith.mulf %637, %638 : vector<9x32xf32>
    %640 = arith.addf %622, %639 : vector<9x32xf32>
    %c0_317 = arith.constant 0 : index
    %c1_318 = arith.constant 1 : index
    %c0_319 = arith.constant 0 : index
    %c0_320 = arith.constant 0 : index
    %641 = vector.load %arg7[%c0_317, %c1_318, %c0_319, %c0_320] : memref<1x2x32x32xf32, #tpu.memory_space<vmem>>, vector<1x1x32x32xf32>
    %642 = vector.shape_cast %641 : vector<1x1x32x32xf32> to vector<32x32xf32>
    %cst_321 = arith.constant dense<0.000000e+00> : vector<9x32xf32>
    %643 = tpu.matmul %640, %642, %cst_321 {dimension_numbers = #tpu.dot_dimension_numbers<[1], [0], [0], [1], [0, 0, 1, 1], [], []>} : vector<9x32xf32>, vector<32x32xf32>, vector<9x32xf32> -> vector<9x32xf32>
    %c0_322 = arith.constant 0 : index
    %c1_323 = arith.constant 1 : index
    %c0_324 = arith.constant 0 : index
    %c0_325 = arith.constant 0 : index
    %644 = vector.load %arg8[%c0_322, %c1_323, %c0_324, %c0_325] : memref<1x2x1x32xf32, #tpu.memory_space<vmem>>, vector<1x1x1x32xf32>
    %645 = vector.shape_cast %644 : vector<1x1x1x32xf32> to vector<1x32xf32>
    %646 = vector.broadcast %645 : vector<1x32xf32> to vector<9x32xf32>
    %647 = arith.addf %643, %646 : vector<9x32xf32>
    %648 = arith.addf %555, %647 : vector<9x32xf32>
    %c0_326 = arith.constant 0 : index
    %c1_327 = arith.constant 1 : index
    %c0_328 = arith.constant 0 : index
    %c0_329 = arith.constant 0 : index
    %649 = vector.load %arg9[%c0_326, %c1_327, %c0_328, %c0_329] : memref<1x2x1x32xf32, #tpu.memory_space<vmem>>, vector<1x1x1x32xf32>
    %650 = vector.shape_cast %649 : vector<1x1x1x32xf32> to vector<1x32xf32>
    %c0_330 = arith.constant 0 : index
    %c1_331 = arith.constant 1 : index
    %c0_332 = arith.constant 0 : index
    %c0_333 = arith.constant 0 : index
    %651 = vector.load %arg10[%c0_330, %c1_331, %c0_332, %c0_333] : memref<1x2x1x32xf32, #tpu.memory_space<vmem>>, vector<1x1x1x32xf32>
    %652 = vector.shape_cast %651 : vector<1x1x1x32xf32> to vector<1x32xf32>
    %cst_334 = arith.constant dense<0.000000e+00> : vector<9xf32>
    %653 = vector.multi_reduction <add>, %648, %cst_334 [1] : vector<9x32xf32> to vector<9xf32>
    %654 = vector.shape_cast %653 : vector<9xf32> to vector<9x1xf32>
    %cst_335 = arith.constant 3.200000e+01 : f32
    %655 = vector.broadcast %cst_335 : f32 to vector<9x1xf32>
    %656 = arith.divf %654, %655 : vector<9x1xf32>
    %657 = vector.broadcast %656 : vector<9x1xf32> to vector<9x32xf32>
    %658 = arith.subf %648, %657 : vector<9x32xf32>
    %659 = arith.mulf %658, %658 : vector<9x32xf32>
    %cst_336 = arith.constant dense<0.000000e+00> : vector<9xf32>
    %660 = vector.multi_reduction <add>, %659, %cst_336 [1] : vector<9x32xf32> to vector<9xf32>
    %661 = vector.shape_cast %660 : vector<9xf32> to vector<9x1xf32>
    %cst_337 = arith.constant 3.200000e+01 : f32
    %662 = vector.broadcast %cst_337 : f32 to vector<9x1xf32>
    %663 = arith.divf %661, %662 : vector<9x1xf32>
    %664 = vector.broadcast %656 : vector<9x1xf32> to vector<9x32xf32>
    %665 = arith.subf %648, %664 : vector<9x32xf32>
    %cst_338 = arith.constant 9.99999974E-6 : f32
    %666 = vector.broadcast %cst_338 : f32 to vector<9x1xf32>
    %667 = arith.addf %663, %666 : vector<9x1xf32>
    %668 = math.rsqrt %667 : vector<9x1xf32>
    %669 = vector.broadcast %668 : vector<9x1xf32> to vector<9x32xf32>
    %670 = arith.mulf %665, %669 : vector<9x32xf32>
    %671 = vector.broadcast %650 : vector<1x32xf32> to vector<9x32xf32>
    %672 = arith.mulf %670, %671 : vector<9x32xf32>
    %673 = vector.broadcast %652 : vector<1x32xf32> to vector<9x32xf32>
    %674 = arith.addf %672, %673 : vector<9x32xf32>
    %c0_339 = arith.constant 0 : index
    %c1_340 = arith.constant 1 : index
    %c0_341 = arith.constant 0 : index
    %c0_342 = arith.constant 0 : index
    %675 = vector.load %arg11[%c0_339, %c1_340, %c0_341, %c0_342] : memref<1x2x32x128xf32, #tpu.memory_space<vmem>>, vector<1x1x32x128xf32>
    %676 = vector.shape_cast %675 : vector<1x1x32x128xf32> to vector<32x128xf32>
    %cst_343 = arith.constant dense<0.000000e+00> : vector<9x128xf32>
    %677 = tpu.matmul %674, %676, %cst_343 {dimension_numbers = #tpu.dot_dimension_numbers<[1], [0], [0], [1], [0, 0, 1, 1], [], []>} : vector<9x32xf32>, vector<32x128xf32>, vector<9x128xf32> -> vector<9x128xf32>
    %c0_344 = arith.constant 0 : index
    %c1_345 = arith.constant 1 : index
    %c0_346 = arith.constant 0 : index
    %c0_347 = arith.constant 0 : index
    %678 = vector.load %arg12[%c0_344, %c1_345, %c0_346, %c0_347] : memref<1x2x1x128xf32, #tpu.memory_space<vmem>>, vector<1x1x1x128xf32>
    %679 = vector.shape_cast %678 : vector<1x1x1x128xf32> to vector<1x128xf32>
    %680 = vector.broadcast %679 : vector<1x128xf32> to vector<9x128xf32>
    %681 = arith.addf %677, %680 : vector<9x128xf32>
    %cst_348 = arith.constant 0.000000e+00 : f32
    %682 = vector.broadcast %cst_348 : f32 to vector<9x128xf32>
    %683 = arith.maximumf %681, %682 : vector<9x128xf32>
    %c0_349 = arith.constant 0 : index
    %c1_350 = arith.constant 1 : index
    %c0_351 = arith.constant 0 : index
    %c0_352 = arith.constant 0 : index
    %684 = vector.load %arg13[%c0_349, %c1_350, %c0_351, %c0_352] : memref<1x2x128x32xf32, #tpu.memory_space<vmem>>, vector<1x1x128x32xf32>
    %685 = vector.shape_cast %684 : vector<1x1x128x32xf32> to vector<128x32xf32>
    %cst_353 = arith.constant dense<0.000000e+00> : vector<9x32xf32>
    %686 = tpu.matmul %683, %685, %cst_353 {dimension_numbers = #tpu.dot_dimension_numbers<[1], [0], [0], [1], [0, 0, 1, 1], [], []>} : vector<9x128xf32>, vector<128x32xf32>, vector<9x32xf32> -> vector<9x32xf32>
    %c0_354 = arith.constant 0 : index
    %c1_355 = arith.constant 1 : index
    %c0_356 = arith.constant 0 : index
    %c0_357 = arith.constant 0 : index
    %687 = vector.load %arg14[%c0_354, %c1_355, %c0_356, %c0_357] : memref<1x2x1x32xf32, #tpu.memory_space<vmem>>, vector<1x1x1x32xf32>
    %688 = vector.shape_cast %687 : vector<1x1x1x32xf32> to vector<1x32xf32>
    %689 = vector.broadcast %688 : vector<1x32xf32> to vector<9x32xf32>
    %690 = arith.addf %686, %689 : vector<9x32xf32>
    %691 = arith.addf %674, %690 : vector<9x32xf32>
    %c0_358 = arith.constant 0 : index
    %c1_359 = arith.constant 1 : index
    %c0_360 = arith.constant 0 : index
    %c0_361 = arith.constant 0 : index
    %692 = vector.load %arg15[%c0_358, %c1_359, %c0_360, %c0_361] : memref<1x2x1x32xf32, #tpu.memory_space<vmem>>, vector<1x1x1x32xf32>
    %693 = vector.shape_cast %692 : vector<1x1x1x32xf32> to vector<1x32xf32>
    %c0_362 = arith.constant 0 : index
    %c1_363 = arith.constant 1 : index
    %c0_364 = arith.constant 0 : index
    %c0_365 = arith.constant 0 : index
    %694 = vector.load %arg16[%c0_362, %c1_363, %c0_364, %c0_365] : memref<1x2x1x32xf32, #tpu.memory_space<vmem>>, vector<1x1x1x32xf32>
    %695 = vector.shape_cast %694 : vector<1x1x1x32xf32> to vector<1x32xf32>
    %cst_366 = arith.constant dense<0.000000e+00> : vector<9xf32>
    %696 = vector.multi_reduction <add>, %691, %cst_366 [1] : vector<9x32xf32> to vector<9xf32>
    %697 = vector.shape_cast %696 : vector<9xf32> to vector<9x1xf32>
    %cst_367 = arith.constant 3.200000e+01 : f32
    %698 = vector.broadcast %cst_367 : f32 to vector<9x1xf32>
    %699 = arith.divf %697, %698 : vector<9x1xf32>
    %700 = vector.broadcast %699 : vector<9x1xf32> to vector<9x32xf32>
    %701 = arith.subf %691, %700 : vector<9x32xf32>
    %702 = arith.mulf %701, %701 : vector<9x32xf32>
    %cst_368 = arith.constant dense<0.000000e+00> : vector<9xf32>
    %703 = vector.multi_reduction <add>, %702, %cst_368 [1] : vector<9x32xf32> to vector<9xf32>
    %704 = vector.shape_cast %703 : vector<9xf32> to vector<9x1xf32>
    %cst_369 = arith.constant 3.200000e+01 : f32
    %705 = vector.broadcast %cst_369 : f32 to vector<9x1xf32>
    %706 = arith.divf %704, %705 : vector<9x1xf32>
    %707 = vector.broadcast %699 : vector<9x1xf32> to vector<9x32xf32>
    %708 = arith.subf %691, %707 : vector<9x32xf32>
    %cst_370 = arith.constant 9.99999974E-6 : f32
    %709 = vector.broadcast %cst_370 : f32 to vector<9x1xf32>
    %710 = arith.addf %706, %709 : vector<9x1xf32>
    %711 = math.rsqrt %710 : vector<9x1xf32>
    %712 = vector.broadcast %711 : vector<9x1xf32> to vector<9x32xf32>
    %713 = arith.mulf %708, %712 : vector<9x32xf32>
    %714 = vector.broadcast %693 : vector<1x32xf32> to vector<9x32xf32>
    %715 = arith.mulf %713, %714 : vector<9x32xf32>
    %716 = vector.broadcast %695 : vector<1x32xf32> to vector<9x32xf32>
    %717 = arith.addf %715, %716 : vector<9x32xf32>
    %718 = vector.extract_strided_slice %717 {offsets = [0, 0], sizes = [1, 32], strides = [1, 1]} : vector<9x32xf32> to vector<1x32xf32>
    %cst_371 = arith.constant dense<0.000000e+00> : vector<1x32xf32>
    %719 = tpu.matmul %718, %34, %cst_371 {dimension_numbers = #tpu.dot_dimension_numbers<[1], [0], [0], [1], [0, 0, 1, 1], [], []>} : vector<1x32xf32>, vector<32x32xf32>, vector<1x32xf32> -> vector<1x32xf32>
    %720 = arith.addf %719, %36 : vector<1x32xf32>
    %c0_372 = arith.constant 0 : index
    %c0_373 = arith.constant 0 : index
    %c0_374 = arith.constant 0 : index
    %c0_375 = arith.constant 0 : index
    %721 = vector.load %arg19[%c0_372, %c0_373, %c0_374, %c0_375] : memref<1x2x32x32xf32, #tpu.memory_space<vmem>>, vector<1x1x32x32xf32>
    %722 = vector.shape_cast %721 : vector<1x1x32x32xf32> to vector<32x32xf32>
    %cst_376 = arith.constant dense<0.000000e+00> : vector<1x32xf32>
    %723 = tpu.matmul %720, %722, %cst_376 {dimension_numbers = #tpu.dot_dimension_numbers<[1], [0], [0], [1], [0, 0, 1, 1], [], []>} : vector<1x32xf32>, vector<32x32xf32>, vector<1x32xf32> -> vector<1x32xf32>
    %c0_377 = arith.constant 0 : index
    %c0_378 = arith.constant 0 : index
    %c0_379 = arith.constant 0 : index
    %c0_380 = arith.constant 0 : index
    %724 = vector.load %arg20[%c0_377, %c0_378, %c0_379, %c0_380] : memref<1x2x1x32xf32, #tpu.memory_space<vmem>>, vector<1x1x1x32xf32>
    %725 = vector.shape_cast %724 : vector<1x1x1x32xf32> to vector<1x32xf32>
    %726 = arith.addf %723, %725 : vector<1x32xf32>
    %cst_381 = arith.constant 0.000000e+00 : f32
    %727 = vector.broadcast %cst_381 : f32 to vector<1x32xf32>
    %728 = arith.maximumf %726, %727 : vector<1x32xf32>
    %c0_382 = arith.constant 0 : index
    %c1_383 = arith.constant 1 : index
    %c0_384 = arith.constant 0 : index
    %c0_385 = arith.constant 0 : index
    %729 = vector.load %arg19[%c0_382, %c1_383, %c0_384, %c0_385] : memref<1x2x32x32xf32, #tpu.memory_space<vmem>>, vector<1x1x32x32xf32>
    %730 = vector.shape_cast %729 : vector<1x1x32x32xf32> to vector<32x32xf32>
    %cst_386 = arith.constant dense<0.000000e+00> : vector<1x32xf32>
    %731 = tpu.matmul %728, %730, %cst_386 {dimension_numbers = #tpu.dot_dimension_numbers<[1], [0], [0], [1], [0, 0, 1, 1], [], []>} : vector<1x32xf32>, vector<32x32xf32>, vector<1x32xf32> -> vector<1x32xf32>
    %c0_387 = arith.constant 0 : index
    %c1_388 = arith.constant 1 : index
    %c0_389 = arith.constant 0 : index
    %c0_390 = arith.constant 0 : index
    %732 = vector.load %arg20[%c0_387, %c1_388, %c0_389, %c0_390] : memref<1x2x1x32xf32, #tpu.memory_space<vmem>>, vector<1x1x1x32xf32>
    %733 = vector.shape_cast %732 : vector<1x1x1x32xf32> to vector<1x32xf32>
    %734 = arith.addf %731, %733 : vector<1x32xf32>
    %cst_391 = arith.constant 0.000000e+00 : f32
    %735 = vector.broadcast %cst_391 : f32 to vector<1x32xf32>
    %736 = arith.maximumf %734, %735 : vector<1x32xf32>
    %737 = tpu.concatenate %386, %736 in 0 : vector<1x32xf32>, vector<1x32xf32> -> vector<2x32xf32>
    %c0_392 = arith.constant 0 : index
    %c0_393 = arith.constant 0 : index
    %c0_394 = arith.constant 0 : index
    %738 = vector.load %arg21[%c0_392, %c0_393, %c0_394] : memref<1x2x32xf32, #tpu.memory_space<vmem>>, vector<1x2x32xf32>
    %739 = vector.shape_cast %738 : vector<1x2x32xf32> to vector<2x32xf32>
    %740 = vector.shape_cast %737 : vector<2x32xf32> to vector<1x2x32xf32>
    tpu.vector_store %arg21[%c0_392, %c0_393, %c0_394], %740 {strides = array<i32>} : memref<1x2x32xf32, #tpu.memory_space<vmem>>, vector<1x2x32xf32>,
    return
  }
  func.func @transform_0(%arg0: i32) -> (i32, i32, i32) {
    %c0_i32 = arith.constant 0 : i32
    %c0_i32_0 = arith.constant 0 : i32
    %c0_i32_1 = arith.constant 0 : i32
    %c0_i32_2 = arith.constant 0 : i32
    return %c0_i32, %c0_i32_0, %c0_i32_1 : i32, i32, i32
  }
  func.func @transform_1(%arg0: i32) -> (i32, i32, i32) {
    %c0_i32 = arith.constant 0 : i32
    %c0_i32_0 = arith.constant 0 : i32
    %c0_i32_1 = arith.constant 0 : i32
    %c0_i32_2 = arith.constant 0 : i32
    return %c0_i32, %c0_i32_0, %c0_i32_1 : i32, i32, i32
  }
  func.func @transform_2(%arg0: i32) -> (i32, i32, i32) {
    %c0_i32 = arith.constant 0 : i32
    %c0_i32_0 = arith.constant 0 : i32
    %c0_i32_1 = arith.constant 0 : i32
    return %arg0, %c0_i32, %c0_i32_0 : i32, i32, i32
  }
  func.func @transform_3(%arg0: i32) -> (i32, i32, i32) {
    %c0_i32 = arith.constant 0 : i32
    %c0_i32_0 = arith.constant 0 : i32
    %c0_i32_1 = arith.constant 0 : i32
    return %arg0, %c0_i32, %c0_i32_0 : i32, i32, i32
  }
  func.func @transform_4(%arg0: i32) -> (i32, i32, i32, i32) {
    %c0_i32 = arith.constant 0 : i32
    %c0_i32_0 = arith.constant 0 : i32
    %c0_i32_1 = arith.constant 0 : i32
    %c0_i32_2 = arith.constant 0 : i32
    return %arg0, %c0_i32, %c0_i32_0, %c0_i32_1 : i32, i32, i32, i32
  }
  func.func @transform_5(%arg0: i32) -> (i32, i32, i32, i32) {
    %c0_i32 = arith.constant 0 : i32
    %c0_i32_0 = arith.constant 0 : i32
    %c0_i32_1 = arith.constant 0 : i32
    %c0_i32_2 = arith.constant 0 : i32
    return %arg0, %c0_i32, %c0_i32_0, %c0_i32_1 : i32, i32, i32, i32
  }
  func.func @transform_6(%arg0: i32) -> (i32, i32, i32, i32) {
    %c0_i32 = arith.constant 0 : i32
    %c0_i32_0 = arith.constant 0 : i32
    %c0_i32_1 = arith.constant 0 : i32
    %c0_i32_2 = arith.constant 0 : i32
    return %arg0, %c0_i32, %c0_i32_0, %c0_i32_1 : i32, i32, i32, i32
  }
  func.func @transform_7(%arg0: i32) -> (i32, i32, i32, i32) {
    %c0_i32 = arith.constant 0 : i32
    %c0_i32_0 = arith.constant 0 : i32
    %c0_i32_1 = arith.constant 0 : i32
    %c0_i32_2 = arith.constant 0 : i32
    return %arg0, %c0_i32, %c0_i32_0, %c0_i32_1 : i32, i32, i32, i32
  }
  func.func @transform_8(%arg0: i32) -> (i32, i32, i32, i32) {
    %c0_i32 = arith.constant 0 : i32
    %c0_i32_0 = arith.constant 0 : i32
    %c0_i32_1 = arith.constant 0 : i32
    %c0_i32_2 = arith.constant 0 : i32
    return %arg0, %c0_i32, %c0_i32_0, %c0_i32_1 : i32, i32, i32, i32
  }
  func.func @transform_9(%arg0: i32) -> (i32, i32, i32, i32) {
    %c0_i32 = arith.constant 0 : i32
    %c0_i32_0 = arith.constant 0 : i32
    %c0_i32_1 = arith.constant 0 : i32
    %c0_i32_2 = arith.constant 0 : i32
    return %arg0, %c0_i32, %c0_i32_0, %c0_i32_1 : i32, i32, i32, i32
  }
  func.func @transform_10(%arg0: i32) -> (i32, i32, i32, i32) {
    %c0_i32 = arith.constant 0 : i32
    %c0_i32_0 = arith.constant 0 : i32
    %c0_i32_1 = arith.constant 0 : i32
    %c0_i32_2 = arith.constant 0 : i32
    return %arg0, %c0_i32, %c0_i32_0, %c0_i32_1 : i32, i32, i32, i32
  }
  func.func @transform_11(%arg0: i32) -> (i32, i32, i32, i32) {
    %c0_i32 = arith.constant 0 : i32
    %c0_i32_0 = arith.constant 0 : i32
    %c0_i32_1 = arith.constant 0 : i32
    %c0_i32_2 = arith.constant 0 : i32
    return %arg0, %c0_i32, %c0_i32_0, %c0_i32_1 : i32, i32, i32, i32
  }
  func.func @transform_12(%arg0: i32) -> (i32, i32, i32, i32) {
    %c0_i32 = arith.constant 0 : i32
    %c0_i32_0 = arith.constant 0 : i32
    %c0_i32_1 = arith.constant 0 : i32
    %c0_i32_2 = arith.constant 0 : i32
    return %arg0, %c0_i32, %c0_i32_0, %c0_i32_1 : i32, i32, i32, i32
  }
  func.func @transform_13(%arg0: i32) -> (i32, i32, i32, i32) {
    %c0_i32 = arith.constant 0 : i32
    %c0_i32_0 = arith.constant 0 : i32
    %c0_i32_1 = arith.constant 0 : i32
    %c0_i32_2 = arith.constant 0 : i32
    return %arg0, %c0_i32, %c0_i32_0, %c0_i32_1 : i32, i32, i32, i32
  }
  func.func @transform_14(%arg0: i32) -> (i32, i32, i32, i32) {
    %c0_i32 = arith.constant 0 : i32
    %c0_i32_0 = arith.constant 0 : i32
    %c0_i32_1 = arith.constant 0 : i32
    %c0_i32_2 = arith.constant 0 : i32
    return %arg0, %c0_i32, %c0_i32_0, %c0_i32_1 : i32, i32, i32, i32
  }
  func.func @transform_15(%arg0: i32) -> (i32, i32, i32, i32) {
    %c0_i32 = arith.constant 0 : i32
    %c0_i32_0 = arith.constant 0 : i32
    %c0_i32_1 = arith.constant 0 : i32
    %c0_i32_2 = arith.constant 0 : i32
    return %arg0, %c0_i32, %c0_i32_0, %c0_i32_1 : i32, i32, i32, i32
  }
  func.func @transform_16(%arg0: i32) -> (i32, i32, i32) {
    %c0_i32 = arith.constant 0 : i32
    %c0_i32_0 = arith.constant 0 : i32
    %c0_i32_1 = arith.constant 0 : i32
    return %arg0, %c0_i32, %c0_i32_0 : i32, i32, i32
  }
  func.func @transform_17(%arg0: i32) -> (i32, i32, i32) {
    %c0_i32 = arith.constant 0 : i32
    %c0_i32_0 = arith.constant 0 : i32
    %c0_i32_1 = arith.constant 0 : i32
    return %arg0, %c0_i32, %c0_i32_0 : i32, i32, i32
  }
  func.func @transform_18(%arg0: i32) -> (i32, i32, i32, i32) {
    %c0_i32 = arith.constant 0 : i32
    %c0_i32_0 = arith.constant 0 : i32
    %c0_i32_1 = arith.constant 0 : i32
    %c0_i32_2 = arith.constant 0 : i32
    return %arg0, %c0_i32, %c0_i32_0, %c0_i32_1 : i32, i32, i32, i32
  }
  func.func @transform_19(%arg0: i32) -> (i32, i32, i32, i32) {
    %c0_i32 = arith.constant 0 : i32
    %c0_i32_0 = arith.constant 0 : i32
    %c0_i32_1 = arith.constant 0 : i32
    %c0_i32_2 = arith.constant 0 : i32
    return %arg0, %c0_i32, %c0_i32_0, %c0_i32_1 : i32, i32, i32, i32
  }
  func.func @transform_20(%arg0: i32) -> (i32, i32, i32) {
    %c0_i32 = arith.constant 0 : i32
    %c0_i32_0 = arith.constant 0 : i32
    %c0_i32_1 = arith.constant 0 : i32
    return %arg0, %c0_i32, %c0_i32_0 : i32, i32, i32
  }
}

</mosaic_0001>

<bundles_post_ra>
// kernel: tpu_custom_call.1
= control target key start
LH: loop header
LB: loop body
LE: loop exit
PB: predicated region body
PF: predicated region fallthrough
CT: control target
= control target key end

     0   :  { %s9953_s0 = inlined_call_operand.vmem [shape: f32[2,9,17], index: 0, kind: input, shape index: {}]   ;;  %s9954_s1 = inlined_call_operand.vmem [shape: f32[2,9,9], index: 1, kind: input, shape index: {}]   ;;  %s9955_s2 = inlined_call_operand.vmem [shape: f32[2,17,32], index: 2, kind: input, shape index: {}]   ;;  %s9956_s3 = inlined_call_operand.vmem [shape: f32[2,1,32], index: 3, kind: input, shape index: {}]   ;;  %s9957_s4 = inlined_call_operand.vmem [shape: f32[2,2,32,96], index: 4, kind: input, shape index: {}]   ;;  %s9958_s5 = inlined_call_operand.vmem [shape: f32[2,2,1,96], index: 5, kind: input, shape index: {}]   ;;  %s9959_s6 = inlined_call_operand.vmem [shape: f32[2,2,32,32], index: 6, kind: input, shape index: {}]   ;;  %s9960_s7 = inlined_call_operand.vmem [shape: f32[2,2,1,32], index: 7, kind: input, shape index: {}]   ;;  %s9961_s8 = inlined_call_operand.vmem [shape: f32[2,2,1,32], index: 8, kind: input, shape index: {}]   ;;  %s9962_s9 = inlined_call_operand.vmem [shape: f32[2,2,1,32], index: 9, kind: input, shape index: {}]   ;;  %s9963_s10 = inlined_call_operand.vmem [shape: f32[2,2,32,128], index: 10, kind: input, shape index: {}]   ;;  %s9964_s11 = inlined_call_operand.vmem [shape: f32[2,2,1,128], index: 11, kind: input, shape index: {}]   ;;  %s9965_s12 = inlined_call_operand.vmem [shape: f32[2,2,128,32], index: 12, kind: input, shape index: {}]   ;;  %s9966_s13 = inlined_call_operand.vmem [shape: f32[2,2,1,32], index: 13, kind: input, shape index: {}]   ;;  %s9967_s14 = inlined_call_operand.vmem [shape: f32[2,2,1,32], index: 14, kind: input, shape index: {}]   ;;  %s9968_s15 = inlined_call_operand.vmem [shape: f32[2,2,1,32], index: 15, kind: input, shape index: {}]   ;;  %s9969_s16 = inlined_call_operand.vmem [shape: f32[2,32,32], index: 16, kind: input, shape index: {}]   ;;  %s9970_s17 = inlined_call_operand.vmem [shape: f32[2,1,32], index: 17, kind: input, shape index: {}]   ;;  %s9971_s18 = inlined_call_operand.vmem [shape: f32[2,2,32,32], index: 18, kind: input, shape index: {}]   ;;  %s9972_s19 = inlined_call_operand.vmem [shape: f32[2,2,1,32], index: 19, kind: input, shape index: {}]   ;;  %s9973_s20 = inlined_call_operand.hbm [shape: f32[2,2,32], index: 20, kind: output, shape index: {}]  }
   0x1   :  { %9994 = sst [smem:[#allocation14_spill]] %s9953_s0 }
   0x2   :  { %9995 = sst [smem:[#allocation15_spill]] %s9954_s1 }
   0x3   :  { %9996 = sst [smem:[#allocation16_spill]] %s9955_s2 }
   0x4   :  { %9997 = sst [smem:[#allocation17_spill]] %s9956_s3 }
   0x5   :  { %9998 = sst [smem:[#allocation18_spill]] %s9957_s4 }
   0x6   :  { %9999 = sst [smem:[#allocation19_spill]] %s9958_s5 }
   0x7   :  { %10000 = sst [smem:[#allocation20_spill]] %s9959_s6 }
   0x8   :  { %10001 = sst [smem:[#allocation21_spill]] %s9960_s7 }
   0x9   :  { %10002 = sst [smem:[#allocation22_spill]] %s9961_s8 }
   0xa   :  { %10003 = sst [smem:[#allocation23_spill]] %s9962_s9 }
   0xb   :  { %10004 = sst [smem:[#allocation24_spill]] %s9963_s10 }
   0xc   :  { %10005 = sst [smem:[#allocation25_spill]] %s9964_s11 }
   0xd   :  { %10006 = sst [smem:[#allocation26_spill]] %s9965_s12 }
   0xe   :  { %10007 = sst [smem:[#allocation27_spill]] %s9966_s13 }
   0xf   :  { %10008 = sst [smem:[#allocation28_spill]] %s9967_s14 }
  0x10   :  { %10009 = sst [smem:[#allocation29_spill]] %s9973_s20 }
  0x11   :  { %25 = vsyncpa [#allocation3], 0 }
  0x12   :  { %27 = vsyncpa [#allocation3 + $0x1], 0  ;;  %s8720_s1 = smov 0   ;;  %s8722_s22 = smov 0  }
  0x13   :  { %s8724_s23 = smov 0   ;;  %s8726_s24 = smov 0  }
  0x14 LB: > { %10010 = sst [smem:[#allocation5_spill]] %s8594_s1  ;;  %s8741_s2 = sadd.s32 4294967295, %s8606_s24   ;;  %s8606_s24 = sphi %s8726_s24, %s10052_s24   ;;  %s8602_s23 = sphi %s8724_s23, %s10054_s23   ;;  %s8598_s22 = sphi %s8722_s22, %s10056_s22   ;;  %s8594_s1 = sphi %s8720_s1, %s10055_s1  }
  0x15   : > { %10011 = sst [smem:[#allocation6_spill]] %s8602_s23  ;;  %s6677_s25 = sadd.s32 4294967294, %s8606_s24  }
  0x16   : > { %10012 = sst [smem:[#allocation7_spill]] %s8606_s24  ;;  %s8745_s3 = sadd.s32 1, %s8606_s24  }
  0x17   : > { %10013 = sst [smem:[#allocation8_spill]] %s8745_s3  ;;  %s550_s26 = sadd.s32 1, %s8602_s23 }
  0x18   : > { %s547_s27 = ssub.s32 %s8606_s24, %s8745_s3  ;;  %p560_p0 = scmp.ne.s32.totalorder %s8602_s23, %s8598_s22 }
  0x19   : > { %p548_p1 = scmp.eq.s32.totalorder %s547_s27, 0  ;;  %p561_p2 = scmp.eq.s32.totalorder %s8741_s2, 1 }
  0x1a   : > { %p566_p3 = scmp.ne.s32.totalorder %s8598_s22, %s8594_s1  ;;  %p567_p4 = scmp.eq.s32.totalorder %s6677_s25, 1 }
  0x1b   : > { %s8756_s28 = scalar_select %p548_p1, %s8602_s23, %s550_s26  }
  0x1c   : > { %p8758_p5 = por %p561_p2, %p560_p0  ;;  %p8762_p6 = por %p567_p4, %p566_p3 }
  0x1d   : > { %10014 = sst [smem:[#allocation9_spill]] %s8756_s28  ;;  %p6680_p7 = scmp.ge.s32.totalorder %s8606_s24, 1 }
  0x1e   : > { %s10015_s4 = scalar_select %p8758_p5, 1, 0 }
  0x1f   : > { %s10017_s29 = scalar_select %p8762_p6, 1, 0 }
  0x20   : > { %10016 = sst [smem:[#allocation10_spill]] %s10015_s4  ;;  %p722_p8 = scmp.lt.s32.totalorder %s8606_s24, 3 }
  0x21   : > { %10018 = sst [smem:[#allocation11_spill]] %s10017_s29 }
  0x22   : > { %p723_p9 = pnand %p6680_p7, %p722_p8 }
  0x24   : > { %726 = sbr.rel (%p723_p9) target bundleno = 15474 (0x3c72), region = 100 }
  0x2b   : > { %p852_p10 = scmp.lt.s32.totalorder %s8741_s2, 1  ;;  %s10019_s21 = sld [smem:[#allocation14_spill]]  ;;  %vm970_vm0 = vcmask 138240   ;;  %vm977_vm1 = vcmask 1040384   ;;  %vm1067_vm2 = vcmask 261120   ;;  %v929_v17 = vlaneseq }
  0x2c   : > { %s10020_s3 = sld [smem:[#allocation16_spill]]  ;;  %s10021_s30 = sld [smem:[#allocation18_spill]]  ;;  %v9989_v24 = vmov 0.0   ;;  %vm8855_vm4 = vmpackc.low %vm1067_vm2, %vm1067_vm2  ;;  %vm1248_vm8 = vcmask 65536   ;;  %vm1244_vm9 = vcmask 72704   ;;  %vm8611_vm12 = vmmov 1  }
  0x2d   : > { %s8774_s25 = scalar_select %p852_p10, %s8741_s2, 1  ;;  %v8840_v18 = vand.u32 127, %v929_v17  ;;  %vm8909_vm13 = vmpackc.low %vm977_vm1, %vm8611_vm12 }
  0x2e   : > { %s10022_s28 = sld [smem:[#allocation17_spill]]  ;;  %s10023_s5 = sld [smem:[#allocation19_spill]] }
  0x2f   : > { %s8280_s26 = smul.u32 24, %s8774_s25  ;;  %s8778_s27 = sshll.u32 %s8774_s25, 6  ;;  %vm932_vm3 = vcmp.lt.s32.totalorder %v8840_v18, 8  ;;  %vm941_vm5 = vcmp.ge.s32.totalorder %v8840_v18, 16  ;;  %vm942_vm6 = vcmp.lt.s32.totalorder %v8840_v18, 24  ;;  %vm936_vm10 = vcmp.ge.s32.totalorder %v8840_v18, 8 }
  0x30   : > { %v8845_v25 = vsel %vm932_vm3, 1.0, %v9989_v24  ;;  %vm943_vm7 = vmand %vm941_vm5, %vm942_vm6  ;;  %s10026_s23 = sld [smem:[#allocation15_spill]]  ;;  %vm937_vm11 = vcmp.lt.s32.totalorder %v8840_v18, 16  ;;  %vm946_vm15 = vcmp.ge.s32.totalorder %v8840_v18, 24  ;;  %vm947_vm3 = vcmp.lt.s32.totalorder %v8840_v18, 32  ;;  %s10030_s6 = sld [smem:[#allocation20_spill]] }
  0x31   : > { %v960_v0 = vld [vmem:[%s10019_s21] sm:$0xff]  ;;  %v961_v8 = vld [vmem:[%s10019_s21 + $0x8] sm:$0x1]  ;;  %v8875_v35 = vsel %vm943_vm7, 1.0, %v9989_v24  ;;  %vm938_vm14 = vmand %vm936_vm10, %vm937_vm11  ;;  %s10031_s7 = sld [smem:[#allocation21_spill]]  ;;  %vm2029_vm6 = vcmask 253952  }
  0x32   : > { %7246 = vmatprep.mubr.msk.f32.mxu0 %vm970_vm0, %v960_v0  ;;  %s8783_s29 = scalar_lea.vmem %s10020_s3, %s8280_s26  ;;  %s8789_s0 = scalar_lea.vmem %s10021_s30, %s8778_s27  ;;  %vm948_vm5 = vmand %vm946_vm15, %vm947_vm3  ;;  %vm8613_vm7 = vmmov 0  }
  0x33   : > { %v951_v1 = vld [vmem:[%s8783_s29] sm:$0xff]  ;;  %v952_v2 = vld [vmem:[%s8783_s29 + $0x8] sm:$0xff]  ;;  %v953_v6 = vld [vmem:[%s8783_s29 + $0x10] sm:$0x1]  ;;  %s8832_s30 = sshll.u32 %s8774_s25, 1  ;;  %s9982_s3 = smov 96  }
  0x34   : > { %v8793_v3 = vpack.c.bf16 %v952_v2, %v951_v1  ;;  %v1056_v4 = vld [vmem:[%s8789_s0] sm:$0xff]  ;;  %v1057_v5 = vld [vmem:[%s8789_s0 + $0x8] sm:$0xff]  ;;  %v1058_v9 = vld [vmem:[%s8789_s0 + $0x10] sm:$0xff]  ;;  %s8820_s26 = scalar_lea.vmem %s10022_s28, %s8774_s25  ;;  %s8838_s24 = scalar_lea.vmem %s10023_s5, %s8832_s30 }
  0x35   : > { %v8798_v7 = vpack.c.bf16 %v1057_v5, %v1056_v4  ;;  %v1059_v10 = vld [vmem:[%s8789_s0 + $0x18] sm:$0xff]  ;;  %v6708_v12 = vld [vmem:[%s8820_s26] ss:$0 sm:$0xff]  ;;  %s9985_s5 = smov 64   ;;  %v8931_v5 = vsel %vm938_vm14, 1.0, %v9989_v24  ;;  %s10032_s10 = sld [smem:[#allocation24_spill]] }
  0x36   : > { %7821 = vmatprep.subr.bf16.mxu0 %v8793_v3  ;;  %v8812_v11 = vpack.c.bf16 %v1059_v10, %v1058_v9  ;;  %v6712_v19 = vld [vmem:[%s8838_s24] ss:$0 sm:$0xff]  ;;  %v8892_v39 = vld [vmem:[%s10026_s23 + $0x8] sm:$0x1]  ;;  %s9011_s1 = scalar_lea.vmem %s10030_s6, %s8778_s27  ;;  %s6925_s6 = sshll.u32 %s8774_s25, 8 }
  0x37   : > { %7823 = vmatpush3.bf16.msra.mxu0 %v8793_v3  ;;  %7825 = vmatprep.subr.bf16.mxu1 %v8798_v7  ;;  %s9035_s28 = scalar_lea.vmem %s10031_s7, %s8832_s30  ;;  %s10033_s12 = sld [smem:[#allocation26_spill]] }
  0x38   : > { %7244 = vmatprep.subr.msk.mxu0 %vm977_vm1, %v953_v6  ;;  %7827 = vmatpush3.bf16.msra.mxu1 %v8798_v7  ;;  %s10034_s8 = sld [smem:[#allocation22_spill]]  ;;  %s10035_s9 = sld [smem:[#allocation23_spill]] }
  0x39   : > { %7829 = vmatprep.subr.bf16.mxu1 %v8812_v11  ;;  %s10036_s11 = sld [smem:[#allocation25_spill]]  ;;  %s10037_s13 = sld [smem:[#allocation27_spill]] }
  0x3a   : > { %s10038_s14 = sld [smem:[#allocation28_spill]] }
  0x3b   : > { %7245 = vmatpush3.msk.msra.mxu0 %vm977_vm1, %v953_v6 }
  0x3c   : > { %7247 = vmatmul.mubr.msk.f32.vlgmr.msra.gmra.mrb[0].mxu0 %vm970_vm0, %v961_v8  ;;  %7831 = vmatpush3.bf16.msra.mxu1 %v8812_v11 }
  0x3d   : > { %s9073_s7 = scalar_lea.vmem %s10033_s12, %s6925_s6 }
  0x3e   : > { %s9122_s20 = scalar_lea.vmem %s10034_s8, %s8832_s30  ;;  %s9128_s4 = scalar_lea.vmem %s10035_s9, %s8832_s30 }
  0x3f   : > { %s9146_s6 = scalar_lea.vmem %s10036_s11, %s8832_s30  ;;  %s9153_s9 = scalar_lea.vmem %s10037_s13, %s8832_s30 }
  0x40   : > { %s9182_s11 = scalar_lea.vmem %s9968_s15, %s8832_s30  ;;  %s10039_s8 = smov 96  }
  0x41   : > { %s9472_s13 = scalar_lea.vmem %s9970_s17, %s8774_s25 }
 0x10f   : > { %v7248_v13 = vpop.f32.mrb[0].mxu0 }
 0x110   : > { %v1047_v14 = vpop.f32.mrb[1].mxu0  ;;  %v8825_v16 = vadd.f32 %v7248_v13, %v6708_v12 }
 0x111   : > { %v8823_v15 = vadd.f32 %v6708_v12, %v1047_v14 }
 0x113   : > { %7257 = vmatprep.mubr.msk.f32.mxu1 %vm1067_vm2, %v8823_v15 }
 0x114   : > { %7258 = vmatmul.mubr.msk.f32.vlgmr.msra.gmra.mrb[0].mxu1 %vm1067_vm2, %v8825_v16 }
 0x1e7   : > { %v7259_v20 = vpop.f32.mrb[0].mxu1 }
 0x1e8   : > { %v1146_v21 = vadd.f32 %v7259_v20, %v6712_v19  ;;  %v1140_v22 = vpop.f32.mrb[1].mxu1 }
 0x1e9   : > { %v1141_v23 = vadd.f32 %v6712_v19, %v1140_v22 }
 0x1ea   : > { %v8869_v34 = vmul.f32 0.35355338, %v1146_v21 }
 0x1eb   : > { %v8847_v26 = vmul.f32 0.35355338, %v1141_v23  ;;  %v8326_v27 = vpack.i.bf16 %v1146_v21, %v1141_v23 }
 0x1ec   : > { %v1152_v36 = vmul.f32 %v8845_v25, %v8869_v34  ;;  %v1551_v38 = vmul.f32 %v8875_v35, %v8869_v34  ;;  %v1361_v10 = vmul.f32 %v8931_v5, %v8869_v34 }
 0x1ed   : > { %8327 = vrot.lane.b32.xlu0 %v8326_v27, %s9982_s3  ;;  %v1151_v28 = vmul.f32 %v8845_v25, %v8847_v26  ;;  %v1550_v37 = vmul.f32 %v8875_v35, %v8847_v26  ;;  %s10027_s3 = smov %s10026_s23  ;;  %v1360_v9 = vmul.f32 %v8931_v5, %v8847_v26  ;;  %s9449_s23 = scalar_lea.vmem %s9971_s18, %s8778_s27 }
 0x1ee   : > { %v8897_v40 = vld [vmem:[%s10027_s3] sm:$0xff] }
 0x1ef   : > { %7264 = vmatprep.mubr.msk.f32.mxu0 %vm1067_vm2, %v1151_v28 }
 0x25f   : > { %v8328_v29 = vpop.permute.xlu0 %8327 }
 0x260   : > { %v8330_v30 = vunpack.i.h.bf16 %v8328_v29  ;;  %v8329_v31 = vunpack.i.l.bf16 %v8328_v29 }
 0x262   : > { %v8859_v33 = vpack.c.bf16 %v8330_v30, %v8329_v31 }
 0x264   : > { %7834 = vmatprep.subr.msk.bf16.mxu0 %vm8855_vm4, %v8859_v33 }
 0x265   : > { %7837 = vmatpush3.bf16.xpose.msk.msra.mxu0 %vm8855_vm4, %v8859_v33 }
 0x266   : > { %7858 = vmatprep.subr.msk.bf16.mxu0 %vm8855_vm4, %v8859_v33 }
 0x26c   : > { %7265 = vmatmul.mubr.msk.f32.vlgmr.msra.gmra.mrb[2].mxu0 %vm1067_vm2, %v1152_v36 }
 0x26d   : > { %7861 = vmatpush3.bf16.xpose.msk.msra.mxu0 %vm8855_vm4, %v8859_v33  ;;  %7292 = vmatprep.mubr.msk.f32.mxu0 %vm1067_vm2, %v1550_v37 }
 0x274   : > { %7293 = vmatmul.mubr.msk.f32.vlgmr.msra.gmra.mrb[4].mxu0 %vm1067_vm2, %v1551_v38 }
 0x33f   : > { %v7266_v41 = vpop.f32.mrb[2].mxu0 }
 0x340   : > { %v1241_v42 = vadd.f32 %v7266_v41, %v8892_v39  ;;  %v1235_v43 = vpop.f32.mrb[3].mxu0 }
 0x341   : > { %v1236_v44 = vadd.f32 %v1235_v43, %v8897_v40 }
 0x342   : > { %v1249_v45 = vsel %vm1248_vm8, %v1241_v42, -inf }
 0x343   : > { %1250 = vmax.xlane.f32.xlu1 %v1249_v45  ;;  %v1245_v46 = vsel %vm1244_vm9, %v1236_v44, -inf }
 0x344   : > { %1246 = vmax.xlane.f32.xlu0 %v1245_v46 }
 0x347   : > { %v7294_v47 = vpop.f32.mrb[4].mxu0 }
 0x348   : > { %v1624_v48 = vpop.f32.mrb[5].mxu0 }
 0x349   : > { %v1625_v21 = vadd.f32 %v1624_v48, %v8897_v40 }
 0x34b   : > { %v1633_v28 = vsel %vm1244_vm9, %v1625_v21, -inf }
 0x3d0   : > { %v1251_v49 = vpop.xlane.xlu1 %1250 }
 0x3d1   : > { %v1253_v50 = vsub.f32 %v1241_v42, %v1251_v49  ;;  %v1247_v51 = vpop.xlane.xlu0 %1246 }
 0x3d2   : > { %v1252_v52 = vsub.f32 %v1236_v44, %v1247_v51 }
 0x3d3   : > { %v1256_v53 = vmul.f32 1.442695, %v1253_v50 }
 0x3d4   : > { %v1254_v54 = vmul.f32 1.442695, %v1252_v52 }
 0x3d5   : > { %8366 = vpow2.f32 %v1256_v53 }
 0x3d6   : > { %8368 = vpow2.f32 %v1254_v54 }
 0x3df   : > { %v8367_v55 = vpop.eup %8366 }
 0x3e0   : > { %v1261_v56 = vsel %vm1248_vm8, %v8367_v55, 0.0  ;;  %v8369_v57 = vpop.eup %8368 }
 0x3e1   : > { %1262 = vadd.xlane.f32.xlu1 %v1261_v56  ;;  %v1258_v58 = vsel %vm1244_vm9, %v8369_v57, 0.0 }
 0x3e5   : > { %1259 = vadd.xlane.f32.xlu1 %v1258_v58 }
 0x3f6   : > { %8332 = vrot.lane.b32.xlu1 %v8326_v27, %s9985_s5  ;;  %v1630_v27 = vadd.f32 %v7294_v47, %v8892_v39  ;;  %s9056_s5 = scalar_lea.vmem %s10032_s10, %s8778_s27  ;;  %s10040_s10 = smov 64  }
 0x3f8   : > { %v1636_v29 = vsel %vm1248_vm8, %v1630_v27, -inf }
 0x46e   : > { %v1263_v59 = vpop.xlane.xlu1 %1262 }
 0x46f   : > { %8370 = vrcp.f32 %v1263_v59 }
 0x472   : > { %v1260_v60 = vpop.xlane.xlu1 %1259 }
 0x473   : > { %8372 = vrcp.f32 %v1260_v60 }
 0x476   : > { %v8333_v61 = vpop.permute.xlu1 %8332 }
 0x477   : > { %v8335_v62 = vunpack.i.h.bf16 %v8333_v61  ;;  %v8334_v63 = vunpack.i.l.bf16 %v8333_v61 }
 0x479   : > { %v8913_v1 = vpack.c.bf16 %v8335_v62, %v8334_v63  ;;  %v8371_v2 = vpop.eup %8370 }
 0x47a   : > { %v1267_v8 = vmul.f32 %v8371_v2, %v8367_v55 }
 0x47b   : > { %7840 = vmatprep.subr.msk.bf16.mxu1 %vm8909_vm13, %v8913_v1  ;;  %7876 = vmatprep.subr.msk.bf16.mxu0 %vm8909_vm13, %v8913_v1 }
 0x47c   : > { %7843 = vmatpush3.bf16.msk.msra.mxu1 %vm8909_vm13, %v8913_v1  ;;  %7879 = vmatpush3.bf16.msk.msra.mxu0 %vm8909_vm13, %v8913_v1 }
 0x47d   : > { %v8373_v4 = vpop.eup %8372  ;;  %7846 = vmatprep.subr.msk.bf16.mxu1 %vm8855_vm4, %v8859_v33 }
 0x47e   : > { %v1266_v6 = vmul.f32 %v8373_v4, %v8369_v57 }
 0x480   : > { %7271 = vmatprep.mubr.msk.f32.mxu1 %vm1244_vm9, %v1266_v6  ;;  %v8981_v6 = vsel %vm948_vm5, 1.0, %v9989_v24 }
 0x481   : > { %7272 = vmatmul.mubr.msk.f32.vlgmr.msra.gmra.mrb[2].mxu1 %vm1244_vm9, %v1267_v8 }
 0x482   : > { %7278 = vmatprep.mubr.msk.f32.mxu1 %vm1067_vm2, %v1360_v9  ;;  %v1740_v9 = vmul.f32 %v8981_v6, %v8847_v26 }
 0x485   : > { %7849 = vmatpush3.bf16.xpose.msk.msra.mxu1 %vm8855_vm4, %v8859_v33 }
 0x486   : > { %7852 = vmatprep.subr.msk.bf16.mxu1 %vm8909_vm13, %v8913_v1 }
 0x48c   : > { %7279 = vmatmul.mubr.msk.f32.vlgmr.msra.gmra.mrb[4].mxu1 %vm1067_vm2, %v1361_v10 }
 0x48d   : > { %7855 = vmatpush3.bf16.msk.msra.mxu1 %vm8909_vm13, %v8913_v1 }
 0x48e   : > { %7864 = vmatprep.subr.msk.bf16.mxu1 %vm8909_vm13, %v8913_v1 }
 0x554   : > { %v8953_v12 = vpop.f32.mrb[2].mxu1 }
 0x555   : > { %v8955_v13 = vpop.f32.mrb[3].mxu1 }
 0x55f   : > { %v7280_v14 = vpop.f32.mrb[4].mxu1 }
 0x560   : > { %v1440_v17 = vadd.f32 %v7280_v14, %v8892_v39  ;;  %v1434_v19 = vpop.f32.mrb[5].mxu1  ;;  %v1357_v14 = vmul.f32 %v8953_v12, %v8845_v25 }
 0x561   : > { %v1435_v20 = vadd.f32 %v1434_v19, %v8897_v40  ;;  %v1356_v19 = vmul.f32 %v8845_v25, %v8955_v13 }
 0x562   : > { %v1446_v22 = vsel %vm1248_vm8, %v1440_v17, -inf }
 0x563   : > { %1447 = vmax.xlane.f32.xlu0 %v1446_v22  ;;  %v1443_v23 = vsel %vm1244_vm9, %v1435_v20, -inf }
 0x564   : > { %1444 = vmax.xlane.f32.xlu1 %v1443_v23 }
 0x567   : > { %1634 = vmax.xlane.f32.xlu0 %v1633_v28 }
 0x56b   : > { %1637 = vmax.xlane.f32.xlu0 %v1636_v29 }
 0x5f0   : > { %v1448_v30 = vpop.xlane.xlu0 %1447 }
 0x5f1   : > { %v1450_v31 = vsub.f32 %v1440_v17, %v1448_v30  ;;  %v1445_v36 = vpop.xlane.xlu1 %1444 }
 0x5f2   : > { %v1449_v37 = vsub.f32 %v1435_v20, %v1445_v36 }
 0x5f3   : > { %v1453_v38 = vmul.f32 1.442695, %v1450_v31 }
 0x5f4   : > { %v1451_v41 = vmul.f32 1.442695, %v1449_v37  ;;  %v1635_v42 = vpop.xlane.xlu0 %1634 }
 0x5f5   : > { %v1639_v43 = vsub.f32 %v1625_v21, %v1635_v42 }
 0x5f6   : > { %8374 = vpow2.f32 %v1451_v41 }
 0x5f7   : > { %8376 = vpow2.f32 %v1453_v38  ;;  %v1641_v44 = vmul.f32 1.442695, %v1639_v43 }
 0x5f8   : > { %v1638_v45 = vpop.xlane.xlu0 %1637 }
 0x5f9   : > { %v1640_v46 = vsub.f32 %v1630_v27, %v1638_v45  ;;  %8378 = vpow2.f32 %v1641_v44 }
 0x5fb   : > { %v1643_v47 = vmul.f32 1.442695, %v1640_v46 }
 0x5fd   : > { %8380 = vpow2.f32 %v1643_v47 }
 0x600   : > { %v8375_v48 = vpop.eup %8374 }
 0x601   : > { %v1455_v49 = vsel %vm1244_vm9, %v8375_v48, 0.0  ;;  %v8377_v50 = vpop.eup %8376 }
 0x602   : > { %1456 = vadd.xlane.f32.xlu0 %v1455_v49  ;;  %v1458_v51 = vsel %vm1248_vm8, %v8377_v50, 0.0 }
 0x603   : > { %v8379_v52 = vpop.eup %8378 }
 0x604   : > { %v1645_v53 = vsel %vm1244_vm9, %v8379_v52, 0.0 }
 0x606   : > { %1459 = vadd.xlane.f32.xlu0 %v1458_v51  ;;  %v1931_v51 = vld [vmem:[%s9011_s1 + $0x8] sm:$0xff] }
 0x607   : > { %v8381_v54 = vpop.eup %8380 }
 0x608   : > { %v1648_v55 = vsel %vm1248_vm8, %v8381_v54, 0.0 }
 0x60a   : > { %1646 = vadd.xlane.f32.xlu0 %v1645_v53 }
 0x60e   : > { %1649 = vadd.xlane.f32.xlu0 %v1648_v55 }
 0x68f   : > { %v1457_v56 = vpop.xlane.xlu0 %1456 }
 0x690   : > { %8382 = vrcp.f32 %v1457_v56 }
 0x693   : > { %v1460_v57 = vpop.xlane.xlu0 %1459 }
 0x694   : > { %8384 = vrcp.f32 %v1460_v57 }
 0x697   : > { %v1647_v58 = vpop.xlane.xlu0 %1646 }
 0x698   : > { %8386 = vrcp.f32 %v1647_v58 }
 0x69a   : > { %v8383_v59 = vpop.eup %8382 }
 0x69b   : > { %v1650_v60 = vpop.xlane.xlu0 %1649  ;;  %v1463_v61 = vmul.f32 %v8383_v59, %v8375_v48  ;;  %v1932_v59 = vld [vmem:[%s9011_s1 + $0x10] sm:$0xff] }
 0x69c   : > { %8388 = vrcp.f32 %v1650_v60  ;;  %v1933_v60 = vld [vmem:[%s9011_s1 + $0x18] sm:$0xff] }
 0x69d   : > { %7285 = vmatprep.mubr.msk.f32.mxu1 %vm1244_vm9, %v1463_v61  ;;  %v9023_v61 = vpack.c.bf16 %v1933_v60, %v1932_v59  ;;  %v2176_v60 = vld [vmem:[%s9073_s7 + $0x60] sm:$0xff] }
 0x69e   : > { %v8385_v62 = vpop.eup %8384 }
 0x69f   : > { %v1464_v63 = vmul.f32 %v8385_v62, %v8377_v50  ;;  %v1930_v50 = vld [vmem:[%s9011_s1] sm:$0xff] }
 0x6a1   : > { %7286 = vmatmul.mubr.msk.f32.vlgmr.msra.gmra.mrb[6].mxu1 %vm1244_vm9, %v1464_v63 }
 0x6a2   : > { %v8387_v2 = vpop.eup %8386  ;;  %7867 = vmatpush3.bf16.msk.msra.mxu1 %vm8909_vm13, %v8913_v1  ;;  %v1741_v1 = vmul.f32 %v8981_v6, %v8869_v34 }
 0x6a3   : > { %7870 = vmatprep.subr.msk.bf16.mxu1 %vm8855_vm4, %v8859_v33  ;;  %v1653_v4 = vmul.f32 %v8387_v2, %v8379_v52  ;;  %v9015_v52 = vpack.c.bf16 %v1931_v51, %v1930_v50  ;;  %v2170_v50 = vld [vmem:[%s9073_s7 + $0x30] sm:$0xff]  ;;  %v2171_v51 = vld [vmem:[%s9073_s7 + $0x38] sm:$0xff] }
 0x6a5   : > { %7299 = vmatprep.mubr.msk.f32.mxu1 %vm1244_vm9, %v1653_v4  ;;  %7881 = vmatprep.subr.bf16.mxu0 %v9015_v52 }
 0x6a6   : > { %v8389_v8 = vpop.eup %8388 }
 0x6a7   : > { %v1654_v18 = vmul.f32 %v8389_v8, %v8381_v54 }
 0x6a9   : > { %7300 = vmatmul.mubr.msk.f32.vlgmr.msra.gmra.mrb[8].mxu1 %vm1244_vm9, %v1654_v18 }
 0x6aa   : > { %7306 = vmatprep.mubr.msk.f32.mxu1 %vm1067_vm2, %v1740_v9  ;;  %v6743_v9 = vld [vmem:[%s9035_s28] ss:$0 sm:$0xff] }
 0x6ab   : > { %7873 = vmatpush3.bf16.xpose.msk.msra.mxu1 %vm8855_vm4, %v8859_v33 }
 0x6b2   : > { %7307 = vmatmul.mubr.msk.f32.vlgmr.msra.gmra.mrb[10].mxu1 %vm1067_vm2, %v1741_v1 }
 0x774   : > { %v7287_v10 = vpop.f32.mrb[6].mxu1 }
 0x775   : > { %v1547_v17 = vmul.f32 %v7287_v10, %v8931_v5  ;;  %v1537_v26 = vpop.f32.mrb[7].mxu1 }
 0x776   : > { %v1546_v20 = vmul.f32 %v8931_v5, %v1537_v26 }
 0x777   : > { %v1549_v21 = vadd.f32 %v1547_v17, %v1357_v14 }
 0x778   : > { %v1548_v22 = vadd.f32 %v1546_v20, %v1356_v19 }
 0x77c   : > { %v7301_v33 = vpop.f32.mrb[8].mxu1 }
 0x77d   : > { %v1737_v23 = vmul.f32 %v7301_v33, %v8875_v35  ;;  %v1727_v34 = vpop.f32.mrb[9].mxu1 }
 0x77e   : > { %v1736_v27 = vmul.f32 %v8875_v35, %v1727_v34 }
 0x77f   : > { %v1739_v28 = vadd.f32 %v1737_v23, %v1549_v21 }
 0x780   : > { %v1738_v29 = vadd.f32 %v1736_v27, %v1548_v22 }
 0x785   : > { %v7308_v30 = vpop.f32.mrb[10].mxu1 }
 0x786   : > { %v1820_v12 = vadd.f32 %v7308_v30, %v8892_v39  ;;  %v1814_v31 = vpop.f32.mrb[11].mxu1 }
 0x787   : > { %v1815_v36 = vadd.f32 %v1814_v31, %v8897_v40  ;;  %v2071_v31 = vld [vmem:[%s9056_s5 + $0x8] sm:$0xff] }
 0x788   : > { %v1826_v13 = vsel %vm1248_vm8, %v1820_v12, -inf }
 0x789   : > { %1827 = vmax.xlane.f32.xlu1 %v1826_v13  ;;  %v1823_v37 = vsel %vm1244_vm9, %v1815_v36, -inf  ;;  %v2072_v13 = vld [vmem:[%s9056_s5 + $0x10] sm:$0xff] }
 0x78a   : > { %1824 = vmax.xlane.f32.xlu0 %v1823_v37  ;;  %v2073_v37 = vld [vmem:[%s9056_s5 + $0x18] sm:$0xff] }
 0x816   : > { %v1828_v38 = vpop.xlane.xlu1 %1827 }
 0x817   : > { %v1830_v41 = vsub.f32 %v1820_v12, %v1828_v38  ;;  %v1825_v42 = vpop.xlane.xlu0 %1824  ;;  %v2070_v12 = vld [vmem:[%s9056_s5] sm:$0xff]  ;;  %v9066_v38 = vpack.c.bf16 %v2073_v37, %v2072_v13 }
 0x818   : > { %v1829_v43 = vsub.f32 %v1815_v36, %v1825_v42  ;;  %v9060_v36 = vpack.c.bf16 %v2071_v31, %v2070_v12  ;;  %v2165_v42 = vld [vmem:[%s9073_s7 + $0x8] sm:$0xff]  ;;  %v6751_v37 = vld [vmem:[%s9153_s9] ss:$0 sm:$0xff] }
 0x819   : > { %v1833_v44 = vmul.f32 1.442695, %v1830_v41  ;;  %v2164_v41 = vld [vmem:[%s9073_s7] sm:$0xff] }
 0x81a   : > { %v1831_v45 = vmul.f32 1.442695, %v1829_v43  ;;  %7889 = vmatprep.subr.bf16.mxu1 %v9060_v36  ;;  %v2166_v43 = vld [vmem:[%s9073_s7 + $0x10] sm:$0xff] }
 0x81b   : > { %8390 = vpow2.f32 %v1833_v44  ;;  %7891 = vmatpush3.bf16.msra.mxu1 %v9060_v36  ;;  %v9079_v44 = vpack.c.bf16 %v2165_v42, %v2164_v41 }
 0x81c   : > { %8392 = vpow2.f32 %v1831_v45  ;;  %7893 = vmatprep.subr.bf16.mxu1 %v9066_v38  ;;  %v2167_v45 = vld [vmem:[%s9073_s7 + $0x18] sm:$0xff] }
 0x81f   : > { %7895 = vmatpush3.bf16.msra.mxu1 %v9066_v38 }
 0x825   : > { %v8391_v46 = vpop.eup %8390 }
 0x826   : > { %v8393_v47 = vpop.eup %8392  ;;  %v1838_v48 = vsel %vm1248_vm8, %v8391_v46, 0.0 }
 0x827   : > { %1839 = vadd.xlane.f32.xlu1 %v1838_v48  ;;  %v1835_v49 = vsel %vm1244_vm9, %v8393_v47, 0.0  ;;  %v2169_v48 = vld [vmem:[%s9073_s7 + $0x28] sm:$0xff] }
 0x828   : > { %1836 = vadd.xlane.f32.xlu0 %v1835_v49 }
 0x8b4   : > { %v1840_v53 = vpop.xlane.xlu1 %1839 }
 0x8b5   : > { %8394 = vrcp.f32 %v1840_v53  ;;  %v1837_v54 = vpop.xlane.xlu0 %1836  ;;  %v9095_v53 = vpack.c.bf16 %v2171_v51, %v2170_v50 }
 0x8b6   : > { %8396 = vrcp.f32 %v1837_v54  ;;  %v2172_v54 = vld [vmem:[%s9073_s7 + $0x40] sm:$0xff] }
 0x8bf   : > { %v8395_v55 = vpop.eup %8394 }
 0x8c0   : > { %v8397_v56 = vpop.eup %8396  ;;  %v1844_v58 = vmul.f32 %v8395_v55, %v8391_v46  ;;  %v9082_v46 = vpack.c.bf16 %v2167_v45, %v2166_v43  ;;  %v2173_v55 = vld [vmem:[%s9073_s7 + $0x48] sm:$0xff] }
 0x8c1   : > { %v1843_v57 = vmul.f32 %v8397_v56, %v8393_v47  ;;  %v2168_v47 = vld [vmem:[%s9073_s7 + $0x20] sm:$0xff]  ;;  %v9101_v56 = vpack.c.bf16 %v2173_v55, %v2172_v54 }
 0x8c2   : > { %v9089_v49 = vpack.c.bf16 %v2169_v48, %v2168_v47 }
 0x8c3   : > { %7313 = vmatprep.mubr.msk.f32.mxu0 %vm1244_vm9, %v1843_v57  ;;  %v2174_v57 = vld [vmem:[%s9073_s7 + $0x50] sm:$0xff] }
 0x8c4   : > { %7314 = vmatmul.mubr.msk.f32.vlgmr.msra.gmra.mrb[6].mxu0 %vm1244_vm9, %v1844_v58  ;;  %v2175_v58 = vld [vmem:[%s9073_s7 + $0x58] sm:$0xff] }
 0x8c5   : > { %7883 = vmatpush3.bf16.msra.mxu0 %v9015_v52  ;;  %v9107_v59 = vpack.c.bf16 %v2175_v58, %v2174_v57 }
 0x8c6   : > { %7885 = vmatprep.subr.bf16.mxu0 %v9023_v61 }
 0x8c9   : > { %7887 = vmatpush3.bf16.msra.mxu0 %v9023_v61 }
 0x8ca   : > { %7897 = vmatprep.subr.bf16.mxu0 %v9079_v44 }
 0x997   : > { %v7315_v62 = vpop.f32.mrb[6].mxu0 }
 0x998   : > { %v1927_v63 = vmul.f32 %v7315_v62, %v8981_v6  ;;  %v1917_v2 = vpop.f32.mrb[7].mxu0  ;;  %v2177_v62 = vld [vmem:[%s9073_s7 + $0x68] sm:$0xff] }
 0x999   : > { %v1926_v4 = vmul.f32 %v8981_v6, %v1917_v2 }
 0x99a   : > { %v1929_v8 = vadd.f32 %v1927_v63, %v1739_v28  ;;  %v9113_v63 = vpack.c.bf16 %v2177_v62, %v2176_v60 }
 0x99b   : > { %v1928_v18 = vadd.f32 %v1926_v4, %v1738_v29 }
 0x99d   : > { %7324 = vmatprep.mubr.msk.f32.mxu0 %vm1067_vm2, %v1928_v18 }
 0x99e   : > { %7325 = vmatmul.mubr.msk.f32.vlgmr.msra.gmra.mrb[8].mxu0 %vm1067_vm2, %v1929_v8 }
 0x99f   : > { %7899 = vmatpush3.bf16.msra.mxu0 %v9079_v44 }
 0x9a0   : > { %7901 = vmatprep.subr.bf16.mxu0 %v9082_v46 }
 0x9a3   : > { %7903 = vmatpush3.bf16.msra.mxu0 %v9082_v46 }
 0x9a4   : > { %7905 = vmatprep.subr.bf16.mxu0 %v9089_v49 }
 0x9a7   : > { %7907 = vmatpush3.bf16.msra.mxu0 %v9089_v49 }
 0x9a8   : > { %7909 = vmatprep.subr.bf16.mxu0 %v9095_v53 }
 0x9ab   : > { %7911 = vmatpush3.bf16.msra.mxu0 %v9095_v53 }
 0x9ac   : > { %7913 = vmatprep.subr.bf16.mxu0 %v9101_v56 }
 0x9af   : > { %7915 = vmatpush3.bf16.msra.mxu0 %v9101_v56 }
 0x9b0   : > { %7917 = vmatprep.subr.bf16.mxu0 %v9107_v59 }
 0x9b3   : > { %7919 = vmatpush3.bf16.msra.mxu0 %v9107_v59 }
 0x9b4   : > { %7921 = vmatprep.subr.bf16.mxu0 %v9113_v63 }
 0x9b7   : > { %7923 = vmatpush3.bf16.msra.mxu0 %v9113_v63 }
 0xa71   : > { %v7326_v1 = vpop.f32.mrb[8].mxu0 }
 0xa72   : > { %v2019_v10 = vadd.f32 %v7326_v1, %v6743_v9  ;;  %v2013_v14 = vpop.f32.mrb[9].mxu0 }
 0xa73   : > { %v2014_v17 = vadd.f32 %v6743_v9, %v2013_v14  ;;  %v6746_v14 = vld [vmem:[%s9122_s20] ss:$0 sm:$0xff] }
 0xa74   : > { %v2023_v26 = vadd.f32 %v2019_v10, %v8825_v16 }
 0xa75   : > { %v2022_v19 = vadd.f32 %v2014_v17, %v8823_v15 }
 0xa76   : > { %v2030_v20 = vsel %vm2029_vm6, %v2023_v26, 0.0 }
 0xa77   : > { %2031 = vadd.xlane.f32.xlu1 %v2030_v20  ;;  %v2026_v21 = vsel %vm1067_vm2, %v2022_v19, 0.0  ;;  %v6747_v20 = vld [vmem:[%s9128_s4] ss:$0 sm:$0xff] }
 0xa78   : > { %2027 = vadd.xlane.f32.xlu0 %v2026_v21 }
 0xb04   : > { %v2032_v22 = vpop.xlane.xlu1 %2031 }
 0xb05   : > { %v2035_v33 = vmul.f32 0.03125, %v2032_v22  ;;  %v2028_v23 = vpop.xlane.xlu0 %2027 }
 0xb06   : > { %v2034_v34 = vmul.f32 0.03125, %v2028_v23 }
 0xb07   : > { %v9042_v27 = vsub.f32 %v2023_v26, %v2035_v33 }
 0xb08   : > { %v9044_v28 = vsub.f32 %v2022_v19, %v2034_v34  ;;  %v2178_v34 = vld [vmem:[%s9073_s7 + $0x70] sm:$0xff] }
 0xb09   : > { %v2039_v16 = vmul.f32 %v9042_v27, %v9042_v27 }
 0xb0a   : > { %v2038_v15 = vmul.f32 %v9044_v28, %v9044_v28 }
 0xb0b   : > { %v2043_v29 = vsel %vm2029_vm6, %v2039_v16, 0.0  ;;  %v2179_v16 = vld [vmem:[%s9073_s7 + $0x78] sm:$0xff] }
 0xb0c   : > { %2044 = vadd.xlane.f32.xlu1 %v2043_v29  ;;  %v2040_v30 = vsel %vm1067_vm2, %v2038_v15, 0.0  ;;  %v9138_v15 = vpack.c.bf16 %v2179_v16, %v2178_v34 }
 0xb0d   : > { %2041 = vadd.xlane.f32.xlu0 %v2040_v30 }
 0xb0e   : > { %7925 = vmatprep.subr.bf16.mxu0 %v9138_v15 }
 0xb0f   : > { %7927 = vmatpush3.bf16.msra.mxu0 %v9138_v15 }
 0xb99   : > { %v2045_v2 = vpop.xlane.xlu1 %2044 }
 0xb9a   : > { %v2047_v4 = vmul.f32 0.03125, %v2045_v2  ;;  %v2042_v8 = vpop.xlane.xlu0 %2041 }
 0xb9b   : > { %v2046_v18 = vmul.f32 0.03125, %v2042_v8 }
 0xb9c   : > { %v2049_v9 = vadd.f32 1e-05, %v2047_v4 }
 0xb9d   : > { %v2048_v1 = vadd.f32 1e-05, %v2046_v18 }
 0xb9e   : > { %8398 = vrsqrt.f32 %v2049_v9  ;;  %v6754_v9 = vld [vmem:[%s8789_s0 + $0x20] sm:$0xff] }
 0xb9f   : > { %8400 = vrsqrt.f32 %v2048_v1  ;;  %v6755_v1 = vld [vmem:[%s8789_s0 + $0x28] sm:$0xff] }
 0xba8   : > { %v8399_v10 = vpop.eup %8398 }
 0xba9   : > { %v8401_v17 = vpop.eup %8400  ;;  %v2053_v26 = vmul.f32 %v8399_v10, %v9042_v27  ;;  %v6748_v27 = vld [vmem:[%s9146_s6] ss:$0 sm:$0xff]  ;;  %v9162_v10 = vpack.c.bf16 %v6755_v1, %v6754_v9 }
 0xbaa   : > { %v2052_v19 = vmul.f32 %v8401_v17, %v9044_v28  ;;  %v6757_v17 = vld [vmem:[%s8789_s0 + $0x38] sm:$0xff] }
 0xbab   : > { %v2061_v21 = vmul.f32 %v6746_v14, %v2053_v26  ;;  %7929 = vmatprep.subr.bf16.mxu1 %v9162_v10 }
 0xbac   : > { %v2060_v22 = vmul.f32 %v6746_v14, %v2052_v19  ;;  %v6756_v14 = vld [vmem:[%s8789_s0 + $0x30] sm:$0xff]  ;;  %s9176_s0 = scalar_lea.vmem %s10038_s14, %s8832_s30 }
 0xbad   : > { %v2069_v23 = vadd.f32 %v6747_v20, %v2061_v21  ;;  %v9168_v26 = vpack.c.bf16 %v6757_v17, %v6756_v14  ;;  %v6752_v16 = vld [vmem:[%s9176_s0] ss:$0 sm:$0xff] }
 0xbae   : > { %v2068_v33 = vadd.f32 %v6747_v20, %v2060_v22 }
 0xbb0   : > { %7335 = vmatprep.mubr.msk.f32.mxu1 %vm1067_vm2, %v2068_v33 }
 0xbb1   : > { %7336 = vmatmul.mubr.msk.f32.vlgmr.msra.gmra.mrb[12].mxu1 %vm1067_vm2, %v2069_v23 }
 0xbb2   : > { %7931 = vmatpush3.bf16.msra.mxu1 %v9162_v10 }
 0xbb3   : > { %7933 = vmatprep.subr.bf16.mxu1 %v9168_v26 }
 0xbb6   : > { %7935 = vmatpush3.bf16.msra.mxu1 %v9168_v26 }
 0xc84   : > { %v7337_v28 = vpop.f32.mrb[12].mxu1 }
 0xc85   : > { %v2159_v29 = vadd.f32 %v7337_v28, %v6748_v27  ;;  %v2153_v30 = vpop.f32.mrb[13].mxu1 }
 0xc86   : > { %v2154_v12 = vadd.f32 %v6748_v27, %v2153_v30  ;;  %v6753_v30 = vld [vmem:[%s9182_s11] ss:$0 sm:$0xff] }
 0xc87   : > { %v2163_v13 = vmax.f32 %v2159_v29, 0.0 }
 0xc88   : > { %v2162_v31 = vmax.f32 %v2154_v12, 0.0 }
 0xc8a   : > { %7370 = vmatprep.mubr.f32.mxu0 %v2162_v31 }
 0xc8b   : > { %7371 = vmatmul.mubr.f32.vlgmr.msra.gmra.mrb[10].mxu0 %v2163_v13 }
 0xd5e   : > { %v7372_v41 = vpop.f32.mrb[10].mxu0 }
 0xd5f   : > { %v2259_v42 = vadd.f32 %v7372_v41, %v6751_v37  ;;  %v2253_v43 = vpop.f32.mrb[11].mxu0  ;;  %v6759_v41 = vld [vmem:[%s8838_s24 + $0x1] ss:$0 sm:$0xff] }
 0xd60   : > { %v2254_v45 = vadd.f32 %v6751_v37, %v2253_v43 }
 0xd61   : > { %v2263_v47 = vadd.f32 %v2259_v42, %v2069_v23 }
 0xd62   : > { %v2262_v48 = vadd.f32 %v2254_v45, %v2068_v33 }
 0xd63   : > { %v2269_v50 = vsel %vm2029_vm6, %v2263_v47, 0.0 }
 0xd64   : > { %2270 = vadd.xlane.f32.xlu1 %v2269_v50  ;;  %v2266_v51 = vsel %vm1067_vm2, %v2262_v48, 0.0 }
 0xd65   : > { %2267 = vadd.xlane.f32.xlu0 %v2266_v51 }
 0xdf1   : > { %v2271_v54 = vpop.xlane.xlu1 %2270 }
 0xdf2   : > { %v2273_v55 = vmul.f32 0.03125, %v2271_v54  ;;  %v2268_v57 = vpop.xlane.xlu0 %2267 }
 0xdf3   : > { %v2272_v58 = vmul.f32 0.03125, %v2268_v57 }
 0xdf4   : > { %v2275_v60 = vsub.f32 %v2263_v47, %v2273_v55 }
 0xdf5   : > { %v2274_v62 = vsub.f32 %v2262_v48, %v2272_v58 }
 0xdf6   : > { %v2277_v2 = vmul.f32 %v2275_v60, %v2275_v60 }
 0xdf7   : > { %v2276_v4 = vmul.f32 %v2274_v62, %v2274_v62 }
 0xdf8   : > { %v2281_v8 = vsel %vm2029_vm6, %v2277_v2, 0.0 }
 0xdf9   : > { %2282 = vadd.xlane.f32.xlu1 %v2281_v8  ;;  %v2278_v18 = vsel %vm1067_vm2, %v2276_v4, 0.0 }
 0xdfa   : > { %2279 = vadd.xlane.f32.xlu0 %v2278_v18 }
 0xe86   : > { %v2283_v19 = vpop.xlane.xlu1 %2282 }
 0xe87   : > { %v2285_v20 = vmul.f32 0.03125, %v2283_v19  ;;  %v2280_v21 = vpop.xlane.xlu0 %2279 }
 0xe88   : > { %v2284_v22 = vmul.f32 0.03125, %v2280_v21 }
 0xe89   : > { %v2287_v33 = vadd.f32 1e-05, %v2285_v20 }
 0xe8a   : > { %v2286_v23 = vadd.f32 1e-05, %v2284_v22 }
 0xe8b   : > { %8402 = vrsqrt.f32 %v2287_v33 }
 0xe8c   : > { %8404 = vrsqrt.f32 %v2286_v23 }
 0xe95   : > { %v8403_v34 = vpop.eup %8402 }
 0xe96   : > { %v8405_v27 = vpop.eup %8404  ;;  %v2291_v28 = vmul.f32 %v8403_v34, %v2275_v60 }
 0xe97   : > { %v2290_v29 = vmul.f32 %v8405_v27, %v2274_v62 }
 0xe98   : > { %v2299_v12 = vmul.f32 %v6752_v16, %v2291_v28 }
 0xe99   : > { %v2298_v31 = vmul.f32 %v6752_v16, %v2290_v29 }
 0xe9a   : > { %v9188_v37 = vadd.f32 %v6753_v30, %v2299_v12 }
 0xe9b   : > { %v9186_v13 = vadd.f32 %v6753_v30, %v2298_v31 }
 0xe9d   : > { %7381 = vmatprep.mubr.msk.f32.mxu1 %vm1067_vm2, %v9186_v13 }
 0xe9e   : > { %7382 = vmatmul.mubr.msk.f32.vlgmr.msra.gmra.mrb[14].mxu1 %vm1067_vm2, %v9188_v37 }
 0xf71   : > { %v7383_v42 = vpop.f32.mrb[14].mxu1 }
 0xf72   : > { %v2399_v43 = vadd.f32 %v7383_v42, %v6759_v41  ;;  %v2393_v45 = vpop.f32.mrb[15].mxu1 }
 0xf73   : > { %v2394_v47 = vadd.f32 %v6759_v41, %v2393_v45 }
 0xf74   : > { %v9218_v62 = vmul.f32 0.35355338, %v2399_v43 }
 0xf75   : > { %v9195_v48 = vmul.f32 0.35355338, %v2394_v47  ;;  %v8336_v50 = vpack.i.bf16 %v2399_v43, %v2394_v47 }
 0xf76   : > { %v2405_v2 = vmul.f32 %v8845_v25, %v9218_v62  ;;  %v2802_v4 = vmul.f32 %v8875_v35, %v9218_v62 }
 0xf77   : > { %8337 = vrot.lane.b32.xlu0 %v8336_v50, %s10039_s8  ;;  %v2404_v51 = vmul.f32 %v8845_v25, %v9195_v48  ;;  %v2801_v54 = vmul.f32 %v8875_v35, %v9195_v48 }
 0xf79   : > { %7388 = vmatprep.mubr.msk.f32.mxu1 %vm1067_vm2, %v2404_v51  ;;  %7416 = vmatprep.mubr.msk.f32.mxu0 %vm1067_vm2, %v2801_v54 }
 0xfe9   : > { %v8338_v55 = vpop.permute.xlu0 %8337 }
 0xfea   : > { %v8340_v57 = vunpack.i.h.bf16 %v8338_v55  ;;  %v8339_v58 = vunpack.i.l.bf16 %v8338_v55  ;;  %v2611_v55 = vmul.f32 %v8931_v5, %v9195_v48 }
 0xfec   : > { %v9204_v60 = vpack.c.bf16 %v8340_v57, %v8339_v58  ;;  %v2612_v57 = vmul.f32 %v8931_v5, %v9218_v62 }
 0xfee   : > { %7938 = vmatprep.subr.msk.bf16.mxu1 %vm8855_vm4, %v9204_v60  ;;  %7962 = vmatprep.subr.msk.bf16.mxu0 %vm8855_vm4, %v9204_v60 }
 0xfef   : > { %7941 = vmatpush3.bf16.xpose.msk.msra.mxu1 %vm8855_vm4, %v9204_v60  ;;  %7965 = vmatpush3.bf16.xpose.msk.msra.mxu0 %vm8855_vm4, %v9204_v60 }
 0xff6   : > { %7389 = vmatmul.mubr.msk.f32.vlgmr.msra.gmra.mrb[16].mxu1 %vm1067_vm2, %v2405_v2  ;;  %7417 = vmatmul.mubr.msk.f32.vlgmr.msra.gmra.mrb[12].mxu0 %vm1067_vm2, %v2802_v4 }
0x10c9   : > { %v7390_v8 = vpop.f32.mrb[16].mxu1  ;;  %v7418_v18 = vpop.f32.mrb[12].mxu0 }
0x10ca   : > { %v2488_v9 = vpop.f32.mrb[17].mxu1  ;;  %v2875_v1 = vpop.f32.mrb[13].mxu0  ;;  %v2494_v17 = vadd.f32 %v7390_v8, %v8892_v39 }
0x10cb   : > { %v2489_v14 = vadd.f32 %v2488_v9, %v8897_v40 }
0x10cc   : > { %v2500_v20 = vsel %vm1248_vm8, %v2494_v17, -inf }
0x10cd   : > { %v2497_v19 = vsel %vm1244_vm9, %v2489_v14, -inf }
0x10ce   : > { %2498 = vmax.xlane.f32.xlu1 %v2497_v19  ;;  %v2876_v19 = vadd.f32 %v2875_v1, %v8897_v40 }
0x10d2   : > { %2501 = vmax.xlane.f32.xlu1 %v2500_v20 }
0x115b   : > { %v2499_v21 = vpop.xlane.xlu1 %2498 }
0x115c   : > { %v2503_v22 = vsub.f32 %v2489_v14, %v2499_v21  ;;  %v2881_v21 = vadd.f32 %v7418_v18, %v8892_v39 }
0x115e   : > { %v2505_v34 = vmul.f32 1.442695, %v2503_v22  ;;  %v2884_v22 = vsel %vm1244_vm9, %v2876_v19, -inf }
0x115f   : > { %v2502_v33 = vpop.xlane.xlu1 %2501 }
0x1160   : > { %v2504_v23 = vsub.f32 %v2494_v17, %v2502_v33  ;;  %v2887_v33 = vsel %vm1248_vm8, %v2881_v21, -inf }
0x1162   : > { %v2507_v16 = vmul.f32 1.442695, %v2504_v23 }
0x1164   : > { %8406 = vpow2.f32 %v2507_v16 }
0x1165   : > { %8408 = vpow2.f32 %v2505_v34 }
0x116e   : > { %v8407_v27 = vpop.eup %8406 }
0x116f   : > { %v2512_v28 = vsel %vm1248_vm8, %v8407_v27, 0.0  ;;  %v8409_v29 = vpop.eup %8408 }
0x1170   : > { %2513 = vadd.xlane.f32.xlu1 %v2512_v28  ;;  %v2509_v30 = vsel %vm1244_vm9, %v8409_v29, 0.0 }
0x1174   : > { %2510 = vadd.xlane.f32.xlu1 %v2509_v30 }
0x1185   : > { %8342 = vrot.lane.b32.xlu1 %v8336_v50, %s10040_s10 }
0x11fd   : > { %v2514_v12 = vpop.xlane.xlu1 %2513 }
0x11fe   : > { %8410 = vrcp.f32 %v2514_v12 }
0x1201   : > { %v2511_v31 = vpop.xlane.xlu1 %2510 }
0x1202   : > { %8412 = vrcp.f32 %v2511_v31 }
0x1205   : > { %v8343_v41 = vpop.permute.xlu1 %8342 }
0x1206   : > { %v8345_v42 = vunpack.i.h.bf16 %v8343_v41  ;;  %v8344_v43 = vunpack.i.l.bf16 %v8343_v41 }
0x1208   : > { %v9233_v45 = vpack.c.bf16 %v8345_v42, %v8344_v43  ;;  %v8411_v47 = vpop.eup %8410 }
0x1209   : > { %v2518_v54 = vmul.f32 %v8411_v47, %v8407_v27 }
0x120a   : > { %7944 = vmatprep.subr.msk.bf16.mxu1 %vm8909_vm13, %v9233_v45  ;;  %7980 = vmatprep.subr.msk.bf16.mxu0 %vm8909_vm13, %v9233_v45 }
0x120b   : > { %7947 = vmatpush3.bf16.msk.msra.mxu1 %vm8909_vm13, %v9233_v45  ;;  %7983 = vmatpush3.bf16.msk.msra.mxu0 %vm8909_vm13, %v9233_v45 }
0x120c   : > { %v8413_v50 = vpop.eup %8412  ;;  %7950 = vmatprep.subr.msk.bf16.mxu1 %vm8855_vm4, %v9204_v60 }
0x120d   : > { %v2517_v51 = vmul.f32 %v8413_v50, %v8409_v29 }
0x120f   : > { %7395 = vmatprep.mubr.msk.f32.mxu1 %vm1244_vm9, %v2517_v51 }
0x1210   : > { %7396 = vmatmul.mubr.msk.f32.vlgmr.msra.gmra.mrb[18].mxu1 %vm1244_vm9, %v2518_v54 }
0x1211   : > { %7402 = vmatprep.mubr.msk.f32.mxu1 %vm1067_vm2, %v2611_v55 }
0x1214   : > { %7953 = vmatpush3.bf16.xpose.msk.msra.mxu1 %vm8855_vm4, %v9204_v60 }
0x1215   : > { %7956 = vmatprep.subr.msk.bf16.mxu1 %vm8909_vm13, %v9233_v45 }
0x121b   : > { %7403 = vmatmul.mubr.msk.f32.vlgmr.msra.gmra.mrb[20].mxu1 %vm1067_vm2, %v2612_v57 }
0x121c   : > { %7959 = vmatpush3.bf16.msk.msra.mxu1 %vm8909_vm13, %v9233_v45 }
0x121d   : > { %7968 = vmatprep.subr.msk.bf16.mxu1 %vm8909_vm13, %v9233_v45 }
0x12e3   : > { %v9270_v58 = vpop.f32.mrb[18].mxu1 }
0x12e4   : > { %v9272_v2 = vpop.f32.mrb[19].mxu1 }
0x12ee   : > { %v7404_v4 = vpop.f32.mrb[20].mxu1 }
0x12ef   : > { %v2691_v8 = vadd.f32 %v7404_v4, %v8892_v39  ;;  %v2685_v9 = vpop.f32.mrb[21].mxu1 }
0x12f0   : > { %v2686_v14 = vadd.f32 %v2685_v9, %v8897_v40 }
0x12f1   : > { %v2697_v17 = vsel %vm1248_vm8, %v2691_v8, -inf }
0x12f2   : > { %2698 = vmax.xlane.f32.xlu1 %v2697_v17  ;;  %v2694_v20 = vsel %vm1244_vm9, %v2686_v14, -inf }
0x12f3   : > { %2695 = vmax.xlane.f32.xlu0 %v2694_v20 }
0x12f7   : > { %2885 = vmax.xlane.f32.xlu0 %v2884_v22 }
0x12fb   : > { %2888 = vmax.xlane.f32.xlu0 %v2887_v33 }
0x137f   : > { %v2699_v23 = vpop.xlane.xlu1 %2698 }
0x1380   : > { %v2701_v34 = vsub.f32 %v2691_v8, %v2699_v23  ;;  %v2696_v16 = vpop.xlane.xlu0 %2695  ;;  %v2991_v23 = vmul.f32 %v8981_v6, %v9195_v48 }
0x1381   : > { %v2700_v27 = vsub.f32 %v2686_v14, %v2696_v16  ;;  %v2608_v16 = vmul.f32 %v9270_v58, %v8845_v25  ;;  %v8522_v58 = vld [vmem:[%s10027_s3 + $0x8] sm:$0x1] }
0x1382   : > { %v2704_v28 = vmul.f32 1.442695, %v2701_v34 }
0x1383   : > { %v2702_v29 = vmul.f32 1.442695, %v2700_v27 }
0x1384   : > { %v2886_v30 = vpop.xlane.xlu0 %2885 }
0x1385   : > { %8414 = vpow2.f32 %v2702_v29  ;;  %v2890_v40 = vsub.f32 %v2876_v19, %v2886_v30 }
0x1386   : > { %8416 = vpow2.f32 %v2704_v28  ;;  %v2607_v28 = vmul.f32 %v8845_v25, %v9272_v2  ;;  %v8523_v2 = vld [vmem:[%s10027_s3] sm:$0xff] }
0x1387   : > { %v2892_v1 = vmul.f32 1.442695, %v2890_v40 }
0x1388   : > { %v2889_v12 = vpop.xlane.xlu0 %2888 }
0x1389   : > { %v2891_v31 = vsub.f32 %v2881_v21, %v2889_v12  ;;  %8418 = vpow2.f32 %v2892_v1 }
0x138b   : > { %v2894_v39 = vmul.f32 1.442695, %v2891_v31 }
0x138d   : > { %8420 = vpow2.f32 %v2894_v39 }
0x138f   : > { %v8415_v18 = vpop.eup %8414 }
0x1390   : > { %v2706_v41 = vsel %vm1244_vm9, %v8415_v18, 0.0  ;;  %v8417_v42 = vpop.eup %8416 }
0x1391   : > { %2707 = vadd.xlane.f32.xlu0 %v2706_v41  ;;  %v2709_v43 = vsel %vm1248_vm8, %v8417_v42, 0.0 }
0x1393   : > { %v8419_v47 = vpop.eup %8418 }
0x1394   : > { %v2896_v51 = vsel %vm1244_vm9, %v8419_v47, 0.0 }
0x1395   : > { %2710 = vadd.xlane.f32.xlu0 %v2709_v43 }
0x1397   : > { %v8421_v50 = vpop.eup %8420 }
0x1398   : > { %v2899_v54 = vsel %vm1248_vm8, %v8421_v50, 0.0 }
0x1399   : > { %2897 = vadd.xlane.f32.xlu0 %v2896_v51  ;;  %2900 = vadd.xlane.f32.xlu1 %v2899_v54 }
0x141e   : > { %v2708_v55 = vpop.xlane.xlu0 %2707 }
0x141f   : > { %8422 = vrcp.f32 %v2708_v55 }
0x1422   : > { %v2711_v57 = vpop.xlane.xlu0 %2710 }
0x1423   : > { %8424 = vrcp.f32 %v2711_v57 }
0x1426   : > { %v2901_v4 = vpop.xlane.xlu1 %2900  ;;  %v2898_v8 = vpop.xlane.xlu0 %2897 }
0x1427   : > { %8426 = vrcp.f32 %v2901_v4 }
0x1428   : > { %8428 = vrcp.f32 %v2898_v8 }
0x1429   : > { %v8423_v9 = vpop.eup %8422 }
0x142a   : > { %v2714_v14 = vmul.f32 %v8423_v9, %v8415_v18 }
0x142c   : > { %7409 = vmatprep.mubr.msk.f32.mxu1 %vm1244_vm9, %v2714_v14 }
0x142d   : > { %v8425_v17 = vpop.eup %8424 }
0x142e   : > { %v2715_v19 = vmul.f32 %v8425_v17, %v8417_v42 }
0x1430   : > { %7410 = vmatmul.mubr.msk.f32.vlgmr.msra.gmra.mrb[22].mxu1 %vm1244_vm9, %v2715_v19 }
0x1431   : > { %v8427_v20 = vpop.eup %8426  ;;  %7971 = vmatpush3.bf16.msk.msra.mxu1 %vm8909_vm13, %v9233_v45  ;;  %v2992_v45 = vmul.f32 %v8981_v6, %v9218_v62 }
0x1432   : > { %v8429_v21 = vpop.eup %8428  ;;  %v2905_v22 = vmul.f32 %v8427_v20, %v8421_v50  ;;  %7974 = vmatprep.subr.msk.bf16.mxu1 %vm8855_vm4, %v9204_v60  ;;  %v6790_v20 = vld [vmem:[%s9011_s1 + $0x20] sm:$0xff] }
0x1433   : > { %v2904_v33 = vmul.f32 %v8429_v21, %v8419_v47  ;;  %v6791_v21 = vld [vmem:[%s9011_s1 + $0x28] sm:$0xff] }
0x1435   : > { %7423 = vmatprep.mubr.msk.f32.mxu1 %vm1244_vm9, %v2904_v33 }
0x1436   : > { %7424 = vmatmul.mubr.msk.f32.vlgmr.msra.gmra.mrb[24].mxu1 %vm1244_vm9, %v2905_v22  ;;  %v9325_v22 = vpack.c.bf16 %v6791_v21, %v6790_v20  ;;  %v6804_v20 = vld [vmem:[%s9056_s5 + $0x30] sm:$0xff]  ;;  %v6805_v21 = vld [vmem:[%s9056_s5 + $0x38] sm:$0xff] }
0x1437   : > { %7430 = vmatprep.mubr.msk.f32.mxu1 %vm1067_vm2, %v2991_v23 }
0x1438   : > { %7985 = vmatprep.subr.bf16.mxu0 %v9325_v22 }
0x143a   : > { %7977 = vmatpush3.bf16.xpose.msk.msra.mxu1 %vm8855_vm4, %v9204_v60 }
0x1441   : > { %7431 = vmatmul.mubr.msk.f32.vlgmr.msra.gmra.mrb[26].mxu1 %vm1067_vm2, %v2992_v45 }
0x1503   : > { %v7411_v34 = vpop.f32.mrb[22].mxu1 }
0x1504   : > { %v2798_v27 = vmul.f32 %v7411_v34, %v8931_v5  ;;  %v2788_v48 = vpop.f32.mrb[23].mxu1 }
0x1505   : > { %v2797_v29 = vmul.f32 %v8931_v5, %v2788_v48  ;;  %v6792_v48 = vld [vmem:[%s9011_s1 + $0x30] sm:$0xff] }
0x1506   : > { %v2800_v30 = vadd.f32 %v2798_v27, %v2608_v16 }
0x1507   : > { %v2799_v40 = vadd.f32 %v2797_v29, %v2607_v28  ;;  %v6793_v28 = vld [vmem:[%s9011_s1 + $0x38] sm:$0xff] }
0x1508   : > { %v9333_v29 = vpack.c.bf16 %v6793_v28, %v6792_v48  ;;  %v6814_v28 = vld [vmem:[%s9073_s7 + $0xa0] sm:$0xff] }
0x1509   : > { %v7425_v60 = vpop.f32.mrb[24].mxu1 }
0x150a   : > { %v2988_v1 = vmul.f32 %v7425_v60, %v8875_v35  ;;  %v2978_v62 = vpop.f32.mrb[25].mxu1 }
0x150b   : > { %v2987_v12 = vmul.f32 %v8875_v35, %v2978_v62 }
0x150c   : > { %v2990_v31 = vadd.f32 %v2988_v1, %v2800_v30 }
0x150d   : > { %v2989_v39 = vadd.f32 %v2987_v12, %v2799_v40 }
0x1514   : > { %v7432_v18 = vpop.f32.mrb[26].mxu1 }
0x1515   : > { %v3071_v41 = vadd.f32 %v8522_v58, %v7432_v18  ;;  %v3065_v42 = vpop.f32.mrb[27].mxu1  ;;  %v6795_v18 = vld [vmem:[%s9035_s28 + $0x1] ss:$0 sm:$0xff] }
0x1516   : > { %v3066_v43 = vadd.f32 %v8523_v2, %v3065_v42 }
0x1517   : > { %v3077_v47 = vsel %vm1248_vm8, %v3071_v41, -inf }
0x1518   : > { %3078 = vmax.xlane.f32.xlu1 %v3077_v47  ;;  %v3074_v50 = vsel %vm1244_vm9, %v3066_v43, -inf }
0x1519   : > { %3075 = vmax.xlane.f32.xlu0 %v3074_v50 }
0x15a5   : > { %v3079_v51 = vpop.xlane.xlu1 %3078 }
0x15a6   : > { %v3081_v54 = vsub.f32 %v3071_v41, %v3079_v51  ;;  %v3076_v55 = vpop.xlane.xlu0 %3075 }
0x15a7   : > { %v3080_v57 = vsub.f32 %v3066_v43, %v3076_v55 }
0x15a8   : > { %v3084_v4 = vmul.f32 1.442695, %v3081_v54 }
0x15a9   : > { %v3082_v8 = vmul.f32 1.442695, %v3080_v57 }
0x15aa   : > { %8430 = vpow2.f32 %v3084_v4 }
0x15ab   : > { %8432 = vpow2.f32 %v3082_v8 }
0x15b4   : > { %v8431_v9 = vpop.eup %8430 }
0x15b5   : > { %v8433_v14 = vpop.eup %8432  ;;  %v3089_v17 = vsel %vm1248_vm8, %v8431_v9, 0.0 }
0x15b6   : > { %3090 = vadd.xlane.f32.xlu1 %v3089_v17  ;;  %v3086_v19 = vsel %vm1244_vm9, %v8433_v14, 0.0  ;;  %v6803_v17 = vld [vmem:[%s9056_s5 + $0x28] sm:$0xff] }
0x15b7   : > { %3087 = vadd.xlane.f32.xlu0 %v3086_v19 }
0x1643   : > { %v3091_v33 = vpop.xlane.xlu1 %3090 }
0x1644   : > { %8434 = vrcp.f32 %v3091_v33  ;;  %v3088_v23 = vpop.xlane.xlu0 %3087  ;;  %v9364_v33 = vpack.c.bf16 %v6805_v21, %v6804_v20  ;;  %v6801_v20 = vld [vmem:[%s9128_s4 + $0x1] ss:$0 sm:$0xff] }
0x1645   : > { %8436 = vrcp.f32 %v3088_v23  ;;  %v6810_v23 = vld [vmem:[%s9073_s7 + $0x80] sm:$0xff] }
0x164e   : > { %v8435_v45 = vpop.eup %8434 }
0x164f   : > { %v8437_v34 = vpop.eup %8436  ;;  %v3095_v27 = vmul.f32 %v8435_v45, %v8431_v9  ;;  %v6811_v45 = vld [vmem:[%s9073_s7 + $0x88] sm:$0xff] }
0x1650   : > { %v3094_v16 = vmul.f32 %v8437_v34, %v8433_v14  ;;  %v6802_v14 = vld [vmem:[%s9056_s5 + $0x20] sm:$0xff]  ;;  %v6812_v34 = vld [vmem:[%s9073_s7 + $0x90] sm:$0xff] }
0x1651   : > { %v9358_v19 = vpack.c.bf16 %v6803_v17, %v6802_v14 }
0x1652   : > { %7437 = vmatprep.mubr.msk.f32.mxu0 %vm1244_vm9, %v3094_v16  ;;  %v9371_v16 = vpack.c.bf16 %v6811_v45, %v6810_v23 }
0x1653   : > { %7438 = vmatmul.mubr.msk.f32.vlgmr.msra.gmra.mrb[14].mxu0 %vm1244_vm9, %v3095_v27  ;;  %7993 = vmatprep.subr.bf16.mxu1 %v9358_v19  ;;  %v6813_v27 = vld [vmem:[%s9073_s7 + $0x98] sm:$0xff] }
0x1654   : > { %7987 = vmatpush3.bf16.msra.mxu0 %v9325_v22  ;;  %7995 = vmatpush3.bf16.msra.mxu1 %v9358_v19  ;;  %v9374_v48 = vpack.c.bf16 %v6813_v27, %v6812_v34  ;;  %v6824_v27 = vld [vmem:[%s9073_s7 + $0xf0] sm:$0xff] }
0x1655   : > { %7989 = vmatprep.subr.bf16.mxu0 %v9333_v29  ;;  %7997 = vmatprep.subr.bf16.mxu1 %v9364_v33 }
0x1658   : > { %7991 = vmatpush3.bf16.msra.mxu0 %v9333_v29  ;;  %7999 = vmatpush3.bf16.msra.mxu1 %v9364_v33 }
0x1659   : > { %8001 = vmatprep.subr.bf16.mxu0 %v9371_v16 }
0x1726   : > { %v7439_v30 = vpop.f32.mrb[14].mxu0 }
0x1727   : > { %v3178_v40 = vmul.f32 %v7439_v30, %v8981_v6  ;;  %v3168_v60 = vpop.f32.mrb[15].mxu0  ;;  %v6815_v30 = vld [vmem:[%s9073_s7 + $0xa8] sm:$0xff] }
0x1728   : > { %v3177_v1 = vmul.f32 %v8981_v6, %v3168_v60  ;;  %v6816_v60 = vld [vmem:[%s9073_s7 + $0xb0] sm:$0xff] }
0x1729   : > { %v3180_v62 = vadd.f32 %v3178_v40, %v2990_v31  ;;  %v9381_v40 = vpack.c.bf16 %v6815_v30, %v6814_v28  ;;  %v6825_v28 = vld [vmem:[%s9073_s7 + $0xf8] sm:$0xff] }
0x172a   : > { %v3179_v12 = vadd.f32 %v3177_v1, %v2989_v39  ;;  %v6817_v1 = vld [vmem:[%s9073_s7 + $0xb8] sm:$0xff]  ;;  %v9418_v30 = vpack.c.bf16 %v6825_v28, %v6824_v27  ;;  %v6830_v28 = vld [vmem:[%s9176_s0 + $0x1] ss:$0 sm:$0xff] }
0x172c   : > { %7448 = vmatprep.mubr.msk.f32.mxu0 %vm1067_vm2, %v3179_v12  ;;  %v6818_v12 = vld [vmem:[%s9073_s7 + $0xc0] sm:$0xff] }
0x172d   : > { %7449 = vmatmul.mubr.msk.f32.vlgmr.msra.gmra.mrb[16].mxu0 %vm1067_vm2, %v3180_v62  ;;  %v9387_v62 = vpack.c.bf16 %v6817_v1, %v6816_v60 }
0x172e   : > { %8003 = vmatpush3.bf16.msra.mxu0 %v9371_v16 }
0x172f   : > { %8005 = vmatprep.subr.bf16.mxu0 %v9374_v48 }
0x1732   : > { %8007 = vmatpush3.bf16.msra.mxu0 %v9374_v48 }
0x1733   : > { %8009 = vmatprep.subr.bf16.mxu0 %v9381_v40 }
0x1736   : > { %8011 = vmatpush3.bf16.msra.mxu0 %v9381_v40 }
0x1737   : > { %8013 = vmatprep.subr.bf16.mxu0 %v9387_v62 }
0x173a   : > { %8015 = vmatpush3.bf16.msra.mxu0 %v9387_v62 }
0x1800   : > { %v7450_v58 = vpop.f32.mrb[16].mxu0 }
0x1801   : > { %v3272_v41 = vadd.f32 %v7450_v58, %v6795_v18  ;;  %v3266_v42 = vpop.f32.mrb[17].mxu0 }
0x1802   : > { %v3267_v2 = vadd.f32 %v6795_v18, %v3266_v42  ;;  %v6819_v18 = vld [vmem:[%s9073_s7 + $0xc8] sm:$0xff]  ;;  %v6821_v42 = vld [vmem:[%s9073_s7 + $0xd8] sm:$0xff] }
0x1803   : > { %v3276_v43 = vadd.f32 %v3272_v41, %v9188_v37  ;;  %v9393_v58 = vpack.c.bf16 %v6819_v18, %v6818_v12  ;;  %v6820_v41 = vld [vmem:[%s9073_s7 + $0xd0] sm:$0xff] }
0x1804   : > { %v3275_v47 = vadd.f32 %v3267_v2, %v9186_v13  ;;  %v9399_v2 = vpack.c.bf16 %v6821_v42, %v6820_v41  ;;  %v6827_v42 = vld [vmem:[%s9153_s9 + $0x1] ss:$0 sm:$0xff] }
0x1805   : > { %v3284_v50 = vsel %vm2029_vm6, %v3276_v43, 0.0  ;;  %8017 = vmatprep.subr.bf16.mxu0 %v9393_v58 }
0x1806   : > { %3285 = vadd.xlane.f32.xlu1 %v3284_v50  ;;  %v3281_v31 = vsel %vm1067_vm2, %v3275_v47, 0.0  ;;  %8019 = vmatpush3.bf16.msra.mxu0 %v9393_v58 }
0x1807   : > { %3282 = vadd.xlane.f32.xlu0 %v3281_v31  ;;  %8021 = vmatprep.subr.bf16.mxu0 %v9399_v2 }
0x180a   : > { %8023 = vmatpush3.bf16.msra.mxu0 %v9399_v2 }
0x1893   : > { %v3286_v39 = vpop.xlane.xlu1 %3285 }
0x1894   : > { %v3288_v51 = vmul.f32 0.03125, %v3286_v39  ;;  %v3283_v54 = vpop.xlane.xlu0 %3282 }
0x1895   : > { %v3287_v55 = vmul.f32 0.03125, %v3283_v54 }
0x1896   : > { %v9346_v57 = vsub.f32 %v3276_v43, %v3288_v51  ;;  %v6822_v43 = vld [vmem:[%s9073_s7 + $0xe0] sm:$0xff] }
0x1897   : > { %v9348_v4 = vsub.f32 %v3275_v47, %v3287_v55  ;;  %v6823_v47 = vld [vmem:[%s9073_s7 + $0xe8] sm:$0xff]  ;;  %s6926_s7 = sshll.u32 %s8774_s25, 5  ;;  %s8614_s25 = smov [#allocation2]  }
0x1898   : > { %v3292_v13 = vmul.f32 %v9346_v57, %v9346_v57  ;;  %v9405_v50 = vpack.c.bf16 %v6823_v47, %v6822_v43  ;;  %s916_s5 = scalar_lea.vmem %s9969_s16, %s6926_s7  ;;  %s8548_s14 = sshll.u32 %s8614_s25, 4  ;;  %s8549_s14 = int_to_ptr.vmem [resolvable:$false] %s8548_s14 }
0x1899   : > { %v3291_v37 = vmul.f32 %v9348_v4, %v9348_v4 }
0x189a   : > { %v3296_v8 = vsel %vm2029_vm6, %v3292_v13, 0.0  ;;  %8025 = vmatprep.subr.bf16.mxu0 %v9405_v50 }
0x189b   : > { %3297 = vadd.xlane.f32.xlu1 %v3296_v8  ;;  %v3293_v9 = vsel %vm1067_vm2, %v3291_v37, 0.0  ;;  %8027 = vmatpush3.bf16.msra.mxu0 %v9405_v50  ;;  %v6800_v8 = vld [vmem:[%s9122_s20 + $0x1] ss:$0 sm:$0xff] }
0x189c   : > { %3294 = vadd.xlane.f32.xlu0 %v3293_v9  ;;  %8029 = vmatprep.subr.bf16.mxu0 %v9418_v30 }
0x189f   : > { %8031 = vmatpush3.bf16.msra.mxu0 %v9418_v30 }
0x18a0   : > { %8055 = vmatprep.subr.bf16.mxu0 %v8798_v7 }
0x1928   : > { %v3298_v31 = vpop.xlane.xlu1 %3297 }
0x1929   : > { %v3300_v39 = vmul.f32 0.03125, %v3298_v31  ;;  %v3295_v51 = vpop.xlane.xlu0 %3294 }
0x192a   : > { %v3299_v54 = vmul.f32 0.03125, %v3295_v51 }
0x192b   : > { %v3302_v55 = vadd.f32 1e-05, %v3300_v39 }
0x192c   : > { %v3301_v13 = vadd.f32 1e-05, %v3299_v54 }
0x192d   : > { %8438 = vrsqrt.f32 %v3302_v55 }
0x192e   : > { %8440 = vrsqrt.f32 %v3301_v13 }
0x1937   : > { %v8439_v37 = vpop.eup %8438 }
0x1938   : > { %v8441_v9 = vpop.eup %8440  ;;  %v3306_v14 = vmul.f32 %v8439_v37, %v9346_v57  ;;  %v6807_v57 = vld [vmem:[%s9146_s6 + $0x1] ss:$0 sm:$0xff] }
0x1939   : > { %v3305_v17 = vmul.f32 %v8441_v9, %v9348_v4 }
0x193a   : > { %v3314_v21 = vmul.f32 %v6800_v8, %v3306_v14  ;;  %v9991_v14 = vmov 0.0|0.0  }
0x193b   : > { %v3313_v23 = vmul.f32 %v6800_v8, %v3305_v17  ;;  %8032 = vmatprep.subr.bf16.mxu1 %v9991_v14  ;;  %v957_v17 = vld [vmem:[%s916_s5 + $0x10] sm:$0xff] }
0x193c   : > { %v3322_v34 = vadd.f32 %v6801_v20, %v3314_v21 }
0x193d   : > { %v3321_v45 = vadd.f32 %v6801_v20, %v3313_v23  ;;  %v958_v20 = vld [vmem:[%s916_s5 + $0x18] sm:$0xff] }
0x193e   : > { %v9439_v21 = vpack.c.bf16 %v958_v20, %v957_v17 }
0x193f   : > { %7459 = vmatprep.mubr.msk.f32.mxu1 %vm1067_vm2, %v3321_v45 }
0x1940   : > { %7460 = vmatmul.mubr.msk.f32.vlgmr.msra.gmra.mrb[28].mxu1 %vm1067_vm2, %v3322_v34 }
0x1941   : > { %7505 = vmatprep.mubr.msk.f32.mxu1 %vm8613_vm7, %v9989_v24 }
0x1a13   : > { %v7461_v4 = vpop.f32.mrb[28].mxu1 }
0x1a14   : > { %v3414_v60 = vadd.f32 %v7461_v4, %v6807_v57  ;;  %v3408_v1 = vpop.f32.mrb[29].mxu1  ;;  %v3623_v4 = vld [vmem:[%s9449_s23] sm:$0xff] }
0x1a15   : > { %v3409_v12 = vadd.f32 %v6807_v57, %v3408_v1  ;;  %v6831_v1 = vld [vmem:[%s9182_s11 + $0x1] ss:$0 sm:$0xff] }
0x1a16   : > { %v3418_v41 = vmax.f32 %v3414_v60, 0.0  ;;  %v3624_v60 = vld [vmem:[%s9449_s23 + $0x8] sm:$0xff] }
0x1a17   : > { %v3417_v18 = vmax.f32 %v3409_v12, 0.0 }
0x1a19   : > { %7494 = vmatprep.mubr.f32.mxu0 %v3417_v18  ;;  %v9455_v18 = vpack.c.bf16 %v3624_v60, %v3623_v4 }
0x1a1a   : > { %7495 = vmatmul.mubr.f32.vlgmr.msra.gmra.mrb[18].mxu0 %v3418_v41 }
0x1a1b   : > { %8057 = vmatpush3.bf16.msra.mxu0 %v8798_v7  ;;  %v955_v7 = vld [vmem:[%s916_s5] sm:$0xff] }
0x1a1c   : > { %8059 = vmatprep.subr.bf16.mxu0 %v8812_v11 }
0x1a1f   : > { %8061 = vmatpush3.bf16.msra.mxu0 %v8812_v11  ;;  %v956_v11 = vld [vmem:[%s916_s5 + $0x8] sm:$0xff]  ;;  %s9494_s5 = scalar_lea.vmem %s9972_s19, %s8832_s30 }
0x1a20   : > { %v9434_v9 = vpack.c.bf16 %v956_v11, %v955_v7  ;;  %v6837_v7 = vld [vmem:[%s9449_s23 + $0x38] sm:$0xff]  ;;  %v3627_v17 = vld [vmem:[%s9494_s5] sm:$0x1] }
0x1a22   : > { %8034 = vmatpush3.bf16.msra.mxu1 %v9434_v9 }
0x1a23   : > { %8035 = vmatprep.subr.bf16.mxu1 %v9991_v14 }
0x1a26   : > { %8037 = vmatpush3.bf16.msra.mxu1 %v9439_v21 }
0x1a27   : > { %8038 = vmatprep.subr.bf16.mxu1 %v9991_v14 }
0x1aed   : > { %v7496_v43 = vpop.f32.mrb[18].mxu0 }
0x1aee   : > { %v3510_v47 = vpop.f32.mrb[19].mxu0  ;;  %v3626_v43 = vld [vmem:[%s9449_s23 + $0x18] sm:$0xff] }
0x1aef   : > { %v3511_v31 = vadd.f32 %v6827_v42, %v3510_v47  ;;  %v3625_v42 = vld [vmem:[%s9449_s23 + $0x10] sm:$0xff] }
0x1af0   : > { %v9464_v47 = vpack.c.bf16 %v3626_v43, %v3625_v42 }
0x1af1   : > { %v3518_v39 = vadd.f32 %v3511_v31, %v3321_v45  ;;  %v6834_v31 = vld [vmem:[%s9449_s23 + $0x20] sm:$0xff] }
0x1af3   : > { %v3523_v51 = vsel %vm1067_vm2, %v3518_v39, 0.0 }
0x1af4   : > { %3524 = vadd.xlane.f32.xlu0 %v3523_v51  ;;  %v959_v51 = vld [vmem:[%s9472_s13] sm:$0x1] }
0x1b81   : > { %v3525_v54 = vpop.xlane.xlu0 %3524 }
0x1b82   : > { %v3526_v55 = vmul.f32 0.03125, %v3525_v54 }
0x1b84   : > { %v3527_v13 = vsub.f32 %v3518_v39, %v3526_v55  ;;  %v6835_v39 = vld [vmem:[%s9449_s23 + $0x28] sm:$0xff] }
0x1b85   : > { %v9477_v55 = vpack.c.bf16 %v6835_v39, %v6834_v31  ;;  %v8526_v31 = vld [vmem:[%s8838_s24] ss:$0 sm:$0xff] }
0x1b86   : > { %v3528_v37 = vmul.f32 %v3527_v13, %v3527_v13 }
0x1b88   : > { %v3529_v8 = vsel %vm1067_vm2, %v3528_v37, 0.0 }
0x1b89   : > { %3530 = vadd.xlane.f32.xlu1 %v3529_v8  ;;  %v6836_v8 = vld [vmem:[%s9449_s23 + $0x30] sm:$0xff] }
0x1b8a   : > { %v9486_v11 = vpack.c.bf16 %v6837_v7, %v6836_v8 }
0x1b8c   : > { %10041 = vst [vmem:[#allocation12_spill] sm:$0xff] %v9486_v11 }
0x1c16   : > { %v3531_v23 = vpop.xlane.xlu1 %3530 }
0x1c17   : > { %v3532_v45 = vmul.f32 0.03125, %v3531_v23 }
0x1c19   : > { %v3533_v34 = vadd.f32 1e-05, %v3532_v45 }
0x1c1b   : > { %8442 = vrsqrt.f32 %v3533_v34 }
0x1c25   : > { %v8443_v27 = vpop.eup %8442 }
0x1c26   : > { %v3535_v57 = vmul.f32 %v8443_v27, %v3527_v13  ;;  %v6840_v27 = vld [vmem:[%s10019_s21 + $0x10] sm:$0xff] }
0x1c28   : > { %v3542_v12 = vmul.f32 %v6830_v28, %v3535_v57  ;;  %v8524_v28 = vld [vmem:[%s8783_s29 + $0x10] sm:$0x1]  ;;  %v6841_v57 = vld [vmem:[%s10019_s21 + $0x18] sm:$0x1] }
0x1c2a   : > { %v3549_v41 = vadd.f32 %v6831_v1, %v3542_v12 }
0x1c2c   : > { %7506 = vmatmul.mubr.msk.f32.vlgmr.msra.gmra.mrb[30].mxu1 %vm1067_vm2, %v3549_v41 }
0x1c2d   : > { %8040 = vmatpush3.bf16.msra.mxu1 %v9455_v18  ;;  %7516 = vmatprep.mubr.msk.f32.mxu1 %vm8613_vm7, %v9989_v24 }
0x1c2e   : > { %8041 = vmatprep.subr.bf16.mxu1 %v9991_v14 }
0x1c31   : > { %8043 = vmatpush3.bf16.msra.mxu1 %v9464_v47 }
0x1c32   : > { %8044 = vmatprep.subr.bf16.mxu1 %v9991_v14 }
0x1cff   : > { %v3619_v54 = vpop.f32.mrb[30].mxu1 }
0x1d00   : > { %v3620_v13 = vadd.f32 %v3619_v54, %v959_v51  ;;  %v7507_v37 = vpop.f32.mrb[31].mxu1 }
0x1d02   : > { %7517 = vmatmul.mubr.msk.f32.vlgmr.msra.gmra.mrb[32].mxu1 %vm1067_vm2, %v3620_v13 }
0x1d03   : > { %8046 = vmatpush3.bf16.msra.mxu1 %v9477_v55  ;;  %7527 = vmatprep.mubr.msk.f32.mxu1 %vm8613_vm7, %v9989_v24 }
0x1d04   : > { %8047 = vmatprep.subr.bf16.mxu1 %v9991_v14 }
0x1d07   : > { %8049 = vmatpush3.bf16.msra.mxu1 %v9486_v11 }
0x1d08   : > { %8051 = vmatprep.subr.bf16.mxu1 %v8793_v3 }
0x1dd5   : > { %v3697_v20 = vpop.f32.mrb[32].mxu1 }
0x1dd6   : > { %v3698_v23 = vadd.f32 %v3697_v20, %v3627_v17  ;;  %v7518_v45 = vpop.f32.mrb[33].mxu1 }
0x1dd8   : > { %v3701_v34 = vmax.f32 %v3698_v23, 0.0 }
0x1dda   : > { %7528 = vmatmul.mubr.msk.f32.vlgmr.msra.gmra.mrb[34].mxu1 %vm1067_vm2, %v3701_v34 }
0x1ddb   : > { %8053 = vmatpush3.bf16.msra.mxu1 %v8793_v3  ;;  %7536 = vmatprep.mubr.msk.f32.mxu1 %vm970_vm0, %v6840_v27  ;;  %v8525_v3 = vld [vmem:[%s8820_s26] ss:$0 sm:$0xff] }
0x1ddc   : > { %7534 = vmatprep.subr.msk.mxu1 %vm977_vm1, %v8524_v28 }
0x1ddf   : > { %7535 = vmatpush3.msk.msra.mxu1 %vm977_vm1, %v8524_v28 }
0x1de0   : > { %7537 = vmatmul.mubr.msk.f32.vlgmr.msra.gmra.mrb[36].mxu1 %vm970_vm0, %v6841_v57  ;;  %v9559_v57 = vld [vmem:[%s10027_s3 + $0x10] sm:$0xff]  ;;  %vm6404_vm0 = vcmask 254976  }
0x1ead   : > { %v9510_v4 = vpop.f32.mrb[34].mxu1 }
0x1eae   : > { %10042 = vst [vmem:[#allocation13_spill] sm:$0xff] %v9510_v4  ;;  %v7529_v60 = vpop.f32.mrb[35].mxu1 }
0x1eb3   : > { %v7538_v1 = vpop.f32.mrb[36].mxu1 }
0x1eb4   : > { %v3861_v12 = vpop.f32.mrb[37].mxu1  ;;  %v9515_v42 = vadd.f32 %v8525_v3, %v7538_v1  ;;  %v9564_v1 = vld [vmem:[%s10027_s3 + $0x18] sm:$0x1] }
0x1eb5   : > { %v9513_v41 = vadd.f32 %v8525_v3, %v3861_v12 }
0x1eb7   : > { %7547 = vmatprep.mubr.msk.f32.mxu0 %vm1067_vm2, %v9513_v41 }
0x1eb8   : > { %7548 = vmatmul.mubr.msk.f32.vlgmr.msra.gmra.mrb[20].mxu0 %vm1067_vm2, %v9515_v42 }
0x1f8b   : > { %v7549_v43 = vpop.f32.mrb[20].mxu0 }
0x1f8c   : > { %v3948_v39 = vadd.f32 %v8526_v31, %v7549_v43  ;;  %v3942_v51 = vpop.f32.mrb[21].mxu0 }
0x1f8d   : > { %v3943_v54 = vadd.f32 %v8526_v31, %v3942_v51 }
0x1f8e   : > { %v9539_v45 = vmul.f32 0.35355338, %v3948_v39 }
0x1f8f   : > { %v9522_v13 = vmul.f32 0.35355338, %v3943_v54  ;;  %v9524_v37 = vpack.i.bf16 %v3948_v39, %v3943_v54 }
0x1f90   : > { %v3954_v34 = vmul.f32 %v8845_v25, %v9539_v45  ;;  %v4161_v28 = vmul.f32 %v8931_v5, %v9539_v45 }
0x1f91   : > { %8347 = vrot.lane.b32.xlu0 %v9524_v37, %s10039_s8  ;;  %v3953_v8 = vmul.f32 %v8845_v25, %v9522_v13  ;;  %v4160_v27 = vmul.f32 %v8931_v5, %v9522_v13 }
0x1f93   : > { %7554 = vmatprep.mubr.msk.f32.mxu1 %vm1067_vm2, %v3953_v8 }
0x2003   : > { %v8348_v7 = vpop.permute.xlu0 %8347 }
0x2004   : > { %v8350_v17 = vunpack.i.h.bf16 %v8348_v7  ;;  %v8349_v20 = vunpack.i.l.bf16 %v8348_v7 }
0x2006   : > { %v9531_v23 = vpack.c.bf16 %v8350_v17, %v8349_v20 }
0x2008   : > { %8064 = vmatprep.subr.msk.bf16.mxu1 %vm8855_vm4, %v9531_v23 }
0x2009   : > { %8067 = vmatpush3.bf16.xpose.msk.msra.mxu1 %vm8855_vm4, %v9531_v23 }
0x200a   : > { %8076 = vmatprep.subr.msk.bf16.mxu1 %vm8855_vm4, %v9531_v23 }
0x2010   : > { %7555 = vmatmul.mubr.msk.f32.vlgmr.msra.gmra.mrb[38].mxu1 %vm1067_vm2, %v3954_v34 }
0x2011   : > { %8079 = vmatpush3.bf16.xpose.msk.msra.mxu1 %vm8855_vm4, %v9531_v23  ;;  %7568 = vmatprep.mubr.msk.f32.mxu1 %vm1067_vm2, %v4160_v27 }
0x2018   : > { %7569 = vmatmul.mubr.msk.f32.vlgmr.msra.gmra.mrb[40].mxu1 %vm1067_vm2, %v4161_v28 }
0x20e3   : > { %v7556_v60 = vpop.f32.mrb[38].mxu1 }
0x20e4   : > { %v4037_v12 = vpop.f32.mrb[39].mxu1  ;;  %v4043_v43 = vadd.f32 %v7556_v60, %v9564_v1 }
0x20e5   : > { %v4038_v3 = vadd.f32 %v9559_v57, %v4037_v12 }
0x20e6   : > { %v4049_v51 = vsel %vm1248_vm8, %v4043_v43, -inf }
0x20e7   : > { %v4046_v31 = vsel %vm1244_vm9, %v4038_v3, -inf }
0x20e8   : > { %4047 = vmax.xlane.f32.xlu1 %v4046_v31 }
0x20eb   : > { %v7570_v39 = vpop.f32.mrb[40].mxu1 }
0x20ec   : > { %v4234_v54 = vpop.f32.mrb[41].mxu1  ;;  %4050 = vmax.xlane.f32.xlu1 %v4049_v51  ;;  %v4240_v7 = vadd.f32 %v7570_v39, %v9564_v1 }
0x20ed   : > { %v4235_v8 = vadd.f32 %v9559_v57, %v4234_v54 }
0x20ee   : > { %v4246_v20 = vsel %vm1248_vm8, %v4240_v7, -inf }
0x20ef   : > { %v4243_v17 = vsel %vm1244_vm9, %v4235_v8, -inf }
0x20f0   : > { %4244 = vmax.xlane.f32.xlu1 %v4243_v17 }
0x20f4   : > { %4247 = vmax.xlane.f32.xlu1 %v4246_v20 }
0x2175   : > { %v4048_v34 = vpop.xlane.xlu1 %4047 }
0x2176   : > { %v4052_v27 = vsub.f32 %v4038_v3, %v4048_v34 }
0x2178   : > { %v4054_v28 = vmul.f32 1.442695, %v4052_v27 }
0x2179   : > { %v4051_v60 = vpop.xlane.xlu1 %4050 }
0x217a   : > { %8444 = vpow2.f32 %v4054_v28  ;;  %v4053_v12 = vsub.f32 %v4043_v43, %v4051_v60 }
0x217c   : > { %v4056_v31 = vmul.f32 1.442695, %v4053_v12 }
0x217d   : > { %v4245_v24 = vpop.xlane.xlu1 %4244 }
0x217e   : > { %8446 = vpow2.f32 %v4056_v31  ;;  %v4249_v51 = vsub.f32 %v4235_v8, %v4245_v24 }
0x2180   : > { %v4251_v39 = vmul.f32 1.442695, %v4249_v51 }
0x2181   : > { %v4248_v14 = vpop.xlane.xlu1 %4247 }
0x2182   : > { %v4250_v54 = vsub.f32 %v4240_v7, %v4248_v14 }
0x2184   : > { %v8445_v4 = vpop.eup %8444  ;;  %v4253_v11 = vmul.f32 1.442695, %v4250_v54 }
0x2185   : > { %v4058_v17 = vsel %vm1244_vm9, %v8445_v4, 0.0 }
0x2186   : > { %8448 = vpow2.f32 %v4253_v11  ;;  %4059 = vadd.xlane.f32.xlu1 %v4058_v17 }
0x2187   : > { %8450 = vpow2.f32 %v4251_v39 }
0x2188   : > { %v8447_v20 = vpop.eup %8446 }
0x2189   : > { %v4061_v3 = vsel %vm1248_vm8, %v8447_v20, 0.0 }
0x218a   : > { %4062 = vadd.xlane.f32.xlu0 %v4061_v3 }
0x2190   : > { %v8449_v34 = vpop.eup %8448 }
0x2191   : > { %v4258_v43 = vsel %vm1248_vm8, %v8449_v34, 0.0  ;;  %v8451_v27 = vpop.eup %8450 }
0x2192   : > { %4259 = vadd.xlane.f32.xlu1 %v4258_v43  ;;  %v4255_v24 = vsel %vm1244_vm9, %v8451_v27, 0.0 }
0x2196   : > { %4256 = vadd.xlane.f32.xlu1 %v4255_v24 }
0x21a7   : > { %8352 = vrot.lane.b32.xlu1 %v9524_v37, %s10040_s10 }
0x2213   : > { %v4060_v14 = vpop.xlane.xlu1 %4059 }
0x2214   : > { %8452 = vrcp.f32 %v4060_v14 }
0x2217   : > { %v4063_v8 = vpop.xlane.xlu0 %4062 }
0x2218   : > { %8454 = vrcp.f32 %v4063_v8 }
0x221e   : > { %v8453_v11 = vpop.eup %8452 }
0x221f   : > { %v4260_v7 = vpop.xlane.xlu1 %4259  ;;  %v4066_v28 = vmul.f32 %v8453_v11, %v8445_v4 }
0x2221   : > { %7561 = vmatprep.mubr.msk.f32.mxu0 %vm1244_vm9, %v4066_v28 }
0x2222   : > { %v8455_v39 = vpop.eup %8454 }
0x2223   : > { %v4257_v60 = vpop.xlane.xlu1 %4256  ;;  %v4067_v37 = vmul.f32 %v8455_v39, %v8447_v20  ;;  %v4350_v20 = vmul.f32 %v8875_v35, %v9522_v13 }
0x2224   : > { %8456 = vrcp.f32 %v4257_v60 }
0x2225   : > { %8458 = vrcp.f32 %v4260_v7 }
0x2227   : > { %v8353_v12 = vpop.permute.xlu1 %8352 }
0x2228   : > { %v8355_v31 = vunpack.i.h.bf16 %v8353_v12  ;;  %v8354_v51 = vunpack.i.l.bf16 %v8353_v12 }
0x222a   : > { %v8068_v54 = vpack.c.bf16 %v8355_v31, %v8354_v51 }
0x222c   : > { %8070 = vmatprep.subr.msk.bf16.mxu0 %vm8909_vm13, %v8068_v54  ;;  %8094 = vmatprep.subr.msk.bf16.mxu1 %vm8909_vm13, %v8068_v54 }
0x222d   : > { %8073 = vmatpush3.bf16.msk.msra.mxu0 %vm8909_vm13, %v8068_v54  ;;  %8097 = vmatpush3.bf16.msk.msra.mxu1 %vm8909_vm13, %v8068_v54 }
0x222e   : > { %v8457_v4 = vpop.eup %8456  ;;  %8082 = vmatprep.subr.msk.bf16.mxu0 %vm8909_vm13, %v8068_v54  ;;  %8100 = vmatprep.subr.msk.bf16.mxu1 %vm8855_vm4, %v9531_v23 }
0x222f   : > { %v8459_v17 = vpop.eup %8458  ;;  %v4263_v3 = vmul.f32 %v8457_v4, %v8451_v27 }
0x2230   : > { %7562 = vmatmul.mubr.msk.f32.vlgmr.msra.gmra.mrb[22].mxu0 %vm1244_vm9, %v4067_v37  ;;  %v4264_v43 = vmul.f32 %v8459_v17, %v8449_v34  ;;  %v4351_v34 = vmul.f32 %v8875_v35, %v9539_v45 }
0x2231   : > { %8085 = vmatpush3.bf16.msk.msra.mxu0 %vm8909_vm13, %v8068_v54  ;;  %7575 = vmatprep.mubr.msk.f32.mxu0 %vm1244_vm9, %v4263_v3 }
0x2232   : > { %8088 = vmatprep.subr.msk.bf16.mxu0 %vm8855_vm4, %v9531_v23 }
0x2234   : > { %7576 = vmatmul.mubr.msk.f32.vlgmr.msra.gmra.mrb[24].mxu0 %vm1244_vm9, %v4264_v43 }
0x2235   : > { %7582 = vmatprep.mubr.msk.f32.mxu0 %vm1067_vm2, %v4350_v20 }
0x223a   : > { %8091 = vmatpush3.bf16.xpose.msk.msra.mxu0 %vm8855_vm4, %v9531_v23 }
0x223b   : > { %8106 = vmatprep.subr.msk.bf16.mxu0 %vm8909_vm13, %v8068_v54 }
0x2241   : > { %7583 = vmatmul.mubr.msk.f32.vlgmr.msra.gmra.mrb[26].mxu0 %vm1067_vm2, %v4351_v34 }
0x2242   : > { %8109 = vmatpush3.bf16.msk.msra.mxu0 %vm8909_vm13, %v8068_v54 }
0x2243   : > { %8111 = vmatprep.subr.bf16.mxu0 %v9015_v52 }
0x2303   : > { %v7563_v27 = vpop.f32.mrb[22].mxu0 }
0x2304   : > { %v4147_v24 = vpop.f32.mrb[23].mxu0  ;;  %v4157_v11 = vmul.f32 %v7563_v27, %v8845_v25 }
0x2305   : > { %v4156_v28 = vmul.f32 %v8845_v25, %v4147_v24 }
0x2307   : > { %v7577_v14 = vpop.f32.mrb[24].mxu0 }
0x2308   : > { %v4347_v8 = vmul.f32 %v7577_v14, %v8931_v5  ;;  %v4337_v7 = vpop.f32.mrb[25].mxu0 }
0x2309   : > { %v4346_v60 = vmul.f32 %v8931_v5, %v4337_v7 }
0x230a   : > { %v4349_v12 = vadd.f32 %v4347_v8, %v4157_v11 }
0x230b   : > { %v4348_v31 = vadd.f32 %v4346_v60, %v4156_v28 }
0x2314   : > { %v7584_v51 = vpop.f32.mrb[26].mxu0 }
0x2315   : > { %v4430_v39 = vadd.f32 %v7584_v51, %v9564_v1  ;;  %v4424_v54 = vpop.f32.mrb[27].mxu0 }
0x2316   : > { %v4425_v4 = vadd.f32 %v9559_v57, %v4424_v54 }
0x2317   : > { %v4436_v37 = vsel %vm1248_vm8, %v4430_v39, -inf }
0x2318   : > { %4437 = vmax.xlane.f32.xlu0 %v4436_v37  ;;  %v4433_v17 = vsel %vm1244_vm9, %v4425_v4, -inf  ;;  %v4540_v37 = vmul.f32 %v8981_v6, %v9522_v13 }
0x2319   : > { %4434 = vmax.xlane.f32.xlu1 %v4433_v17  ;;  %v4541_v17 = vmul.f32 %v8981_v6, %v9539_v45 }
0x23a5   : > { %v4438_v3 = vpop.xlane.xlu0 %4437 }
0x23a6   : > { %v4440_v43 = vsub.f32 %v4430_v39, %v4438_v3  ;;  %v4435_v20 = vpop.xlane.xlu1 %4434 }
0x23a7   : > { %v4439_v34 = vsub.f32 %v4425_v4, %v4435_v20 }
0x23a8   : > { %v4443_v27 = vmul.f32 1.442695, %v4440_v43 }
0x23a9   : > { %v4441_v24 = vmul.f32 1.442695, %v4439_v34 }
0x23ab   : > { %8460 = vpow2.f32 %v4441_v24 }
0x23ac   : > { %8462 = vpow2.f32 %v4443_v27 }
0x23b5   : > { %v8461_v14 = vpop.eup %8460 }
0x23b6   : > { %v4445_v11 = vsel %vm1244_vm9, %v8461_v14, 0.0  ;;  %v8463_v8 = vpop.eup %8462 }
0x23b7   : > { %4446 = vadd.xlane.f32.xlu0 %v4445_v11  ;;  %v4448_v7 = vsel %vm1248_vm8, %v8463_v8, 0.0 }
0x23bb   : > { %4449 = vadd.xlane.f32.xlu0 %v4448_v7 }
0x2444   : > { %v4447_v28 = vpop.xlane.xlu0 %4446 }
0x2445   : > { %8464 = vrcp.f32 %v4447_v28 }
0x2448   : > { %v4450_v60 = vpop.xlane.xlu0 %4449 }
0x2449   : > { %8466 = vrcp.f32 %v4450_v60 }
0x244f   : > { %v8465_v51 = vpop.eup %8464 }
0x2450   : > { %v4453_v39 = vmul.f32 %v8465_v51, %v8461_v14 }
0x2452   : > { %7589 = vmatprep.mubr.msk.f32.mxu1 %vm1244_vm9, %v4453_v39 }
0x2453   : > { %v8467_v54 = vpop.eup %8466 }
0x2454   : > { %v4454_v4 = vmul.f32 %v8467_v54, %v8463_v8 }
0x2456   : > { %7590 = vmatmul.mubr.msk.f32.vlgmr.msra.gmra.mrb[42].mxu1 %vm1244_vm9, %v4454_v4 }
0x2457   : > { %8103 = vmatpush3.bf16.xpose.msk.msra.mxu1 %vm8855_vm4, %v9531_v23  ;;  %7596 = vmatprep.mubr.msk.f32.mxu1 %vm1067_vm2, %v4540_v37 }
0x2458   : > { %8119 = vmatprep.subr.bf16.mxu1 %v9060_v36 }
0x245e   : > { %7597 = vmatmul.mubr.msk.f32.vlgmr.msra.gmra.mrb[44].mxu1 %vm1067_vm2, %v4541_v17 }
0x245f   : > { %8121 = vmatpush3.bf16.msra.mxu1 %v9060_v36 }
0x2460   : > { %8123 = vmatprep.subr.bf16.mxu1 %v9066_v38 }
0x2463   : > { %8125 = vmatpush3.bf16.msra.mxu1 %v9066_v38 }
0x2464   : > { %8159 = vmatprep.subr.bf16.mxu1 %v9162_v10 }
0x2529   : > { %v7591_v13 = vpop.f32.mrb[42].mxu1 }
0x252a   : > { %v4537_v23 = vmul.f32 %v7591_v13, %v8875_v35  ;;  %v4527_v3 = vpop.f32.mrb[43].mxu1 }
0x252b   : > { %v4536_v43 = vmul.f32 %v8875_v35, %v4527_v3 }
0x252c   : > { %v4539_v20 = vadd.f32 %v4537_v23, %v4349_v12 }
0x252d   : > { %v4538_v34 = vadd.f32 %v4536_v43, %v4348_v31 }
0x2531   : > { %v7598_v27 = vpop.f32.mrb[44].mxu1 }
0x2532   : > { %v4614_v45 = vpop.f32.mrb[45].mxu1  ;;  %v4620_v36 = vadd.f32 %v7598_v27, %v9564_v1 }
0x2533   : > { %v4615_v24 = vadd.f32 %v9559_v57, %v4614_v45 }
0x2534   : > { %v4626_v38 = vsel %vm1248_vm8, %v4620_v36, -inf }
0x2535   : > { %v4623_v14 = vsel %vm1244_vm9, %v4615_v24, -inf }
0x2536   : > { %4624 = vmax.xlane.f32.xlu0 %v4623_v14 }
0x253a   : > { %4627 = vmax.xlane.f32.xlu0 %v4626_v38 }
0x25c3   : > { %v4625_v11 = vpop.xlane.xlu0 %4624 }
0x25c4   : > { %v4629_v8 = vsub.f32 %v4615_v24, %v4625_v11 }
0x25c6   : > { %v4631_v7 = vmul.f32 1.442695, %v4629_v8 }
0x25c7   : > { %v4628_v28 = vpop.xlane.xlu0 %4627 }
0x25c8   : > { %8468 = vpow2.f32 %v4631_v7  ;;  %v4630_v60 = vsub.f32 %v4620_v36, %v4628_v28 }
0x25ca   : > { %v4633_v12 = vmul.f32 1.442695, %v4630_v60 }
0x25cc   : > { %8470 = vpow2.f32 %v4633_v12 }
0x25d2   : > { %v8469_v31 = vpop.eup %8468 }
0x25d3   : > { %v4635_v51 = vsel %vm1244_vm9, %v8469_v31, 0.0 }
0x25d4   : > { %4636 = vadd.xlane.f32.xlu0 %v4635_v51 }
0x25d6   : > { %v8471_v39 = vpop.eup %8470 }
0x25d7   : > { %v4638_v54 = vsel %vm1248_vm8, %v8471_v39, 0.0 }
0x25d8   : > { %4639 = vadd.xlane.f32.xlu0 %v4638_v54 }
0x2661   : > { %v4637_v4 = vpop.xlane.xlu0 %4636 }
0x2662   : > { %8472 = vrcp.f32 %v4637_v4 }
0x2665   : > { %v4640_v37 = vpop.xlane.xlu0 %4639 }
0x2666   : > { %8474 = vrcp.f32 %v4640_v37 }
0x266c   : > { %v8473_v17 = vpop.eup %8472 }
0x266d   : > { %v4643_v13 = vmul.f32 %v8473_v17, %v8469_v31 }
0x266f   : > { %7603 = vmatprep.mubr.msk.f32.mxu0 %vm1244_vm9, %v4643_v13 }
0x2670   : > { %v8475_v23 = vpop.eup %8474 }
0x2671   : > { %v4644_v3 = vmul.f32 %v8475_v23, %v8471_v39  ;;  %v8528_v23 = vld [vmem:[%s9122_s20] ss:$0 sm:$0xff] }
0x2673   : > { %7604 = vmatmul.mubr.msk.f32.vlgmr.msra.gmra.mrb[28].mxu0 %vm1244_vm9, %v4644_v3 }
0x2674   : > { %8113 = vmatpush3.bf16.msra.mxu0 %v9015_v52 }
0x2675   : > { %8115 = vmatprep.subr.bf16.mxu0 %v9023_v61 }
0x2678   : > { %8117 = vmatpush3.bf16.msra.mxu0 %v9023_v61  ;;  %v8527_v61 = vld [vmem:[%s9035_s28] ss:$0 sm:$0xff] }
0x2679   : > { %8127 = vmatprep.subr.bf16.mxu0 %v9079_v44 }
0x2746   : > { %v7605_v43 = vpop.f32.mrb[28].mxu0 }
0x2747   : > { %v4727_v27 = vmul.f32 %v7605_v43, %v8981_v6  ;;  %v4717_v45 = vpop.f32.mrb[29].mxu0 }
0x2748   : > { %v4726_v24 = vmul.f32 %v8981_v6, %v4717_v45 }
0x2749   : > { %v4729_v36 = vadd.f32 %v4727_v27, %v4539_v20  ;;  %v8529_v27 = vld [vmem:[%s9128_s4] ss:$0 sm:$0xff] }
0x274a   : > { %v4728_v14 = vadd.f32 %v4726_v24, %v4538_v34 }
0x274c   : > { %7614 = vmatprep.mubr.msk.f32.mxu0 %vm1067_vm2, %v4728_v14  ;;  %v8530_v14 = vld [vmem:[%s9146_s6] ss:$0 sm:$0xff] }
0x274d   : > { %7615 = vmatmul.mubr.msk.f32.vlgmr.msra.gmra.mrb[30].mxu0 %vm1067_vm2, %v4729_v36 }
0x274e   : > { %8129 = vmatpush3.bf16.msra.mxu0 %v9079_v44 }
0x274f   : > { %8131 = vmatprep.subr.bf16.mxu0 %v9082_v46 }
0x2752   : > { %8133 = vmatpush3.bf16.msra.mxu0 %v9082_v46 }
0x2753   : > { %8135 = vmatprep.subr.bf16.mxu0 %v9089_v49 }
0x2756   : > { %8137 = vmatpush3.bf16.msra.mxu0 %v9089_v49 }
0x2757   : > { %8139 = vmatprep.subr.bf16.mxu0 %v9095_v53 }
0x275a   : > { %8141 = vmatpush3.bf16.msra.mxu0 %v9095_v53 }
0x275b   : > { %8143 = vmatprep.subr.bf16.mxu0 %v9101_v56 }
0x275e   : > { %8145 = vmatpush3.bf16.msra.mxu0 %v9101_v56 }
0x275f   : > { %8147 = vmatprep.subr.bf16.mxu0 %v9107_v59 }
0x2762   : > { %8149 = vmatpush3.bf16.msra.mxu0 %v9107_v59 }
0x2763   : > { %8151 = vmatprep.subr.bf16.mxu0 %v9113_v63 }
0x2766   : > { %8153 = vmatpush3.bf16.msra.mxu0 %v9113_v63 }
0x2767   : > { %8155 = vmatprep.subr.bf16.mxu0 %v9138_v15 }
0x276a   : > { %8157 = vmatpush3.bf16.msra.mxu0 %v9138_v15 }
0x2820   : > { %v7616_v52 = vpop.f32.mrb[30].mxu0 }
0x2821   : > { %v4808_v44 = vadd.f32 %v8527_v61, %v7616_v52  ;;  %v4802_v46 = vpop.f32.mrb[31].mxu0 }
0x2822   : > { %v4803_v49 = vadd.f32 %v8527_v61, %v4802_v46 }
0x2823   : > { %v4812_v53 = vadd.f32 %v4808_v44, %v9515_v42 }
0x2824   : > { %v4811_v56 = vadd.f32 %v4803_v49, %v9513_v41 }
0x2825   : > { %v4816_v20 = vsel %vm2029_vm6, %v4812_v53, 0.0 }
0x2826   : > { %4817 = vadd.xlane.f32.xlu1 %v4816_v20  ;;  %v4813_v59 = vsel %vm1067_vm2, %v4811_v56, 0.0 }
0x2827   : > { %4814 = vadd.xlane.f32.xlu0 %v4813_v59 }
0x28b3   : > { %v4818_v63 = vpop.xlane.xlu1 %4817 }
0x28b4   : > { %v4820_v34 = vmul.f32 0.03125, %v4818_v63  ;;  %v4815_v38 = vpop.xlane.xlu0 %4814 }
0x28b5   : > { %v4819_v11 = vmul.f32 0.03125, %v4815_v38 }
0x28b6   : > { %v4822_v15 = vsub.f32 %v4812_v53, %v4820_v34 }
0x28b7   : > { %v4821_v8 = vsub.f32 %v4811_v56, %v4819_v11  ;;  %v8531_v56 = vld [vmem:[%s9153_s9] ss:$0 sm:$0xff] }
0x28b8   : > { %v4824_v7 = vmul.f32 %v4822_v15, %v4822_v15 }
0x28b9   : > { %v4823_v28 = vmul.f32 %v4821_v8, %v4821_v8 }
0x28ba   : > { %v4828_v60 = vsel %vm2029_vm6, %v4824_v7, 0.0 }
0x28bb   : > { %4829 = vadd.xlane.f32.xlu1 %v4828_v60  ;;  %v4825_v41 = vsel %vm1067_vm2, %v4823_v28, 0.0 }
0x28bc   : > { %4826 = vadd.xlane.f32.xlu0 %v4825_v41 }
0x2948   : > { %v4830_v42 = vpop.xlane.xlu1 %4829 }
0x2949   : > { %v4832_v12 = vmul.f32 0.03125, %v4830_v42  ;;  %v4827_v31 = vpop.xlane.xlu0 %4826 }
0x294a   : > { %v4831_v51 = vmul.f32 0.03125, %v4827_v31 }
0x294b   : > { %v4834_v39 = vadd.f32 1e-05, %v4832_v12 }
0x294c   : > { %v4833_v54 = vadd.f32 1e-05, %v4831_v51 }
0x294d   : > { %8476 = vrsqrt.f32 %v4834_v39 }
0x294e   : > { %8478 = vrsqrt.f32 %v4833_v54 }
0x2957   : > { %v8477_v4 = vpop.eup %8476 }
0x2958   : > { %v8479_v37 = vpop.eup %8478  ;;  %v4838_v17 = vmul.f32 %v8477_v4, %v4822_v15 }
0x2959   : > { %v4837_v13 = vmul.f32 %v8479_v37, %v4821_v8 }
0x295a   : > { %v4840_v3 = vmul.f32 %v8528_v23, %v4838_v17 }
0x295b   : > { %v4839_v43 = vmul.f32 %v8528_v23, %v4837_v13 }
0x295c   : > { %v4842_v24 = vadd.f32 %v8529_v27, %v4840_v3 }
0x295d   : > { %v4841_v45 = vadd.f32 %v8529_v27, %v4839_v43  ;;  %v8532_v27 = vld [vmem:[%s9176_s0] ss:$0 sm:$0xff] }
0x295f   : > { %7625 = vmatprep.mubr.msk.f32.mxu1 %vm1067_vm2, %v4841_v45 }
0x2960   : > { %7626 = vmatmul.mubr.msk.f32.vlgmr.msra.gmra.mrb[46].mxu1 %vm1067_vm2, %v4842_v24 }
0x2961   : > { %8161 = vmatpush3.bf16.msra.mxu1 %v9162_v10 }
0x2962   : > { %8163 = vmatprep.subr.bf16.mxu1 %v9168_v26 }
0x2965   : > { %8165 = vmatpush3.bf16.msra.mxu1 %v9168_v26 }
0x2a33   : > { %v7627_v36 = vpop.f32.mrb[46].mxu1 }
0x2a34   : > { %v4921_v52 = vadd.f32 %v8530_v14, %v7627_v36  ;;  %v4915_v61 = vpop.f32.mrb[47].mxu1  ;;  %v8533_v36 = vld [vmem:[%s9182_s11] ss:$0 sm:$0xff] }
0x2a35   : > { %v4916_v44 = vadd.f32 %v8530_v14, %v4915_v61 }
0x2a36   : > { %v4925_v49 = vmax.f32 %v4921_v52, 0.0 }
0x2a37   : > { %v4924_v46 = vmax.f32 %v4916_v44, 0.0  ;;  %v8534_v44 = vld [vmem:[%s8838_s24 + $0x1] ss:$0 sm:$0xff]  ;;  %s6919_s24 = sshll.u32 %s8741_s2, 5 }
0x2a39   : > { %7660 = vmatprep.mubr.f32.mxu0 %v4924_v46 }
0x2a3a   : > { %7661 = vmatmul.mubr.f32.vlgmr.msra.gmra.mrb[32].mxu0 %v4925_v49 }
0x2b0d   : > { %v7662_v53 = vpop.f32.mrb[32].mxu0 }
0x2b0e   : > { %v4998_v20 = vadd.f32 %v8531_v56, %v7662_v53  ;;  %v4992_v59 = vpop.f32.mrb[33].mxu0 }
0x2b0f   : > { %v4993_v63 = vadd.f32 %v8531_v56, %v4992_v59 }
0x2b10   : > { %v5002_v34 = vadd.f32 %v4998_v20, %v4842_v24 }
0x2b11   : > { %v5001_v10 = vadd.f32 %v4993_v63, %v4841_v45 }
0x2b12   : > { %v5006_v38 = vsel %vm2029_vm6, %v5002_v34, 0.0 }
0x2b13   : > { %5007 = vadd.xlane.f32.xlu1 %v5006_v38  ;;  %v5003_v26 = vsel %vm1067_vm2, %v5001_v10, 0.0 }
0x2b14   : > { %5004 = vadd.xlane.f32.xlu0 %v5003_v26 }
0x2ba0   : > { %v5008_v11 = vpop.xlane.xlu1 %5007 }
0x2ba1   : > { %v5010_v15 = vmul.f32 0.03125, %v5008_v11  ;;  %v5005_v8 = vpop.xlane.xlu0 %5004 }
0x2ba2   : > { %v5009_v7 = vmul.f32 0.03125, %v5005_v8 }
0x2ba3   : > { %v5012_v28 = vsub.f32 %v5002_v34, %v5010_v15 }
0x2ba4   : > { %v5011_v60 = vsub.f32 %v5001_v10, %v5009_v7 }
0x2ba5   : > { %v5014_v41 = vmul.f32 %v5012_v28, %v5012_v28 }
0x2ba6   : > { %v5013_v42 = vmul.f32 %v5011_v60, %v5011_v60 }
0x2ba7   : > { %v5018_v12 = vsel %vm2029_vm6, %v5014_v41, 0.0 }
0x2ba8   : > { %5019 = vadd.xlane.f32.xlu1 %v5018_v12  ;;  %v5015_v31 = vsel %vm1067_vm2, %v5013_v42, 0.0 }
0x2ba9   : > { %5016 = vadd.xlane.f32.xlu0 %v5015_v31 }
0x2c35   : > { %v5020_v51 = vpop.xlane.xlu1 %5019 }
0x2c36   : > { %v5022_v39 = vmul.f32 0.03125, %v5020_v51  ;;  %v5017_v54 = vpop.xlane.xlu0 %5016 }
0x2c37   : > { %v5021_v4 = vmul.f32 0.03125, %v5017_v54 }
0x2c38   : > { %v5024_v37 = vadd.f32 1e-05, %v5022_v39 }
0x2c39   : > { %v5023_v17 = vadd.f32 1e-05, %v5021_v4 }
0x2c3a   : > { %8480 = vrsqrt.f32 %v5024_v37 }
0x2c3b   : > { %8482 = vrsqrt.f32 %v5023_v17 }
0x2c44   : > { %v8481_v13 = vpop.eup %8480 }
0x2c45   : > { %v8483_v23 = vpop.eup %8482  ;;  %v5028_v3 = vmul.f32 %v8481_v13, %v5012_v28 }
0x2c46   : > { %v5027_v43 = vmul.f32 %v8483_v23, %v5011_v60 }
0x2c47   : > { %v5030_v45 = vmul.f32 %v8532_v27, %v5028_v3 }
0x2c48   : > { %v5029_v24 = vmul.f32 %v8532_v27, %v5027_v43 }
0x2c49   : > { %v9699_v52 = vadd.f32 %v8533_v36, %v5030_v45 }
0x2c4a   : > { %v9697_v14 = vadd.f32 %v8533_v36, %v5029_v24 }
0x2c4c   : > { %7671 = vmatprep.mubr.msk.f32.mxu1 %vm1067_vm2, %v9697_v14 }
0x2c4d   : > { %7672 = vmatmul.mubr.msk.f32.vlgmr.msra.gmra.mrb[48].mxu1 %vm1067_vm2, %v9699_v52 }
0x2d20   : > { %v7673_v61 = vpop.f32.mrb[48].mxu1 }
0x2d21   : > { %v5111_v46 = vadd.f32 %v8534_v44, %v7673_v61  ;;  %v5105_v49 = vpop.f32.mrb[49].mxu1 }
0x2d22   : > { %v5106_v53 = vadd.f32 %v8534_v44, %v5105_v49 }
0x2d23   : > { %v9729_v11 = vmul.f32 0.35355338, %v5111_v46 }
0x2d24   : > { %v9706_v56 = vmul.f32 0.35355338, %v5106_v53  ;;  %v8356_v20 = vpack.i.bf16 %v5111_v46, %v5106_v53 }
0x2d25   : > { %v5117_v15 = vmul.f32 %v8845_v25, %v9729_v11  ;;  %v5514_v8 = vmul.f32 %v8875_v35, %v9729_v11  ;;  %v5704_v0 = vmul.f32 %v8981_v6, %v9729_v11 }
0x2d26   : > { %8357 = vrot.lane.b32.xlu0 %v8356_v20, %s10039_s8  ;;  %v5116_v59 = vmul.f32 %v8845_v25, %v9706_v56  ;;  %v5513_v63 = vmul.f32 %v8875_v35, %v9706_v56  ;;  %s10048_s8 = sld [smem:[#allocation29_spill]] }
0x2d28   : > { %7678 = vmatprep.mubr.msk.f32.mxu1 %vm1067_vm2, %v5116_v59  ;;  %7706 = vmatprep.mubr.msk.f32.mxu0 %vm1067_vm2, %v5513_v63  ;;  %v5323_v63 = vmul.f32 %v8931_v5, %v9706_v56 }
0x2d98   : > { %v8358_v34 = vpop.permute.xlu0 %8357 }
0x2d99   : > { %v8360_v10 = vunpack.i.h.bf16 %v8358_v34  ;;  %v8359_v38 = vunpack.i.l.bf16 %v8358_v34  ;;  %v5324_v34 = vmul.f32 %v8931_v5, %v9729_v11 }
0x2d9b   : > { %v9715_v26 = vpack.c.bf16 %v8360_v10, %v8359_v38 }
0x2d9d   : > { %8168 = vmatprep.subr.msk.bf16.mxu1 %vm8855_vm4, %v9715_v26  ;;  %8192 = vmatprep.subr.msk.bf16.mxu0 %vm8855_vm4, %v9715_v26 }
0x2d9e   : > { %8171 = vmatpush3.bf16.xpose.msk.msra.mxu1 %vm8855_vm4, %v9715_v26  ;;  %8195 = vmatpush3.bf16.xpose.msk.msra.mxu0 %vm8855_vm4, %v9715_v26 }
0x2da5   : > { %7679 = vmatmul.mubr.msk.f32.vlgmr.msra.gmra.mrb[50].mxu1 %vm1067_vm2, %v5117_v15  ;;  %7707 = vmatmul.mubr.msk.f32.vlgmr.msra.gmra.mrb[34].mxu0 %vm1067_vm2, %v5514_v8 }
0x2e78   : > { %v7680_v7 = vpop.f32.mrb[50].mxu1  ;;  %v9737_v28 = vpop.f32.mrb[34].mxu0 }
0x2e79   : > { %v5200_v60 = vpop.f32.mrb[51].mxu1  ;;  %v5587_v41 = vpop.f32.mrb[35].mxu0  ;;  %v5206_v12 = vadd.f32 %v7680_v7, %v9564_v1 }
0x2e7a   : > { %v5201_v42 = vadd.f32 %v9559_v57, %v5200_v60 }
0x2e7b   : > { %v5212_v51 = vsel %vm1248_vm8, %v5206_v12, -inf }
0x2e7c   : > { %v5209_v31 = vsel %vm1244_vm9, %v5201_v42, -inf }
0x2e7d   : > { %5210 = vmax.xlane.f32.xlu1 %v5209_v31 }
0x2e81   : > { %5213 = vmax.xlane.f32.xlu1 %v5212_v51  ;;  %v5593_v51 = vadd.f32 %v9737_v28, %v9564_v1 }
0x2f0a   : > { %v5211_v39 = vpop.xlane.xlu1 %5210 }
0x2f0b   : > { %v5215_v54 = vsub.f32 %v5201_v42, %v5211_v39 }
0x2f0d   : > { %v5217_v17 = vmul.f32 1.442695, %v5215_v54  ;;  %v5599_v54 = vsel %vm1248_vm8, %v5593_v51, -inf }
0x2f0e   : > { %v5214_v4 = vpop.xlane.xlu1 %5213 }
0x2f0f   : > { %v5216_v37 = vsub.f32 %v5206_v12, %v5214_v4  ;;  %v5588_v12 = vadd.f32 %v9559_v57, %v5587_v41 }
0x2f11   : > { %v5219_v13 = vmul.f32 1.442695, %v5216_v37  ;;  %v5596_v39 = vsel %vm1244_vm9, %v5588_v12, -inf }
0x2f13   : > { %8484 = vpow2.f32 %v5219_v13 }
0x2f14   : > { %8486 = vpow2.f32 %v5217_v17 }
0x2f1d   : > { %v8485_v23 = vpop.eup %8484 }
0x2f1e   : > { %v5224_v3 = vsel %vm1248_vm8, %v8485_v23, 0.0  ;;  %v8487_v43 = vpop.eup %8486 }
0x2f1f   : > { %5225 = vadd.xlane.f32.xlu1 %v5224_v3  ;;  %v5221_v27 = vsel %vm1244_vm9, %v8487_v43, 0.0 }
0x2f23   : > { %5222 = vadd.xlane.f32.xlu1 %v5221_v27 }
0x2f34   : > { %8362 = vrot.lane.b32.xlu1 %v8356_v20, %s10040_s10  ;;  %s9910_s10 = scalar_lea.hbm %s10048_s8, %s6919_s24 }
0x2fac   : > { %v5226_v45 = vpop.xlane.xlu1 %5225 }
0x2fad   : > { %8488 = vrcp.f32 %v5226_v45 }
0x2fb0   : > { %v5223_v24 = vpop.xlane.xlu1 %5222 }
0x2fb1   : > { %8490 = vrcp.f32 %v5223_v24 }
0x2fb4   : > { %v8363_v36 = vpop.permute.xlu1 %8362 }
0x2fb5   : > { %v8365_v61 = vunpack.i.h.bf16 %v8363_v36  ;;  %v8364_v44 = vunpack.i.l.bf16 %v8363_v36 }
0x2fb7   : > { %v9746_v46 = vpack.c.bf16 %v8365_v61, %v8364_v44  ;;  %v8489_v49 = vpop.eup %8488 }
0x2fb8   : > { %v5230_v59 = vmul.f32 %v8489_v49, %v8485_v23 }
0x2fb9   : > { %8174 = vmatprep.subr.msk.bf16.mxu1 %vm8909_vm13, %v9746_v46  ;;  %8210 = vmatprep.subr.msk.bf16.mxu0 %vm8909_vm13, %v9746_v46 }
0x2fba   : > { %8177 = vmatpush3.bf16.msk.msra.mxu1 %vm8909_vm13, %v9746_v46  ;;  %8213 = vmatpush3.bf16.msk.msra.mxu0 %vm8909_vm13, %v9746_v46 }
0x2fbb   : > { %v8491_v53 = vpop.eup %8490  ;;  %8180 = vmatprep.subr.msk.bf16.mxu1 %vm8855_vm4, %v9715_v26  ;;  %8215 = vmatprep.subr.bf16.mxu0 %v9325_v22 }
0x2fbc   : > { %v5229_v20 = vmul.f32 %v8491_v53, %v8487_v43 }
0x2fbe   : > { %7685 = vmatprep.mubr.msk.f32.mxu1 %vm1244_vm9, %v5229_v20 }
0x2fbf   : > { %7686 = vmatmul.mubr.msk.f32.vlgmr.msra.gmra.mrb[52].mxu1 %vm1244_vm9, %v5230_v59 }
0x2fc0   : > { %7692 = vmatprep.mubr.msk.f32.mxu1 %vm1067_vm2, %v5323_v63 }
0x2fc3   : > { %8183 = vmatpush3.bf16.xpose.msk.msra.mxu1 %vm8855_vm4, %v9715_v26 }
0x2fc4   : > { %8186 = vmatprep.subr.msk.bf16.mxu1 %vm8909_vm13, %v9746_v46 }
0x2fca   : > { %7693 = vmatmul.mubr.msk.f32.vlgmr.msra.gmra.mrb[54].mxu1 %vm1067_vm2, %v5324_v34 }
0x2fcb   : > { %8189 = vmatpush3.bf16.msk.msra.mxu1 %vm8909_vm13, %v9746_v46 }
0x2fcc   : > { %8198 = vmatprep.subr.msk.bf16.mxu1 %vm8909_vm13, %v9746_v46 }
0x3092   : > { %v9784_v10 = vpop.f32.mrb[52].mxu1 }
0x3093   : > { %v9786_v38 = vpop.f32.mrb[53].mxu1  ;;  %v5320_v32 = vmul.f32 %v9784_v10, %v8845_v25 }
0x3094   : > { %v5319_v11 = vmul.f32 %v8845_v25, %v9786_v38 }
0x309d   : > { %v7694_v15 = vpop.f32.mrb[54].mxu1 }
0x309e   : > { %v5403_v8 = vadd.f32 %v7694_v15, %v9564_v1  ;;  %v5397_v7 = vpop.f32.mrb[55].mxu1 }
0x309f   : > { %v5398_v60 = vadd.f32 %v9559_v57, %v5397_v7 }
0x30a0   : > { %v5409_v42 = vsel %vm1248_vm8, %v5403_v8, -inf }
0x30a1   : > { %5410 = vmax.xlane.f32.xlu1 %v5409_v42  ;;  %v5406_v31 = vsel %vm1244_vm9, %v5398_v60, -inf }
0x30a2   : > { %5407 = vmax.xlane.f32.xlu0 %v5406_v31 }
0x30a6   : > { %5597 = vmax.xlane.f32.xlu0 %v5596_v39 }
0x30aa   : > { %5600 = vmax.xlane.f32.xlu0 %v5599_v54 }
0x312e   : > { %v5411_v4 = vpop.xlane.xlu1 %5410 }
0x312f   : > { %v5413_v37 = vsub.f32 %v5403_v8, %v5411_v4  ;;  %v5408_v17 = vpop.xlane.xlu0 %5407 }
0x3130   : > { %v5412_v13 = vsub.f32 %v5398_v60, %v5408_v17 }
0x3131   : > { %v5416_v23 = vmul.f32 1.442695, %v5413_v37  ;;  %v5703_v37 = vmul.f32 %v8981_v6, %v9706_v56  ;;  %v10043_v56 = vmov 0.0|0.0  }
0x3132   : > { %v5414_v3 = vmul.f32 1.442695, %v5412_v13 }
0x3133   : > { %v5598_v41 = vpop.xlane.xlu0 %5597 }
0x3134   : > { %8492 = vpow2.f32 %v5414_v3  ;;  %v5602_v43 = vsub.f32 %v5588_v12, %v5598_v41 }
0x3135   : > { %8494 = vpow2.f32 %v5416_v23 }
0x3136   : > { %v5604_v27 = vmul.f32 1.442695, %v5602_v43 }
0x3137   : > { %v5601_v45 = vpop.xlane.xlu0 %5600 }
0x3138   : > { %v5603_v24 = vsub.f32 %v5593_v51, %v5601_v45  ;;  %8496 = vpow2.f32 %v5604_v27 }
0x313a   : > { %v5606_v28 = vmul.f32 1.442695, %v5603_v24 }
0x313c   : > { %8498 = vpow2.f32 %v5606_v28 }
0x313e   : > { %v8493_v36 = vpop.eup %8492 }
0x313f   : > { %v5418_v61 = vsel %vm1244_vm9, %v8493_v36, 0.0  ;;  %v8495_v44 = vpop.eup %8494 }
0x3140   : > { %5419 = vadd.xlane.f32.xlu0 %v5418_v61  ;;  %v5421_v49 = vsel %vm1248_vm8, %v8495_v44, 0.0 }
0x3142   : > { %v8497_v53 = vpop.eup %8496 }
0x3143   : > { %v5608_v59 = vsel %vm1244_vm9, %v8497_v53, 0.0 }
0x3144   : > { %5422 = vadd.xlane.f32.xlu0 %v5421_v49 }
0x3146   : > { %v8499_v20 = vpop.eup %8498 }
0x3147   : > { %v5611_v63 = vsel %vm1248_vm8, %v8499_v20, 0.0 }
0x3148   : > { %5609 = vadd.xlane.f32.xlu0 %v5608_v59  ;;  %5612 = vadd.xlane.f32.xlu1 %v5611_v63 }
0x31cd   : > { %v5420_v34 = vpop.xlane.xlu0 %5419 }
0x31ce   : > { %8500 = vrcp.f32 %v5420_v34 }
0x31d1   : > { %v5423_v15 = vpop.xlane.xlu0 %5422 }
0x31d2   : > { %8502 = vrcp.f32 %v5423_v15 }
0x31d5   : > { %v5613_v8 = vpop.xlane.xlu1 %5612  ;;  %v5610_v7 = vpop.xlane.xlu0 %5609 }
0x31d6   : > { %8504 = vrcp.f32 %v5613_v8 }
0x31d7   : > { %8506 = vrcp.f32 %v5610_v7 }
0x31d8   : > { %v8501_v60 = vpop.eup %8500 }
0x31d9   : > { %v5426_v42 = vmul.f32 %v8501_v60, %v8493_v36 }
0x31db   : > { %7699 = vmatprep.mubr.msk.f32.mxu1 %vm1244_vm9, %v5426_v42 }
0x31dc   : > { %v8503_v12 = vpop.eup %8502 }
0x31dd   : > { %v5427_v31 = vmul.f32 %v8503_v12, %v8495_v44 }
0x31df   : > { %7700 = vmatmul.mubr.msk.f32.vlgmr.msra.gmra.mrb[56].mxu1 %vm1244_vm9, %v5427_v31 }
0x31e0   : > { %v8505_v51 = vpop.eup %8504  ;;  %8201 = vmatpush3.bf16.msk.msra.mxu1 %vm8909_vm13, %v9746_v46 }
0x31e1   : > { %v8507_v39 = vpop.eup %8506  ;;  %v5617_v54 = vmul.f32 %v8505_v51, %v8499_v20  ;;  %8204 = vmatprep.subr.msk.bf16.mxu1 %vm8855_vm4, %v9715_v26 }
0x31e2   : > { %v5616_v4 = vmul.f32 %v8507_v39, %v8497_v53 }
0x31e4   : > { %7713 = vmatprep.mubr.msk.f32.mxu1 %vm1244_vm9, %v5616_v4 }
0x31e5   : > { %7714 = vmatmul.mubr.msk.f32.vlgmr.msra.gmra.mrb[58].mxu1 %vm1244_vm9, %v5617_v54 }
0x31e6   : > { %7720 = vmatprep.mubr.msk.f32.mxu1 %vm1067_vm2, %v5703_v37 }
0x31e9   : > { %8207 = vmatpush3.bf16.xpose.msk.msra.mxu1 %vm8855_vm4, %v9715_v26 }
0x31ea   : > { %8223 = vmatprep.subr.bf16.mxu1 %v9358_v19 }
0x31f0   : > { %7721 = vmatmul.mubr.msk.f32.vlgmr.msra.gmra.mrb[60].mxu1 %vm1067_vm2, %v5704_v0 }
0x31f1   : > { %8225 = vmatpush3.bf16.msra.mxu1 %v9358_v19 }
0x31f2   : > { %8227 = vmatprep.subr.bf16.mxu1 %v9364_v33 }
0x31f5   : > { %8229 = vmatpush3.bf16.msra.mxu1 %v9364_v33 }
0x31f6   : > { %8262 = vmatprep.subr.bf16.mxu1 %v10043_v56 }
0x32b2   : > { %v7701_v46 = vpop.f32.mrb[56].mxu1 }
0x32b3   : > { %v5510_v26 = vmul.f32 %v7701_v46, %v8931_v5  ;;  %v5500_v17 = vpop.f32.mrb[57].mxu1 }
0x32b4   : > { %v5509_v13 = vmul.f32 %v8931_v5, %v5500_v17 }
0x32b5   : > { %v5512_v23 = vadd.f32 %v5510_v26, %v5320_v32 }
0x32b6   : > { %v5511_v19 = vadd.f32 %v5509_v13, %v5319_v11 }
0x32b8   : > { %v7715_v3 = vpop.f32.mrb[58].mxu1 }
0x32b9   : > { %v5700_v41 = vmul.f32 %v7715_v3, %v8875_v35  ;;  %v5690_v33 = vpop.f32.mrb[59].mxu1 }
0x32ba   : > { %v5699_v43 = vmul.f32 %v8875_v35, %v5690_v33 }
0x32bb   : > { %v5702_v27 = vadd.f32 %v5700_v41, %v5512_v23 }
0x32bc   : > { %v5701_v45 = vadd.f32 %v5699_v43, %v5511_v19 }
0x32c3   : > { %v7722_v24 = vpop.f32.mrb[60].mxu1 }
0x32c4   : > { %v5783_v10 = vadd.f32 %v7722_v24, %v9564_v1  ;;  %v5777_v28 = vpop.f32.mrb[61].mxu1 }
0x32c5   : > { %v5778_v36 = vadd.f32 %v9559_v57, %v5777_v28  ;;  %v8537_v28 = vld [vmem:[%s9128_s4 + $0x1] ss:$0 sm:$0xff] }
0x32c6   : > { %v5789_v25 = vsel %vm1248_vm8, %v5783_v10, -inf }
0x32c7   : > { %5790 = vmax.xlane.f32.xlu1 %v5789_v25  ;;  %v5786_v5 = vsel %vm1244_vm9, %v5778_v36, -inf }
0x32c8   : > { %5787 = vmax.xlane.f32.xlu0 %v5786_v5  ;;  %v10044_v5 = vmov 0.0  }
0x3354   : > { %v5791_v38 = vpop.xlane.xlu1 %5790 }
0x3355   : > { %v5793_v61 = vsub.f32 %v5783_v10, %v5791_v38  ;;  %v5788_v44 = vpop.xlane.xlu0 %5787 }
0x3356   : > { %v5792_v49 = vsub.f32 %v5778_v36, %v5788_v44 }
0x3357   : > { %v5796_v53 = vmul.f32 1.442695, %v5793_v61  ;;  %v8538_v61 = vld [vmem:[%s9146_s6 + $0x1] ss:$0 sm:$0xff] }
0x3358   : > { %v5794_v35 = vmul.f32 1.442695, %v5792_v49 }
0x3359   : > { %8508 = vpow2.f32 %v5796_v53 }
0x335a   : > { %8510 = vpow2.f32 %v5794_v35 }
0x3363   : > { %v8509_v20 = vpop.eup %8508 }
0x3364   : > { %v8511_v59 = vpop.eup %8510  ;;  %v5801_v1 = vsel %vm1248_vm8, %v8509_v20, 0.0 }
0x3365   : > { %5802 = vadd.xlane.f32.xlu1 %v5801_v1  ;;  %v5798_v57 = vsel %vm1244_vm9, %v8511_v59, 0.0  ;;  %v8539_v1 = vld [vmem:[%s9153_s9 + $0x1] ss:$0 sm:$0xff]  ;;  %s849_s9 = sand.u32 1, %s8598_s22  }
0x3366   : > { %5799 = vadd.xlane.f32.xlu0 %v5798_v57 }
0x33f2   : > { %v5803_v63 = vpop.xlane.xlu1 %5802 }
0x33f3   : > { %8512 = vrcp.f32 %v5803_v63  ;;  %v5800_v34 = vpop.xlane.xlu0 %5799 }
0x33f4   : > { %8514 = vrcp.f32 %v5800_v34 }
0x33fd   : > { %v8513_v15 = vpop.eup %8512 }
0x33fe   : > { %v8515_v8 = vpop.eup %8514  ;;  %v5807_v60 = vmul.f32 %v8513_v15, %v8509_v20 }
0x33ff   : > { %v5806_v7 = vmul.f32 %v8515_v8, %v8511_v59 }
0x3401   : > { %7727 = vmatprep.mubr.msk.f32.mxu0 %vm1244_vm9, %v5806_v7 }
0x3402   : > { %7728 = vmatmul.mubr.msk.f32.vlgmr.msra.gmra.mrb[36].mxu0 %vm1244_vm9, %v5807_v60 }
0x3403   : > { %8217 = vmatpush3.bf16.msra.mxu0 %v9325_v22  ;;  %v8535_v22 = vld [vmem:[%s9035_s28 + $0x1] ss:$0 sm:$0xff] }
0x3404   : > { %8219 = vmatprep.subr.bf16.mxu0 %v9333_v29 }
0x3407   : > { %8221 = vmatpush3.bf16.msra.mxu0 %v9333_v29 }
0x3408   : > { %8231 = vmatprep.subr.bf16.mxu0 %v9371_v16 }
0x34d5   : > { %v7729_v42 = vpop.f32.mrb[36].mxu0 }
0x34d6   : > { %v5890_v12 = vmul.f32 %v7729_v42, %v8981_v6  ;;  %v5880_v31 = vpop.f32.mrb[37].mxu0 }
0x34d7   : > { %v5889_v51 = vmul.f32 %v8981_v6, %v5880_v31 }
0x34d8   : > { %v5892_v39 = vadd.f32 %v5890_v12, %v5702_v27 }
0x34d9   : > { %v5891_v54 = vadd.f32 %v5889_v51, %v5701_v45  ;;  %v8536_v45 = vld [vmem:[%s9122_s20 + $0x1] ss:$0 sm:$0xff] }
0x34db   : > { %7738 = vmatprep.mubr.msk.f32.mxu0 %vm1067_vm2, %v5891_v54  ;;  %v8540_v54 = vld [vmem:[%s9176_s0 + $0x1] ss:$0 sm:$0xff] }
0x34dc   : > { %7739 = vmatmul.mubr.msk.f32.vlgmr.msra.gmra.mrb[38].mxu0 %vm1067_vm2, %v5892_v39 }
0x34dd   : > { %8233 = vmatpush3.bf16.msra.mxu0 %v9371_v16 }
0x34de   : > { %8235 = vmatprep.subr.bf16.mxu0 %v9374_v48 }
0x34e1   : > { %8237 = vmatpush3.bf16.msra.mxu0 %v9374_v48 }
0x34e2   : > { %8239 = vmatprep.subr.bf16.mxu0 %v9381_v40 }
0x34e5   : > { %8241 = vmatpush3.bf16.msra.mxu0 %v9381_v40 }
0x34e6   : > { %8243 = vmatprep.subr.bf16.mxu0 %v9387_v62 }
0x34e9   : > { %8245 = vmatpush3.bf16.msra.mxu0 %v9387_v62 }
0x34ea   : > { %8247 = vmatprep.subr.bf16.mxu0 %v9393_v58 }
0x34ed   : > { %8249 = vmatpush3.bf16.msra.mxu0 %v9393_v58 }
0x34ee   : > { %8251 = vmatprep.subr.bf16.mxu0 %v9399_v2 }
0x34f1   : > { %8253 = vmatpush3.bf16.msra.mxu0 %v9399_v2 }
0x34f2   : > { %8255 = vmatprep.subr.bf16.mxu0 %v9405_v50 }
0x34f5   : > { %8257 = vmatpush3.bf16.msra.mxu0 %v9405_v50 }
0x34f6   : > { %8259 = vmatprep.subr.bf16.mxu0 %v9418_v30 }
0x34f9   : > { %8261 = vmatpush3.bf16.msra.mxu0 %v9418_v30 }
0x35af   : > { %v7740_v6 = vpop.f32.mrb[38].mxu0 }
0x35b0   : > { %v5971_v29 = vadd.f32 %v8535_v22, %v7740_v6  ;;  %v5965_v16 = vpop.f32.mrb[39].mxu0 }
0x35b1   : > { %v5966_v48 = vadd.f32 %v8535_v22, %v5965_v16  ;;  %v8541_v22 = vld [vmem:[%s9182_s11 + $0x1] ss:$0 sm:$0xff]  ;;  %s6681_s11 = sshll.u32 %s849_s9, 1 }
0x35b2   : > { %v5975_v40 = vadd.f32 %v5971_v29, %v9699_v52  ;;  %s851_s28 = scalar_lea.vmem [#allocation2], %s6681_s11 }
0x35b3   : > { %v5974_v62 = vadd.f32 %v5966_v48, %v9697_v14  ;;  %v8542_v48 = vld [vmem:[%s9472_s13] sm:$0x1]  ;;  %s6420_s20 = sshll.u32 %s851_s28, 4  ;;  %s6407_s13 = scalar_lea.sflag [#allocation3], %s849_s9  ;;  %s9912_s20 = int_to_ptr.vmem [resolvable:$true] %s6420_s20 }
0x35b4   : > { %v5979_v58 = vsel %vm2029_vm6, %v5975_v40, 0.0  ;;  %s8544_s2 = scalar_lea.vmem %s9912_s20, 32  ;;  %p8551_p0 = scmp.lt.s32.totalorder %s9912_s20, %s8549_s14 }
0x35b5   : > { %5980 = vadd.xlane.f32.xlu1 %v5979_v58  ;;  %v5976_v2 = vsel %vm1067_vm2, %v5974_v62, 0.0  ;;  %v8543_v58 = vld [vmem:[%s9494_s5] sm:$0x1]  ;;  %p8545_p11 = scmp.ne.s32.totalorder %s9912_s20, %s8544_s2 }
0x35b6   : > { %5977 = vadd.xlane.f32.xlu0 %v5976_v2 }
0x35b7   : > { %p8546_p12 = pnand %p8545_p11, %p8758_p5 }
0x35b9   : > { %p8547_p13 = pneg %p8546_p12 }
0x3642   : > { %v5981_v50 = vpop.xlane.xlu1 %5980 }
0x3643   : > { %v5983_v4 = vmul.f32 0.03125, %v5981_v50  ;;  %v5978_v37 = vpop.xlane.xlu0 %5977 }
0x3644   : > { %v5982_v0 = vmul.f32 0.03125, %v5978_v37  ;;  %v6838_v37 = vld [vmem:[%s9494_s5 + $0x1] sm:$0x1]  ;;  %s8550_s5 = scalar_lea.vmem %s8549_s14, 64 }
0x3645   : > { %v5985_v30 = vsub.f32 %v5975_v40, %v5983_v4  ;;  %p8552_p1 = scmp.lt.s32.totalorder %s8550_s5, %s8544_s2 }
0x3646   : > { %v5984_v46 = vsub.f32 %v5974_v62, %v5982_v0 }
0x3647   : > { %v5987_v32 = vmul.f32 %v5985_v30, %v5985_v30  ;;  %p8553_p2 = por %p8552_p1, %p8551_p0 }
0x3648   : > { %v5986_v26 = vmul.f32 %v5984_v46, %v5984_v46 }
0x3649   : > { %v5991_v17 = vsel %vm2029_vm6, %v5987_v32, 0.0  ;;  %p8554_p3 = pnand %p8553_p2, %p8547_p13 }
0x364a   : > { %5992 = vadd.xlane.f32.xlu1 %v5991_v17  ;;  %v5988_v14 = vsel %vm1067_vm2, %v5986_v26, 0.0 }
0x364b   : > { %5989 = vadd.xlane.f32.xlu0 %v5988_v14 }
0x36d7   : > { %v5993_v52 = vpop.xlane.xlu1 %5992 }
0x36d8   : > { %v5995_v11 = vmul.f32 0.03125, %v5993_v52  ;;  %v5990_v13 = vpop.xlane.xlu0 %5989 }
0x36d9   : > { %v5994_v23 = vmul.f32 0.03125, %v5990_v13 }
0x36da   : > { %v5997_v19 = vadd.f32 1e-05, %v5995_v11 }
0x36db   : > { %v5996_v3 = vadd.f32 1e-05, %v5994_v23 }
0x36dc   : > { %8516 = vrsqrt.f32 %v5997_v19 }
0x36dd   : > { %8518 = vrsqrt.f32 %v5996_v3 }
0x36e6   : > { %v8517_v41 = vpop.eup %8516 }
0x36e7   : > { %v8519_v33 = vpop.eup %8518  ;;  %v6001_v43 = vmul.f32 %v8517_v41, %v5985_v30 }
0x36e8   : > { %v6000_v27 = vmul.f32 %v8519_v33, %v5984_v46 }
0x36e9   : > { %v6003_v24 = vmul.f32 %v8536_v45, %v6001_v43 }
0x36ea   : > { %v6002_v10 = vmul.f32 %v8536_v45, %v6000_v27 }
0x36eb   : > { %v6005_v25 = vadd.f32 %v8537_v28, %v6003_v24 }
0x36ec   : > { %v6004_v36 = vadd.f32 %v8537_v28, %v6002_v10 }
0x36ee   : > { %7749 = vmatprep.mubr.msk.f32.mxu1 %vm1067_vm2, %v6004_v36 }
0x36ef   : > { %7750 = vmatmul.mubr.msk.f32.vlgmr.msra.gmra.mrb[62].mxu1 %vm1067_vm2, %v6005_v25 }
0x36f0   : > { %8264 = vmatpush3.bf16.msra.mxu1 %v9434_v9  ;;  %7795 = vmatprep.mubr.msk.f32.mxu1 %vm8613_vm7, %v10044_v5 }
0x36f1   : > { %8265 = vmatprep.subr.bf16.mxu1 %v10043_v56 }
0x36f4   : > { %8267 = vmatpush3.bf16.msra.mxu1 %v9439_v21 }
0x36f5   : > { %8268 = vmatprep.subr.bf16.mxu1 %v10043_v56 }
0x37c2   : > { %v7751_v38 = vpop.f32.mrb[62].mxu1 }
0x37c3   : > { %v6084_v44 = vadd.f32 %v8538_v61, %v7751_v38  ;;  %v6078_v49 = vpop.f32.mrb[63].mxu1 }
0x37c4   : > { %v6079_v53 = vadd.f32 %v8538_v61, %v6078_v49 }
0x37c5   : > { %v6088_v20 = vmax.f32 %v6084_v44, 0.0 }
0x37c6   : > { %v6087_v35 = vmax.f32 %v6079_v53, 0.0 }
0x37c8   : > { %7784 = vmatprep.mubr.f32.mxu0 %v6087_v35 }
0x37c9   : > { %7785 = vmatmul.mubr.f32.vlgmr.msra.gmra.mrb[40].mxu0 %v6088_v20 }
0x389c   : > { %v7786_v9 = vpop.f32.mrb[40].mxu0 }
0x389d   : > { %v6155_v59 = vpop.f32.mrb[41].mxu0 }
0x389e   : > { %v6156_v57 = vadd.f32 %v8539_v1, %v6155_v59 }
0x38a0   : > { %v6163_v63 = vadd.f32 %v6156_v57, %v6004_v36 }
0x38a2   : > { %v6164_v34 = vsel %vm1067_vm2, %v6163_v63, 0.0 }
0x38a3   : > { %6165 = vadd.xlane.f32.xlu0 %v6164_v34 }
0x3930   : > { %v6166_v21 = vpop.xlane.xlu0 %6165 }
0x3931   : > { %v6167_v15 = vmul.f32 0.03125, %v6166_v21 }
0x3933   : > { %v6168_v8 = vsub.f32 %v6163_v63, %v6167_v15 }
0x3935   : > { %v6169_v7 = vmul.f32 %v6168_v8, %v6168_v8 }
0x3937   : > { %v6170_v60 = vsel %vm1067_vm2, %v6169_v7, 0.0 }
0x3938   : > { %6171 = vadd.xlane.f32.xlu1 %v6170_v60 }
0x39c5   : > { %v6172_v42 = vpop.xlane.xlu1 %6171 }
0x39c6   : > { %v6173_v12 = vmul.f32 0.03125, %v6172_v42 }
0x39c8   : > { %v6174_v31 = vadd.f32 1e-05, %v6173_v12 }
0x39ca   : > { %8520 = vrsqrt.f32 %v6174_v31 }
0x39d4   : > { %v8521_v51 = vpop.eup %8520 }
0x39d5   : > { %v6176_v39 = vmul.f32 %v8521_v51, %v6168_v8 }
0x39d7   : > { %v6177_v6 = vmul.f32 %v8540_v54, %v6176_v39 }
0x39d9   : > { %v6178_v29 = vadd.f32 %v8541_v22, %v6177_v6 }
0x39db   : > { %7796 = vmatmul.mubr.msk.f32.vlgmr.msra.gmra.mrb[64].mxu1 %vm1067_vm2, %v6178_v29 }
0x39dc   : > { %8270 = vmatpush3.bf16.msra.mxu1 %v9455_v18  ;;  %7806 = vmatprep.mubr.msk.f32.mxu1 %vm8613_vm7, %v10044_v5  ;;  %v10045_v18 = vld [vmem:[#allocation12_spill] sm:$0xff] }
0x39dd   : > { %8271 = vmatprep.subr.bf16.mxu1 %v10043_v56 }
0x39e0   : > { %8273 = vmatpush3.bf16.msra.mxu1 %v9464_v47 }
0x39e1   : > { %8274 = vmatprep.subr.bf16.mxu1 %v10043_v56 }
0x3aae   : > { %v6248_v16 = vpop.f32.mrb[64].mxu1 }
0x3aaf   : > { %v6249_v40 = vadd.f32 %v8542_v48, %v6248_v16  ;;  %v7797_v62 = vpop.f32.mrb[65].mxu1 }
0x3ab1   : > { %7807 = vmatmul.mubr.msk.f32.vlgmr.msra.gmra.mrb[66].mxu1 %vm1067_vm2, %v6249_v40 }
0x3ab2   : > { %8276 = vmatpush3.bf16.msra.mxu1 %v9477_v55  ;;  %7817 = vmatprep.mubr.msk.f32.mxu1 %vm8613_vm7, %v10044_v5  ;;  %v10046_v55 = vld [vmem:[#allocation13_spill] sm:$0xff] }
0x3ab3   : > { %8277 = vmatprep.subr.bf16.mxu1 %v10043_v56  ;;  %v3779_v30 = vadd.f32 %v6838_v37, %v10046_v55 }
0x3ab5   : > { %v3782_v26 = vmax.f32 %v3779_v30, 0.0 }
0x3ab6   : > { %8279 = vmatpush3.bf16.msra.mxu1 %v10045_v18 }
0x3b84   : > { %v6321_v47 = vpop.f32.mrb[66].mxu1 }
0x3b85   : > { %v6322_v2 = vadd.f32 %v8543_v58, %v6321_v47  ;;  %v7808_v50 = vpop.f32.mrb[67].mxu1 }
0x3b87   : > { %v6325_v4 = vmax.f32 %v6322_v2, 0.0 }
0x3b89   : > { %7818 = vmatmul.mubr.msk.f32.vlgmr.msra.gmra.mrb[68].mxu1 %vm1067_vm2, %v6325_v4 }
0x3c5c   : > { %v6395_v0 = vpop.f32.mrb[68].mxu1 }
0x3c5d   : > { %v6396_v46 = vadd.f32 %v6838_v37, %v6395_v0  ;;  %v7819_v32 = vpop.f32.mrb[69].mxu1 }
0x3c5f   : > { %v6399_v56 = vmax.f32 %v6396_v46, 0.0 }
0x3c61   : > { %v6401_v17 = vrot.slane %v6399_v56, 7 }
0x3c63   : > { %v6403_v14 = vsel %vm977_vm1, %v3782_v26, %v6401_v17 }
0x3c64   : > { %6405 = vst.msk [vmem:[%s851_s28] sm:$0x3] %vm6404_vm0, %v6403_v14 }
0x3c65   : > { %8557 = shalt.err (!%p8554_p3)
}
0x3c66   : > { %s8558_s1 = scalar_lea.hbm %s9910_s10, 32  ;;  %s8562_s23 = scalar_lea.hbm %s10048_s8, 64 }
0x3c67   : > { %p8559_p4 = scmp.ne.s32.totalorder %s9910_s10, %s8558_s1  ;;  %p8563_p9 = scmp.lt.u32.totalorder %s9910_s10, %s10048_s8 }
0x3c68   : > { %p8564_p10 = scmp.lt.u32.totalorder %s8562_s23, %s8558_s1  ;;  %p8566_p12 = scmp.lt.u32.totalorder %s8558_s1, %s9910_s10 }
0x3c69   : > { %p8560_p7 = pnand %p8559_p4, %p8758_p5 }
0x3c6a   : > { %p8565_p11 = por %p8564_p10, %p8563_p9 }
0x3c6b   : > { %p8561_p8 = pneg %p8560_p7 }
0x3c6c   : > { %p8567_p13 = por %p8566_p12, %p8565_p11 }
0x3c6e   : > { %p8568_p0 = pnand %p8567_p13, %p8561_p8 }
0x3c70   : > { %8571 = shalt.err (!%p8568_p0)
}
0x3c71   : > { %8281 = dma.vmem_to_hbm [thread:$0]  (%p8758_p5), %s9912_s20, 32, %s9910_s10, %s6407_s13  }
0x3c72 PF: > { %s10049_s27 = sld [smem:[#allocation7_spill]]  ;;  %s10050_s7 = sld [smem:[#allocation5_spill]] }
0x3c78   : > { %p8287_p1 = scmp.ge.s32.totalorder %s10049_s27, 2  ;;  %s6432_s11 = sand.u32 1, %s10050_s7  }
0x3c79   : > { %s6433_s24 = scalar_lea.sflag [#allocation3], %s6432_s11 }
0x3c7a   : > { %p8284_p2 = pnand %p8287_p1, %p8762_p6 }
0x3c7c   : > { %8589 = dma.done.wait (!%p8284_p2), %s6433_s24, 32  }
0x3c7d   : > { %8591 = vsyncadd (!%p8284_p2), %s6433_s24, 4294967264  ;;  %s10052_s24 = sld [smem:[#allocation8_spill]]  ;;  %s10053_s28 = sld [smem:[#allocation6_spill]] }
0x3c7e   : > { %s10054_s23 = sld [smem:[#allocation9_spill]]  ;;  %s10055_s1 = smov %s8598_s22 }
0x3c83   : > { %p30_p3 = scmp.ge.s32.totalorder %s10052_s24, 4   ;;  %s10056_s22 = smov %s10053_s28 }
0x3c85   :  { %32 = sbr.rel (!%p30_p3) target bundleno = 20 (0x14), region = 202 }
0x3c8c   :  { %6438 = vsyncpa [#allocation3], 1 }
0x3c8d   :  { %6440 = vsyncpa [#allocation3 + $0x1], 1 }

</bundles_post_ra>
